<compile_context>
chip_gen: v6e
topology: v6e:2x2x1
jax: 0.10.0
libtpu: 0.0.40
codegen_flags: <defaults>
</compile_context>

<pallas_src>
import functools

import jax
import jax.numpy as jnp
from jax.experimental import pallas as pl
from jax.experimental.pallas import tpu as pltpu


_VMEM_BUDGET = 48 * 1024 * 1024        # leave headroom under v7x's 64 MiB/TC
_STEP_OVERHEAD_ROWS = 200              # ~0.35 us grid-step cost in MXU row-equivalents


def _round_up(n, m):
    return ((n + m - 1) // m) * m


def _choose_tile_b(B, requested=None):
    """Batch tile: large (amortize per-step overhead), multiple of 256 (full MXU M
    dim on v6e/v7x), >= 2 grid steps (v7x's two TCs), minimal dead-row padding."""
    B8 = _round_up(B, 8)
    if requested is not None:
        return min(_round_up(requested, 8), B8)
    if B8 <= 256:
        return B8                                        # tiny batch: one exact tile
    cands = set(range(256, 2048 + 1, 256))
    cands |= {_round_up(pl.cdiv(B, n), 256) for n in range(2, 9)}
    best = None
    for t in sorted(c for c in cands if 256 <= c <= 2048):
        n = pl.cdiv(B, t)
        if n < 2:                                        # keep both v7x TCs busy
            continue
        cost = (n * t - B) + _STEP_OVERHEAD_ROWS * n     # dead rows + step overhead
        if best is None or cost < best[0]:
            best = (cost, t)
    return best[1] if best is not None else 256


def _choose_sub_b(tile_b, requested=None):
    """Row sub-block inside the kernel (bounds inter-layer f32 scratch)."""
    if requested is not None and requested % 8 == 0 and tile_b % requested == 0:
        return requested
    for s in (256, 128, 64):
        if tile_b > s and tile_b % s == 0:
            return s
    return tile_b


def _footprint_bytes(tile_b, sub_b, x_cols, weights_bytes, c_pad, max_w):
    """Rough VMEM footprint: double-buffered x/out tiles, weights (assume 2 bufs),
    plus in-flight per-sub-block f32 intermediates."""
    x_tiles = 2 * tile_b * x_cols * 4            # conservatively assume f32 x
    out_tiles = 2 * tile_b * c_pad * 4
    scratch = 4 * sub_b * max_w * 4
    return 2 * weights_bytes + x_tiles + out_tiles + scratch


def _mlp_kernel(*refs, n_layers, c_out, sub_b):
    """(Linear -> ReLU) x n_layers, then masked softmax over the last dim.

    refs layout: x_ref, (w_ref, b_ref) * n_layers, out_ref
      x_ref:   (TILE_B, K)          f32 or bf16
      w_ref:   (in[_pad], out_pad)  bf16      b_ref: (1, out_pad) f32
      out_ref: (TILE_B, C_pad)      f32
    """
    x_ref = refs[0]
    out_ref = refs[-1]
    tile_b = x_ref.shape[0]
    n_sub = tile_b // sub_b

    def chain(x_sub):
        h = x_sub.astype(jnp.bfloat16)
        for l in range(n_layers):
            w_ref = refs[1 + 2 * l]
            b_ref = refs[2 + 2 * l]
            y = jnp.dot(h, w_ref[...], preferred_element_type=jnp.float32)  # MXU, f32 acc
            y = jnp.maximum(y + b_ref[...], 0.0)                            # bias + ReLU (f32)
            h = y if l == n_layers - 1 else y.astype(jnp.bfloat16)          # bf16 for next MXU
        # softmax(dim=-1), numerically stable; mask the padded logit lanes.
        lane = jax.lax.broadcasted_iota(jnp.int32, h.shape, 1)
        h = jnp.where(lane < c_out, h, -jnp.inf)
        m = jnp.max(h, axis=-1, keepdims=True)      # finite: ReLU outputs >= 0
        e = jnp.exp(h - m)                          # padded lanes -> exp(-inf) = 0
        return e / jnp.sum(e, axis=-1, keepdims=True)   # exact normalization

    if n_sub <= 1:
        out_ref[...] = chain(x_ref[...]).astype(out_ref.dtype)
    else:
        # Row sub-blocks keep inter-layer f32 intermediates at sub_b x width.
        @pl.loop(0, n_sub)
        def _(s):
            r = pl.multiple_of(s * sub_b, sub_b)
            out_ref[pl.ds(r, sub_b), :] = chain(
                x_ref[pl.ds(r, sub_b), :]).astype(out_ref.dtype)


def mlp_forward(x, params, *, tile_b=None, sub_b=None):
    """x: (B, c_in, seq_len) float32. params: list of (W_t, b) with W_t (in, out)."""
    B = x.shape[0]
    x_flat = x.reshape(B, -1).astype(jnp.float32)   # nn.Flatten(start_dim=1)
    K = x_flat.shape[1]
    c_out = params[-1][0].shape[1]
    n_layers = len(params)

    # Pack weights: pad output dims (and inputs of layers > 0) to multiples of 128.
    # Layer 0 keeps its input dim = K so x needs no column padding. Zero weight cols
    # + zero bias + ReLU keep padded lanes at exactly 0, so results are unchanged.
    w_args, b_args = [], []
    for l, (w_t, b) in enumerate(params):
        fi, fo = w_t.shape
        fi_p = fi if l == 0 else _round_up(fi, 128)
        fo_p = _round_up(fo, 128)
        w_args.append(jnp.pad(w_t, ((0, fi_p - fi), (0, fo_p - fo))).astype(jnp.bfloat16))
        b_args.append(jnp.pad(b, (0, fo_p - fo)).astype(jnp.float32).reshape(1, fo_p))
    C_pad = b_args[-1].shape[1]
    weights_bytes = sum(int(a.size) * a.dtype.itemsize for a in w_args + b_args)
    max_w = max(a.shape[1] for a in w_args)

    # Batch tile selection + VMEM cap.
    tb = _choose_tile_b(B, tile_b)
    while tb > 8 and _footprint_bytes(tb, min(256, tb), K, weights_bytes, C_pad,
                                      max_w) > _VMEM_BUDGET:
        tb = max(8, _round_up(tb // 2, 8))
    sb = _choose_sub_b(tb, sub_b)
    B_pad = _round_up(B, tb)
    n_tiles = B_pad // tb

    # Activations: no K padding; only pad rows (and fuse a bf16 cast into that pass)
    # when the batch is ragged, else hand the f32 array straight to the kernel.
    if B_pad == B:
        x_in = x_flat
    else:
        x_in = jnp.pad(x_flat, ((0, B_pad - B), (0, 0))).astype(jnp.bfloat16)

    footprint = _footprint_bytes(tb, sb, K, weights_bytes, C_pad, max_w)
    vmem_limit = int(min(_VMEM_BUDGET,
                         max(int(footprint * 1.25) + (2 << 20), 32 << 20)))

    flat_args = [x_in]
    for w, b in zip(w_args, b_args):
        flat_args.extend((w, b))

    flops = int(sum(2 * B_pad * w.shape[0] * w.shape[1] for w in w_args))
    bytes_accessed = int(sum(int(a.size) * a.dtype.itemsize for a in flat_args)
                         + B_pad * C_pad * 4)
    cost = pl.CostEstimate(flops=flops, transcendentals=int(B_pad * C_pad),
                           bytes_accessed=bytes_accessed)

    kernel = functools.partial(_mlp_kernel, n_layers=n_layers, c_out=c_out, sub_b=sb)
    out_spec = pl.BlockSpec((tb, C_pad), lambda i: (i, 0))

    def build(weight_pipeline_mode):
        in_specs = [pl.BlockSpec((tb, K), lambda i: (i, 0))]
        for a in flat_args[1:]:
            if weight_pipeline_mode is None:
                in_specs.append(pl.BlockSpec(a.shape, lambda i: (0, 0)))
            else:
                in_specs.append(pl.BlockSpec(a.shape, lambda i: (0, 0),
                                             pipeline_mode=weight_pipeline_mode))
        return pl.pallas_call(
            kernel,
            out_shape=jax.ShapeDtypeStruct((B_pad, C_pad), jnp.float32),
            grid=(n_tiles,),
            in_specs=in_specs,
            out_specs=out_spec,
            compiler_params=pltpu.CompilerParams(
                dimension_semantics=("parallel",),
                vmem_limit_bytes=vmem_limit),
            cost_estimate=cost,
        )

    try:
        # Constant-index weights never need double-buffering: single-buffer them to
        # halve their VMEM footprint (frees room for larger batch tiles on v7x).
        out_pad = build(pl.Buffered(1))(*flat_args)
    except Exception:
        # TODO(synk): pipeline_mode=pl.Buffered(1) unsupported on this JAX build;
        # falling back to default double-buffered weight blocks.
        out_pad = build(None)(*flat_args)

    return out_pad[:B, :c_out]


def init_params(key, c_in, c_out, seq_len, layers=(500, 500, 500)):
    """Parameter init matching the module's shapes.

    PyTorch nn.Linear(in, out) stores weight (out, in); we keep the transpose
    (in, out) so the kernel computes x @ W + b == x @ weight.T + bias.
    """
    nfs = [c_in * seq_len] + list(layers) + [c_out]
    params = []
    for i in range(len(nfs) - 1):
        fan_in, fan_out = nfs[i], nfs[i + 1]
        key, kw, kb = jax.random.split(key, 3)
        bound = 1.0 / jnp.sqrt(jnp.float32(fan_in))
        w_t = jax.random.uniform(kw, (fan_in, fan_out), jnp.float32, -bound, bound)
        b = jax.random.uniform(kb, (fan_out,), jnp.float32, -bound, bound)
        params.append((w_t, b))
    return params


def mlp_reference(x, params, *, bf16_matmul=False):
    """Plain-JAX reference of the same forward pass (eval mode)."""
    h = x.reshape(x.shape[0], -1).astype(jnp.float32)
    for w_t, b in params:
        if bf16_matmul:
            y = jnp.dot(h.astype(jnp.bfloat16), w_t.astype(jnp.bfloat16),
                        preferred_element_type=jnp.float32)
        else:
            y = jnp.dot(h, w_t, preferred_element_type=jnp.float32)
        h = jnp.maximum(y + b, 0.0)
    h = h - jnp.max(h, axis=-1, keepdims=True)
    e = jnp.exp(h)
    return e / jnp.sum(e, axis=-1, keepdims=True)


if __name__ == "__main__":
    key = jax.random.PRNGKey(0)

    # Small config matching the module defaults: layers=(500, 500, 500).
    B, c_in, seq_len, c_out = 2, 4, 8, 10
    key, kx, kp = jax.random.split(key, 3)
    x = jax.random.normal(kx, (B, c_in, seq_len), dtype=jnp.float32)
    params = init_params(kp, c_in, c_out, seq_len)

    out = jax.block_until_ready(mlp_forward(x, params))
    ref_bf16 = mlp_reference(x, params, bf16_matmul=True)
    ref_f32 = mlp_reference(x, params, bf16_matmul=False)
    assert out.shape == (B, c_out)
    assert jnp.allclose(jnp.sum(out, axis=-1), 1.0, atol=1e-3)
    assert jnp.allclose(out, ref_bf16, atol=1e-2)
    assert jnp.allclose(out, ref_f32, atol=3e-2)

    # Exercise the multi-tile grid + in-kernel row sub-block + f32-activation path.
    B2 = 48
    key, kx2 = jax.random.split(key)
    x2 = jax.random.normal(kx2, (B2, c_in, seq_len), dtype=jnp.float32)
    out2 = jax.block_until_ready(mlp_forward(x2, params, tile_b=16, sub_b=8))
    ref2 = mlp_reference(x2, params, bf16_matmul=True)
    assert out2.shape == (B2, c_out)
    assert jnp.allclose(jnp.sum(out2, axis=-1), 1.0, atol=1e-3)
    assert jnp.allclose(out2, ref2, atol=1e-2)

    print("KERNEL_OK")
</pallas_src>

<mosaic_0001>
module attributes {stable_mosaic.version = 11 : i64} {
  func.func @_mlp_kernel(%arg0: i32, %arg1: memref<8x32xbf16, #tpu.memory_space<vmem>>, %arg2: memref<32x512xbf16, #tpu.memory_space<vmem>>, %arg3: memref<1x512xf32, #tpu.memory_space<vmem>>, %arg4: memref<512x512xbf16, #tpu.memory_space<vmem>>, %arg5: memref<1x512xf32, #tpu.memory_space<vmem>>, %arg6: memref<512x512xbf16, #tpu.memory_space<vmem>>, %arg7: memref<1x512xf32, #tpu.memory_space<vmem>>, %arg8: memref<512x128xbf16, #tpu.memory_space<vmem>>, %arg9: memref<1x128xf32, #tpu.memory_space<vmem>>, %arg10: memref<8x128xf32, #tpu.memory_space<vmem>>) attributes {dimension_semantics = [#tpu.dimension_semantics<parallel>], iteration_bounds = array<i64: 1>, scalar_prefetch = 0 : i64, scratch_operands = 0 : i64, tpu.core_type = #tpu.core_type<tc>, window_params = [{transform_indices = @transform_0, window_bounds = array<i64: 8, 32>}, {pipeline_mode = #tpu.pipeline_mode<synchronous>, transform_indices = @transform_1, window_bounds = array<i64: 32, 512>}, {pipeline_mode = #tpu.pipeline_mode<synchronous>, transform_indices = @transform_2, window_bounds = array<i64: 1, 512>}, {pipeline_mode = #tpu.pipeline_mode<synchronous>, transform_indices = @transform_3, window_bounds = array<i64: 512, 512>}, {pipeline_mode = #tpu.pipeline_mode<synchronous>, transform_indices = @transform_4, window_bounds = array<i64: 1, 512>}, {pipeline_mode = #tpu.pipeline_mode<synchronous>, transform_indices = @transform_5, window_bounds = array<i64: 512, 512>}, {pipeline_mode = #tpu.pipeline_mode<synchronous>, transform_indices = @transform_6, window_bounds = array<i64: 1, 512>}, {pipeline_mode = #tpu.pipeline_mode<synchronous>, transform_indices = @transform_7, window_bounds = array<i64: 512, 128>}, {pipeline_mode = #tpu.pipeline_mode<synchronous>, transform_indices = @transform_8, window_bounds = array<i64: 1, 128>}, {transform_indices = @transform_9, window_bounds = array<i64: 8, 128>}]} {
    %c0 = arith.constant 0 : index
    %c0_0 = arith.constant 0 : index
    %0 = vector.load %arg1[%c0, %c0_0] : memref<8x32xbf16, #tpu.memory_space<vmem>>, vector<8x32xbf16>
    %c0_1 = arith.constant 0 : index
    %c0_2 = arith.constant 0 : index
    %1 = vector.load %arg2[%c0_1, %c0_2] : memref<32x512xbf16, #tpu.memory_space<vmem>>, vector<32x512xbf16>
    %cst = arith.constant dense<0.000000e+00> : vector<8x512xf32>
    %2 = tpu.matmul %0, %1, %cst {dimension_numbers = #tpu.dot_dimension_numbers<[1], [0], [0], [1], [0, 0, 1, 1], [], []>} : vector<8x32xbf16>, vector<32x512xbf16>, vector<8x512xf32> -> vector<8x512xf32>
    %c0_3 = arith.constant 0 : index
    %c0_4 = arith.constant 0 : index
    %3 = vector.load %arg3[%c0_3, %c0_4] : memref<1x512xf32, #tpu.memory_space<vmem>>, vector<1x512xf32>
    %4 = vector.broadcast %3 : vector<1x512xf32> to vector<8x512xf32>
    %5 = arith.addf %2, %4 : vector<8x512xf32>
    %cst_5 = arith.constant 0.000000e+00 : f32
    %6 = vector.broadcast %cst_5 : f32 to vector<8x512xf32>
    %7 = arith.maximumf %5, %6 : vector<8x512xf32>
    %8 = arith.truncf %7 : vector<8x512xf32> to vector<8x512xbf16>
    %c0_6 = arith.constant 0 : index
    %c0_7 = arith.constant 0 : index
    %9 = vector.load %arg4[%c0_6, %c0_7] : memref<512x512xbf16, #tpu.memory_space<vmem>>, vector<512x512xbf16>
    %cst_8 = arith.constant dense<0.000000e+00> : vector<8x512xf32>
    %10 = tpu.matmul %8, %9, %cst_8 {dimension_numbers = #tpu.dot_dimension_numbers<[1], [0], [0], [1], [0, 0, 1, 1], [], []>} : vector<8x512xbf16>, vector<512x512xbf16>, vector<8x512xf32> -> vector<8x512xf32>
    %c0_9 = arith.constant 0 : index
    %c0_10 = arith.constant 0 : index
    %11 = vector.load %arg5[%c0_9, %c0_10] : memref<1x512xf32, #tpu.memory_space<vmem>>, vector<1x512xf32>
    %12 = vector.broadcast %11 : vector<1x512xf32> to vector<8x512xf32>
    %13 = arith.addf %10, %12 : vector<8x512xf32>
    %cst_11 = arith.constant 0.000000e+00 : f32
    %14 = vector.broadcast %cst_11 : f32 to vector<8x512xf32>
    %15 = arith.maximumf %13, %14 : vector<8x512xf32>
    %16 = arith.truncf %15 : vector<8x512xf32> to vector<8x512xbf16>
    %c0_12 = arith.constant 0 : index
    %c0_13 = arith.constant 0 : index
    %17 = vector.load %arg6[%c0_12, %c0_13] : memref<512x512xbf16, #tpu.memory_space<vmem>>, vector<512x512xbf16>
    %cst_14 = arith.constant dense<0.000000e+00> : vector<8x512xf32>
    %18 = tpu.matmul %16, %17, %cst_14 {dimension_numbers = #tpu.dot_dimension_numbers<[1], [0], [0], [1], [0, 0, 1, 1], [], []>} : vector<8x512xbf16>, vector<512x512xbf16>, vector<8x512xf32> -> vector<8x512xf32>
    %c0_15 = arith.constant 0 : index
    %c0_16 = arith.constant 0 : index
    %19 = vector.load %arg7[%c0_15, %c0_16] : memref<1x512xf32, #tpu.memory_space<vmem>>, vector<1x512xf32>
    %20 = vector.broadcast %19 : vector<1x512xf32> to vector<8x512xf32>
    %21 = arith.addf %18, %20 : vector<8x512xf32>
    %cst_17 = arith.constant 0.000000e+00 : f32
    %22 = vector.broadcast %cst_17 : f32 to vector<8x512xf32>
    %23 = arith.maximumf %21, %22 : vector<8x512xf32>
    %24 = arith.truncf %23 : vector<8x512xf32> to vector<8x512xbf16>
    %c0_18 = arith.constant 0 : index
    %c0_19 = arith.constant 0 : index
    %25 = vector.load %arg8[%c0_18, %c0_19] : memref<512x128xbf16, #tpu.memory_space<vmem>>, vector<512x128xbf16>
    %cst_20 = arith.constant dense<0.000000e+00> : vector<8x128xf32>
    %26 = tpu.matmul %24, %25, %cst_20 {dimension_numbers = #tpu.dot_dimension_numbers<[1], [0], [0], [1], [0, 0, 1, 1], [], []>} : vector<8x512xbf16>, vector<512x128xbf16>, vector<8x128xf32> -> vector<8x128xf32>
    %c0_21 = arith.constant 0 : index
    %c0_22 = arith.constant 0 : index
    %27 = vector.load %arg9[%c0_21, %c0_22] : memref<1x128xf32, #tpu.memory_space<vmem>>, vector<1x128xf32>
    %28 = vector.broadcast %27 : vector<1x128xf32> to vector<8x128xf32>
    %29 = arith.addf %26, %28 : vector<8x128xf32>
    %cst_23 = arith.constant 0.000000e+00 : f32
    %30 = vector.broadcast %cst_23 : f32 to vector<8x128xf32>
    %31 = arith.maximumf %29, %30 : vector<8x128xf32>
    %32 = tpu.iota {dimensions = array<i32: 1>} : vector<8x128xi32>
    %c10_i32 = arith.constant 10 : i32
    %33 = vector.broadcast %c10_i32 : i32 to vector<8x128xi32>
    %34 = arith.cmpi slt, %32, %33 : vector<8x128xi32>
    %cst_24 = arith.constant 0xFF800000 : f32
    %35 = vector.broadcast %cst_24 : f32 to vector<8x128xf32>
    %36 = arith.select %34, %31, %35 : vector<8x128xi1>, vector<8x128xf32>
    %cst_25 = arith.constant dense<0xFF800000> : vector<8xf32>
    %37 = vector.multi_reduction <maximumf>, %36, %cst_25 [1] : vector<8x128xf32> to vector<8xf32>
    %38 = vector.shape_cast %37 : vector<8xf32> to vector<8x1xf32>
    %39 = vector.broadcast %38 : vector<8x1xf32> to vector<8x128xf32>
    %40 = arith.subf %36, %39 : vector<8x128xf32>
    %41 = math.exp %40 : vector<8x128xf32>
    %cst_26 = arith.constant dense<0.000000e+00> : vector<8xf32>
    %42 = vector.multi_reduction <add>, %41, %cst_26 [1] : vector<8x128xf32> to vector<8xf32>
    %43 = vector.shape_cast %42 : vector<8xf32> to vector<8x1xf32>
    %44 = vector.broadcast %43 : vector<8x1xf32> to vector<8x128xf32>
    %45 = arith.divf %41, %44 : vector<8x128xf32>
    %c0_27 = arith.constant 0 : index
    %c0_28 = arith.constant 0 : index
    %46 = vector.load %arg10[%c0_27, %c0_28] : memref<8x128xf32, #tpu.memory_space<vmem>>, vector<8x128xf32>
    tpu.vector_store %arg10[%c0_27, %c0_28], %45 {strides = array<i32>} : memref<8x128xf32, #tpu.memory_space<vmem>>, vector<8x128xf32>,
    return
  }
  func.func @transform_0(%arg0: i32) -> (i32, i32) {
    %c0_i32 = arith.constant 0 : i32
    %c0_i32_0 = arith.constant 0 : i32
    return %arg0, %c0_i32 : i32, i32
  }
  func.func @transform_1(%arg0: i32) -> (i32, i32) {
    %c0_i32 = arith.constant 0 : i32
    %c0_i32_0 = arith.constant 0 : i32
    %c0_i32_1 = arith.constant 0 : i32
    return %c0_i32, %c0_i32_0 : i32, i32
  }
  func.func @transform_2(%arg0: i32) -> (i32, i32) {
    %c0_i32 = arith.constant 0 : i32
    %c0_i32_0 = arith.constant 0 : i32
    %c0_i32_1 = arith.constant 0 : i32
    return %c0_i32, %c0_i32_0 : i32, i32
  }
  func.func @transform_3(%arg0: i32) -> (i32, i32) {
    %c0_i32 = arith.constant 0 : i32
    %c0_i32_0 = arith.constant 0 : i32
    %c0_i32_1 = arith.constant 0 : i32
    return %c0_i32, %c0_i32_0 : i32, i32
  }
  func.func @transform_4(%arg0: i32) -> (i32, i32) {
    %c0_i32 = arith.constant 0 : i32
    %c0_i32_0 = arith.constant 0 : i32
    %c0_i32_1 = arith.constant 0 : i32
    return %c0_i32, %c0_i32_0 : i32, i32
  }
  func.func @transform_5(%arg0: i32) -> (i32, i32) {
    %c0_i32 = arith.constant 0 : i32
    %c0_i32_0 = arith.constant 0 : i32
    %c0_i32_1 = arith.constant 0 : i32
    return %c0_i32, %c0_i32_0 : i32, i32
  }
  func.func @transform_6(%arg0: i32) -> (i32, i32) {
    %c0_i32 = arith.constant 0 : i32
    %c0_i32_0 = arith.constant 0 : i32
    %c0_i32_1 = arith.constant 0 : i32
    return %c0_i32, %c0_i32_0 : i32, i32
  }
  func.func @transform_7(%arg0: i32) -> (i32, i32) {
    %c0_i32 = arith.constant 0 : i32
    %c0_i32_0 = arith.constant 0 : i32
    %c0_i32_1 = arith.constant 0 : i32
    return %c0_i32, %c0_i32_0 : i32, i32
  }
  func.func @transform_8(%arg0: i32) -> (i32, i32) {
    %c0_i32 = arith.constant 0 : i32
    %c0_i32_0 = arith.constant 0 : i32
    %c0_i32_1 = arith.constant 0 : i32
    return %c0_i32, %c0_i32_0 : i32, i32
  }
  func.func @transform_9(%arg0: i32) -> (i32, i32) {
    %c0_i32 = arith.constant 0 : i32
    %c0_i32_0 = arith.constant 0 : i32
    return %arg0, %c0_i32 : i32, i32
  }
}

module attributes {stable_mosaic.version = 11 : i64} {
  func.func @_mlp_kernel(%arg0: i32, %arg1: memref<8x32xbf16, #tpu.memory_space<vmem>>, %arg2: memref<32x512xbf16, #tpu.memory_space<vmem>>, %arg3: memref<1x512xf32, #tpu.memory_space<vmem>>, %arg4: memref<512x512xbf16, #tpu.memory_space<vmem>>, %arg5: memref<1x512xf32, #tpu.memory_space<vmem>>, %arg6: memref<512x512xbf16, #tpu.memory_space<vmem>>, %arg7: memref<1x512xf32, #tpu.memory_space<vmem>>, %arg8: memref<512x128xbf16, #tpu.memory_space<vmem>>, %arg9: memref<1x128xf32, #tpu.memory_space<vmem>>, %arg10: memref<8x128xf32, #tpu.memory_space<vmem>>) attributes {dimension_semantics = [#tpu.dimension_semantics<parallel>], iteration_bounds = array<i64: 1>, scalar_prefetch = 0 : i64, scratch_operands = 0 : i64, tpu.core_type = #tpu.core_type<tc>, window_params = [{transform_indices = @transform_0, window_bounds = array<i64: 8, 32>}, {pipeline_mode = #tpu.pipeline_mode<synchronous>, transform_indices = @transform_1, window_bounds = array<i64: 32, 512>}, {pipeline_mode = #tpu.pipeline_mode<synchronous>, transform_indices = @transform_2, window_bounds = array<i64: 1, 512>}, {pipeline_mode = #tpu.pipeline_mode<synchronous>, transform_indices = @transform_3, window_bounds = array<i64: 512, 512>}, {pipeline_mode = #tpu.pipeline_mode<synchronous>, transform_indices = @transform_4, window_bounds = array<i64: 1, 512>}, {pipeline_mode = #tpu.pipeline_mode<synchronous>, transform_indices = @transform_5, window_bounds = array<i64: 512, 512>}, {pipeline_mode = #tpu.pipeline_mode<synchronous>, transform_indices = @transform_6, window_bounds = array<i64: 1, 512>}, {pipeline_mode = #tpu.pipeline_mode<synchronous>, transform_indices = @transform_7, window_bounds = array<i64: 512, 128>}, {pipeline_mode = #tpu.pipeline_mode<synchronous>, transform_indices = @transform_8, window_bounds = array<i64: 1, 128>}, {transform_indices = @transform_9, window_bounds = array<i64: 8, 128>}]} {
    %c0 = arith.constant 0 : index
    %c0_0 = arith.constant 0 : index
    %0 = vector.load %arg1[%c0, %c0_0] : memref<8x32xbf16, #tpu.memory_space<vmem>>, vector<8x32xbf16>
    %c0_1 = arith.constant 0 : index
    %c0_2 = arith.constant 0 : index
    %1 = vector.load %arg2[%c0_1, %c0_2] : memref<32x512xbf16, #tpu.memory_space<vmem>>, vector<32x512xbf16>
    %cst = arith.constant dense<0.000000e+00> : vector<8x512xf32>
    %2 = tpu.matmul %0, %1, %cst {dimension_numbers = #tpu.dot_dimension_numbers<[1], [0], [0], [1], [0, 0, 1, 1], [], []>} : vector<8x32xbf16>, vector<32x512xbf16>, vector<8x512xf32> -> vector<8x512xf32>
    %c0_3 = arith.constant 0 : index
    %c0_4 = arith.constant 0 : index
    %3 = vector.load %arg3[%c0_3, %c0_4] : memref<1x512xf32, #tpu.memory_space<vmem>>, vector<1x512xf32>
    %4 = vector.broadcast %3 : vector<1x512xf32> to vector<8x512xf32>
    %5 = arith.addf %2, %4 : vector<8x512xf32>
    %cst_5 = arith.constant 0.000000e+00 : f32
    %6 = vector.broadcast %cst_5 : f32 to vector<8x512xf32>
    %7 = arith.maximumf %5, %6 : vector<8x512xf32>
    %8 = arith.truncf %7 : vector<8x512xf32> to vector<8x512xbf16>
    %c0_6 = arith.constant 0 : index
    %c0_7 = arith.constant 0 : index
    %9 = vector.load %arg4[%c0_6, %c0_7] : memref<512x512xbf16, #tpu.memory_space<vmem>>, vector<512x512xbf16>
    %cst_8 = arith.constant dense<0.000000e+00> : vector<8x512xf32>
    %10 = tpu.matmul %8, %9, %cst_8 {dimension_numbers = #tpu.dot_dimension_numbers<[1], [0], [0], [1], [0, 0, 1, 1], [], []>} : vector<8x512xbf16>, vector<512x512xbf16>, vector<8x512xf32> -> vector<8x512xf32>
    %c0_9 = arith.constant 0 : index
    %c0_10 = arith.constant 0 : index
    %11 = vector.load %arg5[%c0_9, %c0_10] : memref<1x512xf32, #tpu.memory_space<vmem>>, vector<1x512xf32>
    %12 = vector.broadcast %11 : vector<1x512xf32> to vector<8x512xf32>
    %13 = arith.addf %10, %12 : vector<8x512xf32>
    %cst_11 = arith.constant 0.000000e+00 : f32
    %14 = vector.broadcast %cst_11 : f32 to vector<8x512xf32>
    %15 = arith.maximumf %13, %14 : vector<8x512xf32>
    %16 = arith.truncf %15 : vector<8x512xf32> to vector<8x512xbf16>
    %c0_12 = arith.constant 0 : index
    %c0_13 = arith.constant 0 : index
    %17 = vector.load %arg6[%c0_12, %c0_13] : memref<512x512xbf16, #tpu.memory_space<vmem>>, vector<512x512xbf16>
    %cst_14 = arith.constant dense<0.000000e+00> : vector<8x512xf32>
    %18 = tpu.matmul %16, %17, %cst_14 {dimension_numbers = #tpu.dot_dimension_numbers<[1], [0], [0], [1], [0, 0, 1, 1], [], []>} : vector<8x512xbf16>, vector<512x512xbf16>, vector<8x512xf32> -> vector<8x512xf32>
    %c0_15 = arith.constant 0 : index
    %c0_16 = arith.constant 0 : index
    %19 = vector.load %arg7[%c0_15, %c0_16] : memref<1x512xf32, #tpu.memory_space<vmem>>, vector<1x512xf32>
    %20 = vector.broadcast %19 : vector<1x512xf32> to vector<8x512xf32>
    %21 = arith.addf %18, %20 : vector<8x512xf32>
    %cst_17 = arith.constant 0.000000e+00 : f32
    %22 = vector.broadcast %cst_17 : f32 to vector<8x512xf32>
    %23 = arith.maximumf %21, %22 : vector<8x512xf32>
    %24 = arith.truncf %23 : vector<8x512xf32> to vector<8x512xbf16>
    %c0_18 = arith.constant 0 : index
    %c0_19 = arith.constant 0 : index
    %25 = vector.load %arg8[%c0_18, %c0_19] : memref<512x128xbf16, #tpu.memory_space<vmem>>, vector<512x128xbf16>
    %cst_20 = arith.constant dense<0.000000e+00> : vector<8x128xf32>
    %26 = tpu.matmul %24, %25, %cst_20 {dimension_numbers = #tpu.dot_dimension_numbers<[1], [0], [0], [1], [0, 0, 1, 1], [], []>} : vector<8x512xbf16>, vector<512x128xbf16>, vector<8x128xf32> -> vector<8x128xf32>
    %c0_21 = arith.constant 0 : index
    %c0_22 = arith.constant 0 : index
    %27 = vector.load %arg9[%c0_21, %c0_22] : memref<1x128xf32, #tpu.memory_space<vmem>>, vector<1x128xf32>
    %28 = vector.broadcast %27 : vector<1x128xf32> to vector<8x128xf32>
    %29 = arith.addf %26, %28 : vector<8x128xf32>
    %cst_23 = arith.constant 0.000000e+00 : f32
    %30 = vector.broadcast %cst_23 : f32 to vector<8x128xf32>
    %31 = arith.maximumf %29, %30 : vector<8x128xf32>
    %32 = tpu.iota {dimensions = array<i32: 1>} : vector<8x128xi32>
    %c10_i32 = arith.constant 10 : i32
    %33 = vector.broadcast %c10_i32 : i32 to vector<8x128xi32>
    %34 = arith.cmpi slt, %32, %33 : vector<8x128xi32>
    %cst_24 = arith.constant 0xFF800000 : f32
    %35 = vector.broadcast %cst_24 : f32 to vector<8x128xf32>
    %36 = arith.select %34, %31, %35 : vector<8x128xi1>, vector<8x128xf32>
    %cst_25 = arith.constant dense<0xFF800000> : vector<8xf32>
    %37 = vector.multi_reduction <maximumf>, %36, %cst_25 [1] : vector<8x128xf32> to vector<8xf32>
    %38 = vector.shape_cast %37 : vector<8xf32> to vector<8x1xf32>
    %39 = vector.broadcast %38 : vector<8x1xf32> to vector<8x128xf32>
    %40 = arith.subf %36, %39 : vector<8x128xf32>
    %41 = math.exp %40 : vector<8x128xf32>
    %cst_26 = arith.constant dense<0.000000e+00> : vector<8xf32>
    %42 = vector.multi_reduction <add>, %41, %cst_26 [1] : vector<8x128xf32> to vector<8xf32>
    %43 = vector.shape_cast %42 : vector<8xf32> to vector<8x1xf32>
    %44 = vector.broadcast %43 : vector<8x1xf32> to vector<8x128xf32>
    %45 = arith.divf %41, %44 : vector<8x128xf32>
    %c0_27 = arith.constant 0 : index
    %c0_28 = arith.constant 0 : index
    %46 = vector.load %arg10[%c0_27, %c0_28] : memref<8x128xf32, #tpu.memory_space<vmem>>, vector<8x128xf32>
    tpu.vector_store %arg10[%c0_27, %c0_28], %45 {strides = array<i32>} : memref<8x128xf32, #tpu.memory_space<vmem>>, vector<8x128xf32>,
    return
  }
  func.func @transform_0(%arg0: i32) -> (i32, i32) {
    %c0_i32 = arith.constant 0 : i32
    %c0_i32_0 = arith.constant 0 : i32
    return %arg0, %c0_i32 : i32, i32
  }
  func.func @transform_1(%arg0: i32) -> (i32, i32) {
    %c0_i32 = arith.constant 0 : i32
    %c0_i32_0 = arith.constant 0 : i32
    %c0_i32_1 = arith.constant 0 : i32
    return %c0_i32, %c0_i32_0 : i32, i32
  }
  func.func @transform_2(%arg0: i32) -> (i32, i32) {
    %c0_i32 = arith.constant 0 : i32
    %c0_i32_0 = arith.constant 0 : i32
    %c0_i32_1 = arith.constant 0 : i32
    return %c0_i32, %c0_i32_0 : i32, i32
  }
  func.func @transform_3(%arg0: i32) -> (i32, i32) {
    %c0_i32 = arith.constant 0 : i32
    %c0_i32_0 = arith.constant 0 : i32
    %c0_i32_1 = arith.constant 0 : i32
    return %c0_i32, %c0_i32_0 : i32, i32
  }
  func.func @transform_4(%arg0: i32) -> (i32, i32) {
    %c0_i32 = arith.constant 0 : i32
    %c0_i32_0 = arith.constant 0 : i32
    %c0_i32_1 = arith.constant 0 : i32
    return %c0_i32, %c0_i32_0 : i32, i32
  }
  func.func @transform_5(%arg0: i32) -> (i32, i32) {
    %c0_i32 = arith.constant 0 : i32
    %c0_i32_0 = arith.constant 0 : i32
    %c0_i32_1 = arith.constant 0 : i32
    return %c0_i32, %c0_i32_0 : i32, i32
  }
  func.func @transform_6(%arg0: i32) -> (i32, i32) {
    %c0_i32 = arith.constant 0 : i32
    %c0_i32_0 = arith.constant 0 : i32
    %c0_i32_1 = arith.constant 0 : i32
    return %c0_i32, %c0_i32_0 : i32, i32
  }
  func.func @transform_7(%arg0: i32) -> (i32, i32) {
    %c0_i32 = arith.constant 0 : i32
    %c0_i32_0 = arith.constant 0 : i32
    %c0_i32_1 = arith.constant 0 : i32
    return %c0_i32, %c0_i32_0 : i32, i32
  }
  func.func @transform_8(%arg0: i32) -> (i32, i32) {
    %c0_i32 = arith.constant 0 : i32
    %c0_i32_0 = arith.constant 0 : i32
    %c0_i32_1 = arith.constant 0 : i32
    return %c0_i32, %c0_i32_0 : i32, i32
  }
  func.func @transform_9(%arg0: i32) -> (i32, i32) {
    %c0_i32 = arith.constant 0 : i32
    %c0_i32_0 = arith.constant 0 : i32
    return %arg0, %c0_i32 : i32, i32
  }
}

</mosaic_0001>

<bundles_post_ra>
// kernel: tpu_custom_call.1
= control target key start
LH: loop header
LB: loop body
LE: loop exit
PB: predicated region body
PF: predicated region fallthrough
CT: control target
= control target key end

     0   :  { %14 = vsyncpa [#allocation3], 0  ;;  %s3659_s0 = inlined_call_operand.hbm [shape: bf16[8,32], index: 0, kind: input, shape index: {}]   ;;  %s3660_s1 = inlined_call_operand.hbm [shape: bf16[32,512], index: 1, kind: input, shape index: {}]   ;;  %s3661_s2 = inlined_call_operand.hbm [shape: f32[1,512], index: 2, kind: input, shape index: {}]   ;;  %s3662_s3 = inlined_call_operand.hbm [shape: bf16[512,512], index: 3, kind: input, shape index: {}]   ;;  %s3663_s4 = inlined_call_operand.vmem [shape: f32[1,512], index: 4, kind: input, shape index: {}]   ;;  %s3664_s5 = inlined_call_operand.hbm [shape: bf16[512,512], index: 5, kind: input, shape index: {}]   ;;  %s3665_s6 = inlined_call_operand.vmem [shape: f32[1,512], index: 6, kind: input, shape index: {}]   ;;  %s3666_s7 = inlined_call_operand.hbm [shape: bf16[512,128], index: 7, kind: input, shape index: {}]   ;;  %s3667_s8 = inlined_call_operand.vmem [shape: f32[1,128], index: 8, kind: input, shape index: {}]   ;;  %s3668_s9 = inlined_call_operand.hbm [shape: f32[8,128], index: 9, kind: output, shape index: {}]  }
   0x1   :  { %15 = vsyncpa [#allocation6], 0 }
   0x2   :  { %16 = vsyncpa [#allocation9], 0 }
   0x3   :  { %17 = vsyncpa [#allocation12], 0 }
   0x4   :  { %18 = vsyncpa [#allocation4], 0  ;;  %s3514_s30 = smov [#allocation5]  }
   0x5   :  { %s34_s10 = sshll.u32 %s3514_s30, 4  ;;  %s35_s10 = int_to_ptr.vmem [resolvable:$true] %s34_s10 }
   0x6   :  { %s3372_s11 = scalar_lea.vmem %s35_s10, 1024  ;;  %p3377_p1 = scmp.lt.s32.totalorder %s35_s10, %s35_s10 }
   0x7   :  { %p3373_p0 = scmp.ne.s32.totalorder %s35_s10, %s3372_s11  ;;  %p3378_p2 = scmp.lt.s32.totalorder %s3372_s11, %s3372_s11 }
   0x9   :  { %p3379_p3 = por %p3378_p2, %p3377_p1 }
   0xb   :  { %p3380_p4 = pnand %p3379_p3, %p3373_p0 }
   0xd   :  { %3383 = shalt.err (!%p3380_p4)
}
   0xe   :  { %s3515_s12 = smov 256   ;;  %s3516_s13 = smov 16  }
   0xf   :  { %40 = dma.hbm_to_vmem [thread:$0]  %s3660_s1, 1024, %s35_s10, [#allocation6], %s3515_s12, %s3515_s12, %s3516_s13  }
  0x10   :  { %s3517_s16 = smov [#allocation8]   ;;  %s3518_s18 = smov [#allocation2]  }
  0x11   :  { %s56_s17 = sshll.u32 %s3517_s16, 4  ;;  %s25_s19 = sshll.u32 %s3518_s18, 4  ;;  %s57_s17 = int_to_ptr.vmem [resolvable:$true] %s56_s17  ;;  %s26_s19 = int_to_ptr.vmem [resolvable:$true] %s25_s19 }
  0x12   :  { %s3392_s20 = scalar_lea.vmem %s57_s17, 16384  ;;  %p3397_p6 = scmp.lt.s32.totalorder %s57_s17, %s57_s17 }
  0x13   :  { %p3393_p5 = scmp.ne.s32.totalorder %s57_s17, %s3392_s20  ;;  %p3398_p7 = scmp.lt.s32.totalorder %s3392_s20, %s3392_s20 }
  0x15   :  { %p3399_p8 = por %p3398_p7, %p3397_p6 }
  0x17   :  { %p3400_p9 = pnand %p3399_p8, %p3393_p5 }
  0x19   :  { %3403 = shalt.err (!%p3400_p9)
}
  0x1a   :  { %62 = dma.hbm_to_vmem [thread:$0]  %s3662_s3, 16384, %s57_s17, [#allocation9], %s3515_s12, %s3515_s12, %s3516_s13  }
  0x1b   :  { %s3412_s1 = scalar_lea.vmem %s26_s19, 64  ;;  %p3417_p11 = scmp.lt.s32.totalorder %s26_s19, %s26_s19 }
  0x1c   :  { %p3413_p10 = scmp.ne.s32.totalorder %s26_s19, %s3412_s1  ;;  %p3418_p12 = scmp.lt.s32.totalorder %s3412_s1, %s3412_s1 }
  0x1e   :  { %p3419_p13 = por %p3418_p12, %p3417_p11 }
  0x20   :  { %p3420_p0 = pnand %p3419_p13, %p3413_p10 }
  0x22   :  { %3423 = shalt.err (!%p3420_p0)
}
  0x23   :  { %28 = dma.hbm_to_vmem [thread:$0]  %s3659_s0, 64, %s26_s19, [#allocation3]  }
  0x24   :  { %s3519_s25 = smov [#allocation7]   ;;  %s3520_s27 = smov [#allocation10]  }
  0x25   :  { %s47_s26 = sshll.u32 %s3519_s25, 4  ;;  %s70_s28 = sshll.u32 %s3520_s27, 4  ;;  %s48_s26 = int_to_ptr.vmem [resolvable:$true] %s47_s26  ;;  %s71_s28 = int_to_ptr.vmem [resolvable:$true] %s70_s28 }
  0x26   :  { %s3432_s29 = scalar_lea.vmem %s48_s26, 64  ;;  %p3437_p2 = scmp.lt.s32.totalorder %s48_s26, %s48_s26 }
  0x27   :  { %p3433_p1 = scmp.ne.s32.totalorder %s48_s26, %s3432_s29  ;;  %p3438_p3 = scmp.lt.s32.totalorder %s3432_s29, %s3432_s29 }
  0x29   :  { %p3439_p4 = por %p3438_p3, %p3437_p2 }
  0x2b   :  { %p3440_p5 = pnand %p3439_p4, %p3433_p1 }
  0x2d   :  { %3443 = shalt.err (!%p3440_p5)
}
  0x2e   :  { %50 = dma.hbm_to_vmem [thread:$0]  %s3661_s2, 64, %s48_s26, [#allocation6]  }
  0x2f   :  { %s3452_s10 = scalar_lea.vmem %s71_s28, 16384  ;;  %p3457_p7 = scmp.lt.s32.totalorder %s71_s28, %s71_s28 }
  0x30   :  { %p3453_p6 = scmp.ne.s32.totalorder %s71_s28, %s3452_s10  ;;  %p3458_p8 = scmp.lt.s32.totalorder %s3452_s10, %s3452_s10 }
  0x32   :  { %p3459_p9 = por %p3458_p8, %p3457_p7 }
  0x34   :  { %p3460_p10 = pnand %p3459_p9, %p3453_p6 }
  0x36   :  { %3463 = shalt.err (!%p3460_p10)
}
  0x37   :  { %76 = dma.hbm_to_vmem [thread:$0]  %s3664_s5, 16384, %s71_s28, [#allocation9], %s3515_s12, %s3515_s12, %s3516_s13  }
  0x38   :  { %s3521_s14 = smov [#allocation11]  }
  0x39   :  { %s84_s15 = sshll.u32 %s3521_s14, 4  ;;  %s85_s15 = int_to_ptr.vmem [resolvable:$true] %s84_s15 }
  0x3a   :  { %s3472_s16 = scalar_lea.vmem %s85_s15, 4096  ;;  %p3477_p12 = scmp.lt.s32.totalorder %s85_s15, %s85_s15 }
  0x3b   :  { %p3473_p11 = scmp.ne.s32.totalorder %s85_s15, %s3472_s16  ;;  %p3478_p13 = scmp.lt.s32.totalorder %s3472_s16, %s3472_s16 }
  0x3d   :  { %p3479_p0 = por %p3478_p13, %p3477_p12 }
  0x3f   :  { %p3480_p1 = pnand %p3479_p0, %p3473_p11 }
  0x41   :  { %3483 = shalt.err (!%p3480_p1)
}
  0x42   :  { %s3522_s2 = smov 64   ;;  %s3523_s17 = smov 4  }
  0x43   :  { %90 = dma.hbm_to_vmem [thread:$0]  %s3666_s7, 4096, %s85_s15, [#allocation12], %s3522_s2, %s3522_s2, %s3523_s17  }
  0x44   :  { %3504 = dma.done.wait [#allocation3], 64  }
  0x45   :  { %3505 = vsyncadd [#allocation3], 4294967232 }
  0x46   :  { %3506 = dma.done.wait [#allocation6], 1088  }
  0x47   :  { %3507 = vsyncadd [#allocation6], 4294966208 }
  0x48   :  { %3508 = dma.done.wait [#allocation9], 32768  }
  0x49   :  { %3509 = vsyncadd [#allocation9], 4294934528 }
  0x4a   :  { %3510 = dma.done.wait [#allocation12], 4096  }
  0x4b   :  { %3511 = vsyncadd [#allocation12], 4294963200  ;;  %v3524_v0 = vmov 0   ;;  %v2932_v1 = vld [vmem:[#allocation5 + $0x24] ss:$16 sps:$4 sm:$0xff]   ;;  %vm183_vm0 = vcmask 261120  }
  0x4c   :  { %219 = vmatprep.mubr.bf16.mxu0 %v3524_v0  ;;  %260 = vmatprep.mubr.bf16.mxu1 %v3524_v0  ;;  %v2934_v2 = vld [vmem:[#allocation5 + $0x2c] ss:$16 sps:$4 sm:$0xff]   ;;  %v2936_v3 = vld [vmem:[#allocation5 + $0x20] ss:$16 sps:$4 sm:$0xff]   ;;  %v2937_v4 = vld [vmem:[#allocation5 + $0x28] ss:$16 sps:$4 sm:$0xff]  }
  0x4d   :  { %199 = vmatprep.subr.bf16.mxu0 %v2932_v1  ;;  %240 = vmatprep.subr.bf16.mxu1 %v2934_v2  ;;  %v2938_v5 = vld [vmem:[#allocation5 + $0x4] ss:$16 sps:$4 sm:$0xff]   ;;  %v2940_v6 = vld [vmem:[#allocation5 + $0xc] ss:$16 sps:$4 sm:$0xff]   ;;  %v2942_v7 = vld [vmem:[#allocation5] ss:$16 sps:$4 sm:$0xff]  }
  0x4e   :  { %200 = vmatpush1.bf16.msra.mxu0 %v2936_v3  ;;  %241 = vmatpush1.bf16.msra.mxu1 %v2937_v4  ;;  %v2943_v8 = vld [vmem:[#allocation5 + $0x8] ss:$16 sps:$4 sm:$0xff]   ;;  %v112_v9 = vld [vmem:[#allocation2] sm:$0xf]  ;;  %v2944_v10 = vld [vmem:[#allocation8 + $0xe0] ss:$16 sps:$4 sm:$0xff]  }
  0x4f   :  { %201 = vmatprep.subr.bf16.mxu0 %v2938_v5  ;;  %242 = vmatprep.subr.bf16.mxu1 %v2940_v6  ;;  %v2946_v11 = vld [vmem:[#allocation8 + $0xe4] ss:$16 sps:$4 sm:$0xff]   ;;  %v2947_v12 = vld [vmem:[#allocation8 + $0x2e0] ss:$16 sps:$4 sm:$0xff]  }
  0x50   :  { %v2949_v13 = vld [vmem:[#allocation8 + $0x2e4] ss:$16 sps:$4 sm:$0xff]   ;;  %v2950_v16 = vld [vmem:[#allocation8 + $0xc0] ss:$16 sps:$4 sm:$0xff]  }
  0x51   :  { %v2952_v14 = vld [vmem:[#allocation8 + $0xc4] ss:$16 sps:$4 sm:$0xff]   ;;  %v2953_v17 = vld [vmem:[#allocation8 + $0x2c0] ss:$16 sps:$4 sm:$0xff]  }
  0x52   :  { %202 = vmatpush1.bf16.msra.mxu0 %v2942_v7  ;;  %243 = vmatpush1.bf16.msra.mxu1 %v2943_v8  ;;  %v2955_v15 = vld [vmem:[#allocation8 + $0x2c4] ss:$16 sps:$4 sm:$0xff]   ;;  %v2956_v20 = vld [vmem:[#allocation8 + $0xa0] ss:$16 sps:$4 sm:$0xff]  }
  0x53   :  { %1067 = vmatprep.subr.bf16.mxu0 %v2946_v11  ;;  %1108 = vmatprep.subr.bf16.mxu1 %v2949_v13  ;;  %v2958_v18 = vld [vmem:[#allocation8 + $0xa4] ss:$16 sps:$4 sm:$0xff]   ;;  %v2959_v21 = vld [vmem:[#allocation8 + $0x2a0] ss:$16 sps:$4 sm:$0xff]   ;;  %v3045_v11 = vld [vmem:[#allocation8 + $0x2ec] ss:$16 sps:$4 sm:$0xff]  }
  0x54   :  { %v2961_v19 = vld [vmem:[#allocation8 + $0x2a4] ss:$16 sps:$4 sm:$0xff]   ;;  %v2962_v24 = vld [vmem:[#allocation8 + $0x80] ss:$16 sps:$4 sm:$0xff]  }
  0x55   :  { %2585 = vmatmul.mubr.msk.bf16.vlgmr.msra.gmra.mxu0 %vm183_vm0, %v112_v9  ;;  %2586 = vmatmul.mubr.msk.bf16.vlgmr.msra.gmra.mxu1 %vm183_vm0, %v112_v9  ;;  %v2964_v22 = vld [vmem:[#allocation8 + $0x84] ss:$16 sps:$4 sm:$0xff]   ;;  %v2965_v25 = vld [vmem:[#allocation8 + $0x280] ss:$16 sps:$4 sm:$0xff]  }
  0x56   :  { %1068 = vmatpush1.bf16.msra.mxu0 %v2944_v10  ;;  %1109 = vmatpush1.bf16.msra.mxu1 %v2947_v12  ;;  %v2967_v23 = vld [vmem:[#allocation8 + $0x284] ss:$16 sps:$4 sm:$0xff]   ;;  %v2968_v28 = vld [vmem:[#allocation8 + $0x60] ss:$16 sps:$4 sm:$0xff]   ;;  %v3042_v10 = vld [vmem:[#allocation8 + $0xec] ss:$16 sps:$4 sm:$0xff]   ;;  %v123_v12 = vlaneseq }
  0x57   :  { %1069 = vmatprep.subr.bf16.mxu0 %v2952_v14  ;;  %1110 = vmatprep.subr.bf16.mxu1 %v2955_v15  ;;  %v2970_v26 = vld [vmem:[#allocation8 + $0x64] ss:$16 sps:$4 sm:$0xff]   ;;  %v2971_v29 = vld [vmem:[#allocation8 + $0x260] ss:$16 sps:$4 sm:$0xff]  }
  0x58   :  { %v2973_v27 = vld [vmem:[#allocation8 + $0x264] ss:$16 sps:$4 sm:$0xff]   ;;  %v2974_v32 = vld [vmem:[#allocation8 + $0x40] ss:$16 sps:$4 sm:$0xff]   ;;  %v124_v13 = vshrl.u32 %v123_v12, 7 }
  0x59   :  { %v2976_v30 = vld [vmem:[#allocation8 + $0x44] ss:$16 sps:$4 sm:$0xff]   ;;  %v2977_v33 = vld [vmem:[#allocation8 + $0x240] ss:$16 sps:$4 sm:$0xff]  }
  0x5a   :  { %1070 = vmatpush1.bf16.msra.mxu0 %v2950_v16  ;;  %1111 = vmatpush1.bf16.msra.mxu1 %v2953_v17  ;;  %v2979_v31 = vld [vmem:[#allocation8 + $0x244] ss:$16 sps:$4 sm:$0xff]   ;;  %v2980_v36 = vld [vmem:[#allocation8 + $0x20] ss:$16 sps:$4 sm:$0xff]   ;;  %v3604_v14 = vsub.s32 0, %v124_v13  ;;  %v3606_v15 = vsub.s32 2, %v124_v13 }
  0x5b   :  { %1071 = vmatprep.subr.bf16.mxu0 %v2958_v18  ;;  %1112 = vmatprep.subr.bf16.mxu1 %v2961_v19  ;;  %v2982_v34 = vld [vmem:[#allocation8 + $0x24] ss:$16 sps:$4 sm:$0xff]   ;;  %v2983_v37 = vld [vmem:[#allocation8 + $0x220] ss:$16 sps:$4 sm:$0xff]   ;;  %v121_v16 = vld [vmem:[#allocation7] sm:$0xf] }
  0x5c   :  { %v2985_v35 = vld [vmem:[#allocation8 + $0x224] ss:$16 sps:$4 sm:$0xff]   ;;  %v2986_v40 = vld [vmem:[#allocation8] ss:$16 sps:$4 sm:$0xff]   ;;  %v3608_v17 = vsub.s32 1, %v124_v13  ;;  %v3610_v18 = vsub.s32 3, %v124_v13  ;;  %v126_v19 = vrot.slane %v121_v16, %v3604_v14 }
  0x5d   :  { %v2988_v38 = vld [vmem:[#allocation8 + $0x4] ss:$16 sps:$4 sm:$0xff]   ;;  %v2989_v41 = vld [vmem:[#allocation8 + $0x200] ss:$16 sps:$4 sm:$0xff]   ;;  %v3091_v13 = vld [vmem:[#allocation8 + $0x3e8] ss:$16 sps:$4 sm:$0xff]  }
  0x5e   :  { %1072 = vmatpush1.bf16.msra.mxu0 %v2956_v20  ;;  %1113 = vmatpush1.bf16.msra.mxu1 %v2959_v21  ;;  %v2991_v39 = vld [vmem:[#allocation8 + $0x204] ss:$16 sps:$4 sm:$0xff]   ;;  %v2992_v44 = vld [vmem:[#allocation8 + $0x1e0] ss:$16 sps:$4 sm:$0xff]   ;;  %v134_v20 = vrot.slane %v121_v16, %v3606_v15  ;;  %v130_v21 = vrot.slane %v121_v16, %v3608_v17 }
  0x5f   :  { %1073 = vmatprep.subr.bf16.mxu0 %v2964_v22  ;;  %1114 = vmatprep.subr.bf16.mxu1 %v2967_v23  ;;  %v2994_v42 = vld [vmem:[#allocation8 + $0x1e4] ss:$16 sps:$4 sm:$0xff]   ;;  %v2995_v45 = vld [vmem:[#allocation8 + $0x3e0] ss:$16 sps:$4 sm:$0xff]   ;;  %v138_v22 = vrot.slane %v121_v16, %v3610_v18  ;;  %v3096_v16 = vld [vmem:[#allocation8 + $0x1cc] ss:$16 sps:$4 sm:$0xff]  }
  0x60   :  { %v2997_v43 = vld [vmem:[#allocation8 + $0x3e4] ss:$16 sps:$4 sm:$0xff]   ;;  %v2998_v48 = vld [vmem:[#allocation8 + $0x1c0] ss:$16 sps:$4 sm:$0xff]  }
  0x61   :  { %v3000_v46 = vld [vmem:[#allocation8 + $0x1c4] ss:$16 sps:$4 sm:$0xff]   ;;  %v3001_v49 = vld [vmem:[#allocation8 + $0x3c0] ss:$16 sps:$4 sm:$0xff]  }
  0x62   :  { %1074 = vmatpush1.bf16.msra.mxu0 %v2962_v24  ;;  %1115 = vmatpush1.bf16.msra.mxu1 %v2965_v25  ;;  %v3003_v47 = vld [vmem:[#allocation8 + $0x3c4] ss:$16 sps:$4 sm:$0xff]   ;;  %v3004_v52 = vld [vmem:[#allocation8 + $0x1a0] ss:$16 sps:$4 sm:$0xff]  }
  0x63   :  { %1075 = vmatprep.subr.bf16.mxu0 %v2970_v26  ;;  %1116 = vmatprep.subr.bf16.mxu1 %v2973_v27  ;;  %v3006_v50 = vld [vmem:[#allocation8 + $0x1a4] ss:$16 sps:$4 sm:$0xff]   ;;  %v3007_v53 = vld [vmem:[#allocation8 + $0x3a0] ss:$16 sps:$4 sm:$0xff]  }
  0x64   :  { %v3009_v51 = vld [vmem:[#allocation8 + $0x3a4] ss:$16 sps:$4 sm:$0xff]   ;;  %v3010_v56 = vld [vmem:[#allocation8 + $0x180] ss:$16 sps:$4 sm:$0xff]  }
  0x65   :  { %v3012_v54 = vld [vmem:[#allocation8 + $0x184] ss:$16 sps:$4 sm:$0xff]   ;;  %v3013_v57 = vld [vmem:[#allocation8 + $0x380] ss:$16 sps:$4 sm:$0xff]  }
  0x66   :  { %1076 = vmatpush1.bf16.msra.mxu0 %v2968_v28  ;;  %1117 = vmatpush1.bf16.msra.mxu1 %v2971_v29  ;;  %v3015_v55 = vld [vmem:[#allocation8 + $0x384] ss:$16 sps:$4 sm:$0xff]   ;;  %v3016_v60 = vld [vmem:[#allocation8 + $0x160] ss:$16 sps:$4 sm:$0xff]  }
  0x67   :  { %1077 = vmatprep.subr.bf16.mxu0 %v2976_v30  ;;  %1118 = vmatprep.subr.bf16.mxu1 %v2979_v31  ;;  %v3018_v58 = vld [vmem:[#allocation8 + $0x164] ss:$16 sps:$4 sm:$0xff]   ;;  %v3019_v61 = vld [vmem:[#allocation8 + $0x360] ss:$16 sps:$4 sm:$0xff]  }
  0x68   :  { %v3021_v59 = vld [vmem:[#allocation8 + $0x364] ss:$16 sps:$4 sm:$0xff]   ;;  %v3022_v0 = vld [vmem:[#allocation8 + $0x140] ss:$16 sps:$4 sm:$0xff]  }
  0x69   :  { %v3024_v62 = vld [vmem:[#allocation8 + $0x144] ss:$16 sps:$4 sm:$0xff]   ;;  %v3025_v1 = vld [vmem:[#allocation8 + $0x340] ss:$16 sps:$4 sm:$0xff]  }
  0x6a   :  { %1078 = vmatpush1.bf16.msra.mxu0 %v2974_v32  ;;  %1119 = vmatpush1.bf16.msra.mxu1 %v2977_v33  ;;  %v3027_v63 = vld [vmem:[#allocation8 + $0x344] ss:$16 sps:$4 sm:$0xff]   ;;  %v3028_v4 = vld [vmem:[#allocation8 + $0x120] ss:$16 sps:$4 sm:$0xff]  }
  0x6b   :  { %1079 = vmatprep.subr.bf16.mxu0 %v2982_v34  ;;  %1120 = vmatprep.subr.bf16.mxu1 %v2985_v35  ;;  %v3030_v2 = vld [vmem:[#allocation8 + $0x124] ss:$16 sps:$4 sm:$0xff]   ;;  %v3031_v5 = vld [vmem:[#allocation8 + $0x320] ss:$16 sps:$4 sm:$0xff]  }
  0x6c   :  { %v3033_v3 = vld [vmem:[#allocation8 + $0x324] ss:$16 sps:$4 sm:$0xff]   ;;  %v3034_v8 = vld [vmem:[#allocation8 + $0x100] ss:$16 sps:$4 sm:$0xff]  }
  0x6d   :  { %v3036_v6 = vld [vmem:[#allocation8 + $0x104] ss:$16 sps:$4 sm:$0xff]   ;;  %v3037_v9 = vld [vmem:[#allocation8 + $0x300] ss:$16 sps:$4 sm:$0xff]  }
  0x6e   :  { %1080 = vmatpush1.bf16.msra.mxu0 %v2980_v36  ;;  %1121 = vmatpush1.bf16.msra.mxu1 %v2983_v37  ;;  %v3039_v7 = vld [vmem:[#allocation8 + $0x304] ss:$16 sps:$4 sm:$0xff]  }
  0x6f   :  { %1081 = vmatprep.subr.bf16.mxu0 %v2988_v38  ;;  %1122 = vmatprep.subr.bf16.mxu1 %v2991_v39 }
  0x72   :  { %1082 = vmatpush1.bf16.msra.mxu0 %v2986_v40  ;;  %1123 = vmatpush1.bf16.msra.mxu1 %v2989_v41 }
  0x73   :  { %1083 = vmatprep.subr.bf16.mxu0 %v2994_v42  ;;  %1124 = vmatprep.subr.bf16.mxu1 %v2997_v43  ;;  %v3040_v42 = vld [vmem:[#allocation8 + $0xe8] ss:$16 sps:$4 sm:$0xff]  }
  0x74   :  { %v3043_v43 = vld [vmem:[#allocation8 + $0x2e8] ss:$16 sps:$4 sm:$0xff]  }
  0x76   :  { %1084 = vmatpush2.bf16.msra.mxu0 %v2992_v44  ;;  %1125 = vmatpush2.bf16.msra.mxu1 %v2995_v45  ;;  %v3048_v45 = vld [vmem:[#allocation8 + $0xcc] ss:$16 sps:$4 sm:$0xff]  }
  0x77   :  { %1085 = vmatprep.subr.bf16.mxu0 %v3000_v46  ;;  %1126 = vmatprep.subr.bf16.mxu1 %v3003_v47  ;;  %v3051_v46 = vld [vmem:[#allocation8 + $0x2cc] ss:$16 sps:$4 sm:$0xff]   ;;  %v3046_v47 = vld [vmem:[#allocation8 + $0xc8] ss:$16 sps:$4 sm:$0xff]  }
  0x7a   :  { %1086 = vmatpush2.bf16.msra.mxu0 %v2998_v48  ;;  %1127 = vmatpush2.bf16.msra.mxu1 %v3001_v49  ;;  %v3049_v48 = vld [vmem:[#allocation8 + $0x2c8] ss:$16 sps:$4 sm:$0xff]   ;;  %v3054_v49 = vld [vmem:[#allocation8 + $0xac] ss:$16 sps:$4 sm:$0xff]  }
  0x7b   :  { %1087 = vmatprep.subr.bf16.mxu0 %v3006_v50  ;;  %1128 = vmatprep.subr.bf16.mxu1 %v3009_v51  ;;  %v3057_v50 = vld [vmem:[#allocation8 + $0x2ac] ss:$16 sps:$4 sm:$0xff]   ;;  %v3052_v51 = vld [vmem:[#allocation8 + $0xa8] ss:$16 sps:$4 sm:$0xff]  }
  0x7e   :  { %1088 = vmatpush2.bf16.msra.mxu0 %v3004_v52  ;;  %1129 = vmatpush2.bf16.msra.mxu1 %v3007_v53  ;;  %v3055_v52 = vld [vmem:[#allocation8 + $0x2a8] ss:$16 sps:$4 sm:$0xff]   ;;  %v3060_v53 = vld [vmem:[#allocation8 + $0x8c] ss:$16 sps:$4 sm:$0xff]  }
  0x7f   :  { %1089 = vmatprep.subr.bf16.mxu0 %v3012_v54  ;;  %1130 = vmatprep.subr.bf16.mxu1 %v3015_v55  ;;  %v3063_v54 = vld [vmem:[#allocation8 + $0x28c] ss:$16 sps:$4 sm:$0xff]   ;;  %v3058_v55 = vld [vmem:[#allocation8 + $0x88] ss:$16 sps:$4 sm:$0xff]  }
  0x82   :  { %1090 = vmatpush2.bf16.msra.mxu0 %v3010_v56  ;;  %1131 = vmatpush2.bf16.msra.mxu1 %v3013_v57  ;;  %v3061_v56 = vld [vmem:[#allocation8 + $0x288] ss:$16 sps:$4 sm:$0xff]   ;;  %v3066_v57 = vld [vmem:[#allocation8 + $0x6c] ss:$16 sps:$4 sm:$0xff]  }
  0x83   :  { %1091 = vmatprep.subr.bf16.mxu0 %v3018_v58  ;;  %1132 = vmatprep.subr.bf16.mxu1 %v3021_v59  ;;  %v3069_v58 = vld [vmem:[#allocation8 + $0x26c] ss:$16 sps:$4 sm:$0xff]   ;;  %v3064_v59 = vld [vmem:[#allocation8 + $0x68] ss:$16 sps:$4 sm:$0xff]  }
  0x86   :  { %1092 = vmatpush2.bf16.msra.mxu0 %v3016_v60  ;;  %1133 = vmatpush2.bf16.msra.mxu1 %v3019_v61  ;;  %v3067_v60 = vld [vmem:[#allocation8 + $0x268] ss:$16 sps:$4 sm:$0xff]   ;;  %v3072_v61 = vld [vmem:[#allocation8 + $0x4c] ss:$16 sps:$4 sm:$0xff]  }
  0x87   :  { %1093 = vmatprep.subr.bf16.mxu0 %v3024_v62  ;;  %1134 = vmatprep.subr.bf16.mxu1 %v3027_v63  ;;  %v3075_v62 = vld [vmem:[#allocation8 + $0x24c] ss:$16 sps:$4 sm:$0xff]   ;;  %v3070_v63 = vld [vmem:[#allocation8 + $0x48] ss:$16 sps:$4 sm:$0xff]  }
  0x8a   :  { %1094 = vmatpush2.bf16.msra.mxu0 %v3022_v0  ;;  %1135 = vmatpush2.bf16.msra.mxu1 %v3025_v1  ;;  %v3073_v0 = vld [vmem:[#allocation8 + $0x248] ss:$16 sps:$4 sm:$0xff]   ;;  %v3078_v1 = vld [vmem:[#allocation8 + $0x2c] ss:$16 sps:$4 sm:$0xff]  }
  0x8b   :  { %1095 = vmatprep.subr.bf16.mxu0 %v3030_v2  ;;  %1136 = vmatprep.subr.bf16.mxu1 %v3033_v3  ;;  %v3081_v2 = vld [vmem:[#allocation8 + $0x22c] ss:$16 sps:$4 sm:$0xff]   ;;  %v3076_v3 = vld [vmem:[#allocation8 + $0x28] ss:$16 sps:$4 sm:$0xff]  }
  0x8e   :  { %1096 = vmatpush2.bf16.msra.mxu0 %v3028_v4  ;;  %1137 = vmatpush2.bf16.msra.mxu1 %v3031_v5  ;;  %v3079_v4 = vld [vmem:[#allocation8 + $0x228] ss:$16 sps:$4 sm:$0xff]   ;;  %v3084_v5 = vld [vmem:[#allocation8 + $0xc] ss:$16 sps:$4 sm:$0xff]  }
  0x8f   :  { %1097 = vmatprep.subr.bf16.mxu0 %v3036_v6  ;;  %1138 = vmatprep.subr.bf16.mxu1 %v3039_v7  ;;  %v3087_v6 = vld [vmem:[#allocation8 + $0x20c] ss:$16 sps:$4 sm:$0xff]   ;;  %v3082_v7 = vld [vmem:[#allocation8 + $0x8] ss:$16 sps:$4 sm:$0xff]  }
  0x92   :  { %1098 = vmatpush2.bf16.msra.mxu0 %v3034_v8  ;;  %1139 = vmatpush2.bf16.msra.mxu1 %v3037_v9  ;;  %v3085_v8 = vld [vmem:[#allocation8 + $0x208] ss:$16 sps:$4 sm:$0xff]   ;;  %v3090_v9 = vld [vmem:[#allocation8 + $0x1ec] ss:$16 sps:$4 sm:$0xff]  }
  0x93   :  { %1149 = vmatprep.subr.bf16.mxu0 %v3042_v10  ;;  %1190 = vmatprep.subr.bf16.mxu1 %v3045_v11  ;;  %v3093_v10 = vld [vmem:[#allocation8 + $0x3ec] ss:$16 sps:$4 sm:$0xff]   ;;  %v3088_v11 = vld [vmem:[#allocation8 + $0x1e8] ss:$16 sps:$4 sm:$0xff]  }
 0x115   :  { %v221_v23 = vpop.f32.mrf.mxu0  ;;  %v262_v24 = vpop.f32.mrf.mxu1 }
 0x116   :  { %v222_v25 = vadd.f32 %v221_v23, %v126_v19  ;;  %v263_v26 = vadd.f32 %v262_v24, %v134_v20  ;;  %v3099_v19 = vld [vmem:[#allocation8 + $0x3cc] ss:$16 sps:$4 sm:$0xff]   ;;  %v3094_v20 = vld [vmem:[#allocation8 + $0x1c8] ss:$16 sps:$4 sm:$0xff]  }
 0x117   :  { %v223_v27 = vpop.f32.mrf.mxu0  ;;  %v264_v28 = vpop.f32.mrf.mxu1  ;;  %v3105_v23 = vld [vmem:[#allocation8 + $0x3ac] ss:$16 sps:$4 sm:$0xff]   ;;  %v3100_v24 = vld [vmem:[#allocation8 + $0x1a8] ss:$16 sps:$4 sm:$0xff]  }
 0x118   :  { %v271_v29 = vmax.f32 %v263_v26, 0.0  ;;  %v224_v30 = vadd.f32 %v223_v27, %v130_v21  ;;  %v265_v31 = vadd.f32 %v264_v28, %v138_v22  ;;  %v269_v32 = vmax.f32 %v222_v25, 0.0  ;;  %v3097_v21 = vld [vmem:[#allocation8 + $0x3c8] ss:$16 sps:$4 sm:$0xff]   ;;  %v3102_v22 = vld [vmem:[#allocation8 + $0x1ac] ss:$16 sps:$4 sm:$0xff]  }
 0x119   :  { %v225_v33 = vpop.f32.mrf.mxu0  ;;  %v266_v34 = vpop.f32.mrf.mxu1  ;;  %v3103_v25 = vld [vmem:[#allocation8 + $0x3a8] ss:$16 sps:$4 sm:$0xff]   ;;  %v3108_v26 = vld [vmem:[#allocation8 + $0x18c] ss:$16 sps:$4 sm:$0xff]  }
 0x11a   :  { %v270_v35 = vmax.f32 %v224_v30, 0.0  ;;  %v272_v36 = vmax.f32 %v265_v31, 0.0  ;;  %v3616_v37 = vpack.c.bf16 %v271_v29, %v271_v29  ;;  %v3618_v44 = vpack.c.bf16 %v269_v32, %v269_v32  ;;  %v3111_v27 = vld [vmem:[#allocation8 + $0x38c] ss:$16 sps:$4 sm:$0xff]   ;;  %v3106_v28 = vld [vmem:[#allocation8 + $0x188] ss:$16 sps:$4 sm:$0xff]  }
 0x11b   :  { %v226_v38 = vpop.f32.mrf.mxu0  ;;  %v267_v39 = vpop.f32.mrf.mxu1  ;;  %v3109_v29 = vld [vmem:[#allocation8 + $0x388] ss:$16 sps:$4 sm:$0xff]   ;;  %v3114_v30 = vld [vmem:[#allocation8 + $0x16c] ss:$16 sps:$4 sm:$0xff]  }
 0x11c   :  { %v274_v40 = vpack.c.bf16 %v270_v35, %v270_v35  ;;  %v276_v41 = vpack.c.bf16 %v272_v36, %v272_v36  ;;  %v3117_v31 = vld [vmem:[#allocation8 + $0x36c] ss:$16 sps:$4 sm:$0xff]   ;;  %v3112_v32 = vld [vmem:[#allocation8 + $0x168] ss:$16 sps:$4 sm:$0xff]  }
 0x11d   :  { %v3115_v33 = vld [vmem:[#allocation8 + $0x368] ss:$16 sps:$4 sm:$0xff]   ;;  %v3120_v34 = vld [vmem:[#allocation8 + $0x14c] ss:$16 sps:$4 sm:$0xff]  }
 0x11e   :  { %1099 = vmatprep.mubr.bf16.mxu0 %v274_v40  ;;  %1140 = vmatprep.mubr.bf16.mxu1 %v276_v41  ;;  %v3123_v35 = vld [vmem:[#allocation8 + $0x34c] ss:$16 sps:$4 sm:$0xff]   ;;  %v3118_v36 = vld [vmem:[#allocation8 + $0x148] ss:$16 sps:$4 sm:$0xff]  }
 0x11f   :  { %1100 = vmatmul.mubr.bf16.vlgmr.msra.gmra.mxu0 %v3618_v44  ;;  %1141 = vmatmul.mubr.bf16.vlgmr.msra.gmra.mxu1 %v3616_v37  ;;  %v3121_v38 = vld [vmem:[#allocation8 + $0x348] ss:$16 sps:$4 sm:$0xff]   ;;  %v3126_v39 = vld [vmem:[#allocation8 + $0x12c] ss:$16 sps:$4 sm:$0xff]  }
 0x120   :  { %1150 = vmatpush1.bf16.msra.mxu0 %v3040_v42  ;;  %1191 = vmatpush1.bf16.msra.mxu1 %v3043_v43  ;;  %v3127_v42 = vld [vmem:[#allocation8 + $0x328] ss:$16 sps:$4 sm:$0xff]   ;;  %v3132_v43 = vld [vmem:[#allocation8 + $0x10c] ss:$16 sps:$4 sm:$0xff]  }
 0x121   :  { %1181 = vmatprep.mubr.bf16.mxu0 %v274_v40  ;;  %1222 = vmatprep.mubr.bf16.mxu1 %v276_v41  ;;  %v3129_v40 = vld [vmem:[#allocation8 + $0x32c] ss:$16 sps:$4 sm:$0xff]   ;;  %v3124_v41 = vld [vmem:[#allocation8 + $0x128] ss:$16 sps:$4 sm:$0xff]  }
 0x122   :  { %1151 = vmatprep.subr.bf16.mxu0 %v3048_v45  ;;  %1192 = vmatprep.subr.bf16.mxu1 %v3051_v46  ;;  %v3135_v45 = vld [vmem:[#allocation8 + $0x30c] ss:$16 sps:$4 sm:$0xff]   ;;  %v3130_v46 = vld [vmem:[#allocation8 + $0x108] ss:$16 sps:$4 sm:$0xff]  }
 0x124   :  { %1152 = vmatpush1.bf16.msra.mxu0 %v3046_v47  ;;  %1193 = vmatpush1.bf16.msra.mxu1 %v3049_v48  ;;  %v3133_v47 = vld [vmem:[#allocation8 + $0x308] ss:$16 sps:$4 sm:$0xff]   ;;  %v3138_v48 = vld [vmem:[#allocation10 + $0xe4] ss:$16 sps:$4 sm:$0xff]  }
 0x125   :  { %1153 = vmatprep.subr.bf16.mxu0 %v3054_v49  ;;  %1194 = vmatprep.subr.bf16.mxu1 %v3057_v50  ;;  %v3136_v49 = vld [vmem:[#allocation10 + $0xe0] ss:$16 sps:$4 sm:$0xff]   ;;  %v3141_v50 = vld [vmem:[#allocation10 + $0xc4] ss:$16 sps:$4 sm:$0xff]  }
 0x128   :  { %1154 = vmatpush1.bf16.msra.mxu0 %v3052_v51  ;;  %1195 = vmatpush1.bf16.msra.mxu1 %v3055_v52  ;;  %v3139_v51 = vld [vmem:[#allocation10 + $0xc0] ss:$16 sps:$4 sm:$0xff]   ;;  %v3144_v52 = vld [vmem:[#allocation10 + $0xa4] ss:$16 sps:$4 sm:$0xff]  }
 0x129   :  { %1155 = vmatprep.subr.bf16.mxu0 %v3060_v53  ;;  %1196 = vmatprep.subr.bf16.mxu1 %v3063_v54  ;;  %v3142_v53 = vld [vmem:[#allocation10 + $0xa0] ss:$16 sps:$4 sm:$0xff]   ;;  %v3147_v54 = vld [vmem:[#allocation10 + $0x84] ss:$16 sps:$4 sm:$0xff]  }
 0x12c   :  { %1156 = vmatpush1.bf16.msra.mxu0 %v3058_v55  ;;  %1197 = vmatpush1.bf16.msra.mxu1 %v3061_v56  ;;  %v3145_v55 = vld [vmem:[#allocation10 + $0x80] ss:$16 sps:$4 sm:$0xff]  }
 0x12d   :  { %1157 = vmatprep.subr.bf16.mxu0 %v3066_v57  ;;  %1198 = vmatprep.subr.bf16.mxu1 %v3069_v58  ;;  %v3184_v56 = vld [vmem:[#allocation10 + $0x2e0] ss:$16 sps:$4 sm:$0xff]   ;;  %v3186_v57 = vld [vmem:[#allocation10 + $0x2e4] ss:$16 sps:$4 sm:$0xff]  }
 0x12e   :  { %v3150_v58 = vld [vmem:[#allocation10 + $0x64] ss:$16 sps:$4 sm:$0xff]  }
 0x130   :  { %1158 = vmatpush1.bf16.msra.mxu0 %v3064_v59  ;;  %1199 = vmatpush1.bf16.msra.mxu1 %v3067_v60  ;;  %v3190_v59 = vld [vmem:[#allocation10 + $0x2c0] ss:$16 sps:$4 sm:$0xff]   ;;  %v3153_v60 = vld [vmem:[#allocation10 + $0x44] ss:$16 sps:$4 sm:$0xff]  }
 0x131   :  { %1159 = vmatprep.subr.bf16.mxu0 %v3072_v61  ;;  %1200 = vmatprep.subr.bf16.mxu1 %v3075_v62  ;;  %v3151_v61 = vld [vmem:[#allocation10 + $0x40] ss:$16 sps:$4 sm:$0xff]  }
 0x132   :  { %v3196_v62 = vld [vmem:[#allocation10 + $0x2a0] ss:$16 sps:$4 sm:$0xff]  }
 0x134   :  { %1160 = vmatpush1.bf16.msra.mxu0 %v3070_v63  ;;  %1201 = vmatpush1.bf16.msra.mxu1 %v3073_v0  ;;  %v3198_v63 = vld [vmem:[#allocation10 + $0x2a4] ss:$16 sps:$4 sm:$0xff]  }
 0x135   :  { %1161 = vmatprep.subr.bf16.mxu0 %v3078_v1  ;;  %1202 = vmatprep.subr.bf16.mxu1 %v3081_v2  ;;  %v3156_v0 = vld [vmem:[#allocation10 + $0x24] ss:$16 sps:$4 sm:$0xff]   ;;  %v3154_v1 = vld [vmem:[#allocation10 + $0x20] ss:$16 sps:$4 sm:$0xff]  }
 0x136   :  { %v3202_v2 = vld [vmem:[#allocation10 + $0x280] ss:$16 sps:$4 sm:$0xff]  }
 0x138   :  { %1162 = vmatpush1.bf16.msra.mxu0 %v3076_v3  ;;  %1203 = vmatpush1.bf16.msra.mxu1 %v3079_v4  ;;  %v3204_v3 = vld [vmem:[#allocation10 + $0x284] ss:$16 sps:$4 sm:$0xff]  }
 0x139   :  { %1163 = vmatprep.subr.bf16.mxu0 %v3084_v5  ;;  %1204 = vmatprep.subr.bf16.mxu1 %v3087_v6  ;;  %v3159_v4 = vld [vmem:[#allocation10 + $0x4] ss:$16 sps:$4 sm:$0xff]   ;;  %v3157_v5 = vld [vmem:[#allocation10] ss:$16 sps:$4 sm:$0xff]  }
 0x13a   :  { %v3208_v6 = vld [vmem:[#allocation10 + $0x260] ss:$16 sps:$4 sm:$0xff]  }
 0x13c   :  { %1164 = vmatpush1.bf16.msra.mxu0 %v3082_v7  ;;  %1205 = vmatpush1.bf16.msra.mxu1 %v3085_v8  ;;  %v3210_v7 = vld [vmem:[#allocation10 + $0x264] ss:$16 sps:$4 sm:$0xff]  }
 0x13d   :  { %1165 = vmatprep.subr.bf16.mxu0 %v3090_v9  ;;  %1206 = vmatprep.subr.bf16.mxu1 %v3093_v10  ;;  %v3162_v8 = vld [vmem:[#allocation10 + $0x1e4] ss:$16 sps:$4 sm:$0xff]   ;;  %v3160_v9 = vld [vmem:[#allocation10 + $0x1e0] ss:$16 sps:$4 sm:$0xff]  }
 0x13e   :  { %v3214_v10 = vld [vmem:[#allocation10 + $0x240] ss:$16 sps:$4 sm:$0xff]  }
 0x140   :  { %1166 = vmatpush2.bf16.msra.mxu0 %v3088_v11  ;;  %1207 = vmatpush2.bf16.msra.mxu1 %v3091_v13  ;;  %v3216_v11 = vld [vmem:[#allocation10 + $0x244] ss:$16 sps:$4 sm:$0xff]  }
 0x141   :  { %1167 = vmatprep.subr.bf16.mxu0 %v3096_v16  ;;  %1208 = vmatprep.subr.bf16.mxu1 %v3099_v19  ;;  %v3165_v13 = vld [vmem:[#allocation10 + $0x1c4] ss:$16 sps:$4 sm:$0xff]   ;;  %v3163_v16 = vld [vmem:[#allocation10 + $0x1c0] ss:$16 sps:$4 sm:$0xff]  }
 0x142   :  { %v3220_v19 = vld [vmem:[#allocation10 + $0x220] ss:$16 sps:$4 sm:$0xff]  }
 0x144   :  { %1168 = vmatpush2.bf16.msra.mxu0 %v3094_v20  ;;  %1209 = vmatpush2.bf16.msra.mxu1 %v3097_v21  ;;  %v3222_v20 = vld [vmem:[#allocation10 + $0x224] ss:$16 sps:$4 sm:$0xff]  }
 0x145   :  { %1169 = vmatprep.subr.bf16.mxu0 %v3102_v22  ;;  %1210 = vmatprep.subr.bf16.mxu1 %v3105_v23  ;;  %v3168_v21 = vld [vmem:[#allocation10 + $0x1a4] ss:$16 sps:$4 sm:$0xff]   ;;  %v3166_v22 = vld [vmem:[#allocation10 + $0x1a0] ss:$16 sps:$4 sm:$0xff]  }
 0x146   :  { %v3226_v23 = vld [vmem:[#allocation10 + $0x200] ss:$16 sps:$4 sm:$0xff]  }
 0x148   :  { %1170 = vmatpush2.bf16.msra.mxu0 %v3100_v24  ;;  %1211 = vmatpush2.bf16.msra.mxu1 %v3103_v25  ;;  %v3228_v24 = vld [vmem:[#allocation10 + $0x204] ss:$16 sps:$4 sm:$0xff]  }
 0x149   :  { %1171 = vmatprep.subr.bf16.mxu0 %v3108_v26  ;;  %1212 = vmatprep.subr.bf16.mxu1 %v3111_v27  ;;  %v3171_v25 = vld [vmem:[#allocation10 + $0x184] ss:$16 sps:$4 sm:$0xff]   ;;  %v3169_v26 = vld [vmem:[#allocation10 + $0x180] ss:$16 sps:$4 sm:$0xff]  }
 0x14a   :  { %v3232_v27 = vld [vmem:[#allocation10 + $0x3e0] ss:$16 sps:$4 sm:$0xff]  }
 0x14c   :  { %1172 = vmatpush2.bf16.msra.mxu0 %v3106_v28  ;;  %1213 = vmatpush2.bf16.msra.mxu1 %v3109_v29  ;;  %v3234_v28 = vld [vmem:[#allocation10 + $0x3e4] ss:$16 sps:$4 sm:$0xff]  }
 0x14d   :  { %1173 = vmatprep.subr.bf16.mxu0 %v3114_v30  ;;  %1214 = vmatprep.subr.bf16.mxu1 %v3117_v31  ;;  %v3174_v29 = vld [vmem:[#allocation10 + $0x164] ss:$16 sps:$4 sm:$0xff]   ;;  %v3172_v30 = vld [vmem:[#allocation10 + $0x160] ss:$16 sps:$4 sm:$0xff]  }
 0x14e   :  { %v3238_v31 = vld [vmem:[#allocation10 + $0x3c0] ss:$16 sps:$4 sm:$0xff]  }
 0x150   :  { %1174 = vmatpush2.bf16.msra.mxu0 %v3112_v32  ;;  %1215 = vmatpush2.bf16.msra.mxu1 %v3115_v33  ;;  %v3240_v32 = vld [vmem:[#allocation10 + $0x3c4] ss:$16 sps:$4 sm:$0xff]  }
 0x151   :  { %1175 = vmatprep.subr.bf16.mxu0 %v3120_v34  ;;  %1216 = vmatprep.subr.bf16.mxu1 %v3123_v35  ;;  %v3177_v33 = vld [vmem:[#allocation10 + $0x144] ss:$16 sps:$4 sm:$0xff]   ;;  %v3175_v34 = vld [vmem:[#allocation10 + $0x140] ss:$16 sps:$4 sm:$0xff]  }
 0x152   :  { %v3244_v35 = vld [vmem:[#allocation10 + $0x3a0] ss:$16 sps:$4 sm:$0xff]  }
 0x154   :  { %1176 = vmatpush2.bf16.msra.mxu0 %v3118_v36  ;;  %1217 = vmatpush2.bf16.msra.mxu1 %v3121_v38  ;;  %v3246_v36 = vld [vmem:[#allocation10 + $0x3a4] ss:$16 sps:$4 sm:$0xff]  }
 0x155   :  { %1177 = vmatprep.subr.bf16.mxu0 %v3126_v39  ;;  %1218 = vmatprep.subr.bf16.mxu1 %v3129_v40  ;;  %v3180_v38 = vld [vmem:[#allocation10 + $0x124] ss:$16 sps:$4 sm:$0xff]   ;;  %v3178_v39 = vld [vmem:[#allocation10 + $0x120] ss:$16 sps:$4 sm:$0xff]  }
 0x156   :  { %v3250_v40 = vld [vmem:[#allocation10 + $0x380] ss:$16 sps:$4 sm:$0xff]  }
 0x158   :  { %1178 = vmatpush2.bf16.msra.mxu0 %v3124_v41  ;;  %1219 = vmatpush2.bf16.msra.mxu1 %v3127_v42  ;;  %v3252_v41 = vld [vmem:[#allocation10 + $0x384] ss:$16 sps:$4 sm:$0xff]  }
 0x159   :  { %1179 = vmatprep.subr.bf16.mxu0 %v3132_v43  ;;  %1220 = vmatprep.subr.bf16.mxu1 %v3135_v45  ;;  %v3183_v42 = vld [vmem:[#allocation10 + $0x104] ss:$16 sps:$4 sm:$0xff]   ;;  %v3181_v43 = vld [vmem:[#allocation10 + $0x100] ss:$16 sps:$4 sm:$0xff]  }
 0x15a   :  { %v3256_v45 = vld [vmem:[#allocation10 + $0x360] ss:$16 sps:$4 sm:$0xff]  }
 0x15c   :  { %1180 = vmatpush2.bf16.msra.mxu0 %v3130_v46  ;;  %1221 = vmatpush2.bf16.msra.mxu1 %v3133_v47  ;;  %v3258_v46 = vld [vmem:[#allocation10 + $0x364] ss:$16 sps:$4 sm:$0xff]   ;;  %v3189_v47 = vld [vmem:[#allocation10 + $0xec] ss:$16 sps:$4 sm:$0xff]  }
 0x15d   :  { %2029 = vmatprep.subr.bf16.mxu0 %v3138_v48  ;;  %2070 = vmatprep.subr.bf16.mxu1 %v3186_v57  ;;  %v3262_v48 = vld [vmem:[#allocation10 + $0x340] ss:$16 sps:$4 sm:$0xff]  }
 0x15f   :  { %1182 = vmatmul.mubr.bf16.vlgmr.msra.gmra.mxu0 %v3618_v44  ;;  %1223 = vmatmul.mubr.bf16.vlgmr.msra.gmra.mxu1 %v3616_v37  ;;  %v3148_v44 = vld [vmem:[#allocation10 + $0x60] ss:$16 sps:$4 sm:$0xff]   ;;  %v3192_v37 = vld [vmem:[#allocation10 + $0x2c4] ss:$16 sps:$4 sm:$0xff]  }
 0x160   :  { %2030 = vmatpush1.bf16.msra.mxu0 %v3136_v49  ;;  %2071 = vmatpush1.bf16.msra.mxu1 %v3184_v56  ;;  %v3264_v49 = vld [vmem:[#allocation10 + $0x344] ss:$16 sps:$4 sm:$0xff]  }
 0x161   :  { %2031 = vmatprep.subr.bf16.mxu0 %v3141_v50  ;;  %2072 = vmatprep.subr.bf16.mxu1 %v3192_v37  ;;  %v3270_v50 = vld [vmem:[#allocation10 + $0x324] ss:$16 sps:$4 sm:$0xff]  }
 0x164   :  { %2032 = vmatpush1.bf16.msra.mxu0 %v3139_v51  ;;  %2073 = vmatpush1.bf16.msra.mxu1 %v3190_v59  ;;  %v3268_v51 = vld [vmem:[#allocation10 + $0x320] ss:$16 sps:$4 sm:$0xff]  }
 0x165   :  { %2033 = vmatprep.subr.bf16.mxu0 %v3144_v52  ;;  %2074 = vmatprep.subr.bf16.mxu1 %v3198_v63  ;;  %v3276_v52 = vld [vmem:[#allocation10 + $0x304] ss:$16 sps:$4 sm:$0xff]  }
 0x168   :  { %2034 = vmatpush1.bf16.msra.mxu0 %v3142_v53  ;;  %2075 = vmatpush1.bf16.msra.mxu1 %v3196_v62  ;;  %v3274_v53 = vld [vmem:[#allocation10 + $0x300] ss:$16 sps:$4 sm:$0xff]  }
 0x169   :  { %2035 = vmatprep.subr.bf16.mxu0 %v3147_v54  ;;  %2076 = vmatprep.subr.bf16.mxu1 %v3204_v3  ;;  %v3282_v54 = vld [vmem:[#allocation10 + $0x2ec] ss:$16 sps:$4 sm:$0xff]  }
 0x16c   :  { %2036 = vmatpush1.bf16.msra.mxu0 %v3145_v55  ;;  %2077 = vmatpush1.bf16.msra.mxu1 %v3202_v2  ;;  %v3627_v55 = vld [vmem:[%s3663_s4] sm:$0xf] }
 0x16d   :  { %2037 = vmatprep.subr.bf16.mxu0 %v3150_v58  ;;  %2078 = vmatprep.subr.bf16.mxu1 %v3210_v7  ;;  %v410_v56 = vrot.slane %v3627_v55, %v3604_v14  ;;  %v414_v57 = vrot.slane %v3627_v55, %v3608_v17  ;;  %v3187_v7 = vld [vmem:[#allocation10 + $0xe8] ss:$16 sps:$4 sm:$0xff]  }
 0x170   :  { %2038 = vmatpush1.bf16.msra.mxu0 %v3148_v44  ;;  %2079 = vmatpush1.bf16.msra.mxu1 %v3208_v6 }
 0x171   :  { %2039 = vmatprep.subr.bf16.mxu0 %v3153_v60  ;;  %2080 = vmatprep.subr.bf16.mxu1 %v3216_v11  ;;  %v3201_v11 = vld [vmem:[#allocation10 + $0xac] ss:$16 sps:$4 sm:$0xff]  }
 0x174   :  { %2040 = vmatpush1.bf16.msra.mxu0 %v3151_v61  ;;  %2081 = vmatpush1.bf16.msra.mxu1 %v3214_v10  ;;  %v3193_v10 = vld [vmem:[#allocation10 + $0xc8] ss:$16 sps:$4 sm:$0xff]  }
 0x175   :  { %2041 = vmatprep.subr.bf16.mxu0 %v3156_v0  ;;  %2082 = vmatprep.subr.bf16.mxu1 %v3222_v20  ;;  %v3213_v20 = vld [vmem:[#allocation10 + $0x6c] ss:$16 sps:$4 sm:$0xff]  }
 0x178   :  { %2042 = vmatpush1.bf16.msra.mxu0 %v3154_v1  ;;  %2083 = vmatpush1.bf16.msra.mxu1 %v3220_v19  ;;  %v3205_v19 = vld [vmem:[#allocation10 + $0x88] ss:$16 sps:$4 sm:$0xff]  }
 0x179   :  { %2043 = vmatprep.subr.bf16.mxu0 %v3159_v4  ;;  %2084 = vmatprep.subr.bf16.mxu1 %v3228_v24  ;;  %v3225_v24 = vld [vmem:[#allocation10 + $0x2c] ss:$16 sps:$4 sm:$0xff]  }
 0x17c   :  { %2044 = vmatpush1.bf16.msra.mxu0 %v3157_v5  ;;  %2085 = vmatpush1.bf16.msra.mxu1 %v3226_v23  ;;  %v3217_v23 = vld [vmem:[#allocation10 + $0x48] ss:$16 sps:$4 sm:$0xff]  }
 0x17d   :  { %2045 = vmatprep.subr.bf16.mxu0 %v3162_v8  ;;  %2086 = vmatprep.subr.bf16.mxu1 %v3234_v28  ;;  %v3237_v28 = vld [vmem:[#allocation10 + $0x1ec] ss:$16 sps:$4 sm:$0xff]  }
 0x180   :  { %2046 = vmatpush2.bf16.msra.mxu0 %v3160_v9  ;;  %2087 = vmatpush2.bf16.msra.mxu1 %v3232_v27  ;;  %v3195_v9 = vld [vmem:[#allocation10 + $0xcc] ss:$16 sps:$4 sm:$0xff]   ;;  %v3229_v27 = vld [vmem:[#allocation10 + $0x8] ss:$16 sps:$4 sm:$0xff]  }
 0x181   :  { %2047 = vmatprep.subr.bf16.mxu0 %v3165_v13  ;;  %2088 = vmatprep.subr.bf16.mxu1 %v3240_v32  ;;  %v3199_v13 = vld [vmem:[#allocation10 + $0xa8] ss:$16 sps:$4 sm:$0xff]   ;;  %v3249_v32 = vld [vmem:[#allocation10 + $0x1ac] ss:$16 sps:$4 sm:$0xff]  }
 0x184   :  { %2048 = vmatpush2.bf16.msra.mxu0 %v3163_v16  ;;  %2089 = vmatpush2.bf16.msra.mxu1 %v3238_v31  ;;  %v3207_v16 = vld [vmem:[#allocation10 + $0x8c] ss:$16 sps:$4 sm:$0xff]   ;;  %v3241_v31 = vld [vmem:[#allocation10 + $0x1c8] ss:$16 sps:$4 sm:$0xff]  }
 0x185   :  { %2049 = vmatprep.subr.bf16.mxu0 %v3168_v21  ;;  %2090 = vmatprep.subr.bf16.mxu1 %v3246_v36  ;;  %v3211_v21 = vld [vmem:[#allocation10 + $0x68] ss:$16 sps:$4 sm:$0xff]   ;;  %v3261_v36 = vld [vmem:[#allocation10 + $0x16c] ss:$16 sps:$4 sm:$0xff]  }
 0x188   :  { %2050 = vmatpush2.bf16.msra.mxu0 %v3166_v22  ;;  %2091 = vmatpush2.bf16.msra.mxu1 %v3244_v35  ;;  %v3219_v22 = vld [vmem:[#allocation10 + $0x4c] ss:$16 sps:$4 sm:$0xff]   ;;  %v3253_v35 = vld [vmem:[#allocation10 + $0x188] ss:$16 sps:$4 sm:$0xff]  }
 0x189   :  { %2051 = vmatprep.subr.bf16.mxu0 %v3171_v25  ;;  %2092 = vmatprep.subr.bf16.mxu1 %v3252_v41  ;;  %v3223_v25 = vld [vmem:[#allocation10 + $0x28] ss:$16 sps:$4 sm:$0xff]  }
 0x18a   :  { %v3265_v41 = vld [vmem:[#allocation10 + $0x148] ss:$16 sps:$4 sm:$0xff]  }
 0x18c   :  { %2052 = vmatpush2.bf16.msra.mxu0 %v3169_v26  ;;  %2093 = vmatpush2.bf16.msra.mxu1 %v3250_v40  ;;  %v3231_v26 = vld [vmem:[#allocation10 + $0xc] ss:$16 sps:$4 sm:$0xff]   ;;  %v418_v40 = vrot.slane %v3627_v55, %v3606_v15 }
 0x18d   :  { %2053 = vmatprep.subr.bf16.mxu0 %v3174_v29  ;;  %2094 = vmatprep.subr.bf16.mxu1 %v3258_v46  ;;  %v3235_v29 = vld [vmem:[#allocation10 + $0x1e8] ss:$16 sps:$4 sm:$0xff]  }
 0x190   :  { %2054 = vmatpush2.bf16.msra.mxu0 %v3172_v30  ;;  %2095 = vmatpush2.bf16.msra.mxu1 %v3256_v45  ;;  %v3243_v30 = vld [vmem:[#allocation10 + $0x1cc] ss:$16 sps:$4 sm:$0xff]  }
 0x191   :  { %2055 = vmatprep.subr.bf16.mxu0 %v3177_v33  ;;  %2096 = vmatprep.subr.bf16.mxu1 %v3264_v49  ;;  %v3247_v33 = vld [vmem:[#allocation10 + $0x1a8] ss:$16 sps:$4 sm:$0xff]  }
 0x194   :  { %2056 = vmatpush2.bf16.msra.mxu0 %v3175_v34  ;;  %2097 = vmatpush2.bf16.msra.mxu1 %v3262_v48  ;;  %v3255_v34 = vld [vmem:[#allocation10 + $0x18c] ss:$16 sps:$4 sm:$0xff]   ;;  %v3271_v48 = vld [vmem:[#allocation10 + $0x128] ss:$16 sps:$4 sm:$0xff]  }
 0x195   :  { %2057 = vmatprep.subr.bf16.mxu0 %v3180_v38  ;;  %2098 = vmatprep.subr.bf16.mxu1 %v3270_v50  ;;  %v3259_v38 = vld [vmem:[#allocation10 + $0x168] ss:$16 sps:$4 sm:$0xff]  }
 0x198   :  { %2058 = vmatpush2.bf16.msra.mxu0 %v3178_v39  ;;  %2099 = vmatpush2.bf16.msra.mxu1 %v3268_v51  ;;  %v3267_v39 = vld [vmem:[#allocation10 + $0x14c] ss:$16 sps:$4 sm:$0xff]  }
 0x199   :  { %2059 = vmatprep.subr.bf16.mxu0 %v3183_v42  ;;  %2100 = vmatprep.subr.bf16.mxu1 %v3276_v52  ;;  %v3273_v42 = vld [vmem:[#allocation10 + $0x12c] ss:$16 sps:$4 sm:$0xff]  }
 0x19a   :  { %v3279_v51 = vld [vmem:[#allocation10 + $0x10c] ss:$16 sps:$4 sm:$0xff]  }
 0x19c   :  { %2060 = vmatpush2.bf16.msra.mxu0 %v3181_v43  ;;  %2101 = vmatpush2.bf16.msra.mxu1 %v3274_v53  ;;  %v422_v43 = vrot.slane %v3627_v55, %v3610_v18 }
 0x19d   :  { %2111 = vmatprep.subr.bf16.mxu0 %v3189_v47  ;;  %2152 = vmatprep.subr.bf16.mxu1 %v3282_v54 }
 0x1df   :  { %v1101_v58 = vpop.f32.mrf.mxu0  ;;  %v1142_v44 = vpop.f32.mrf.mxu1 }
 0x1e0   :  { %v1102_v59 = vadd.f32 %v1101_v58, %v410_v56  ;;  %v3277_v58 = vld [vmem:[#allocation10 + $0x108] ss:$16 sps:$4 sm:$0xff]  }
 0x1e1   :  { %v1103_v37 = vpop.f32.mrf.mxu0  ;;  %v1144_v60 = vpop.f32.mrf.mxu1 }
 0x1e2   :  { %v1143_v61 = vadd.f32 %v1142_v44, %v1102_v59  ;;  %v1104_v62 = vadd.f32 %v1103_v37, %v414_v57 }
 0x1e3   :  { %v1105_v63 = vpop.f32.mrf.mxu0  ;;  %v1146_v0 = vpop.f32.mrf.mxu1 }
 0x1e4   :  { %v1145_v1 = vadd.f32 %v1144_v60, %v1104_v62  ;;  %v1231_v2 = vmax.f32 %v1143_v61, 0.0  ;;  %v3280_v61 = vld [vmem:[#allocation10 + $0x2e8] ss:$16 sps:$4 sm:$0xff]   ;;  %v3285_v63 = vld [vmem:[#allocation10 + $0x2cc] ss:$16 sps:$4 sm:$0xff]  }
 0x1e5   :  { %v1106_v3 = vpop.f32.mrf.mxu0  ;;  %v1147_v4 = vpop.f32.mrf.mxu1  ;;  %v3283_v0 = vld [vmem:[#allocation10 + $0x2c8] ss:$16 sps:$4 sm:$0xff]  }
 0x1e6   :  { %v1232_v5 = vmax.f32 %v1145_v1, 0.0  ;;  %v3633_v8 = vpack.c.bf16 %v1231_v2, %v1231_v2  ;;  %v3288_v1 = vld [vmem:[#allocation10 + $0x2ac] ss:$16 sps:$4 sm:$0xff]   ;;  %v3286_v2 = vld [vmem:[#allocation10 + $0x2a8] ss:$16 sps:$4 sm:$0xff]  }
 0x1e7   :  { %v3291_v3 = vld [vmem:[#allocation10 + $0x28c] ss:$16 sps:$4 sm:$0xff]  }
 0x1e8   :  { %v1236_v6 = vpack.c.bf16 %v1232_v5, %v1232_v5  ;;  %v3328_v4 = vld [vmem:[#allocation11 + $0x78] sm:$0xff]  }
 0x1e9   :  { %v3329_v5 = vld [vmem:[#allocation11 + $0x38] sm:$0xff]  }
 0x1ea   :  { %2061 = vmatprep.mubr.bf16.mxu0 %v1236_v6 }
 0x1eb   :  { %2062 = vmatmul.mubr.bf16.vlgmr.msra.gmra.mxu0 %v3633_v8 }
 0x1ec   :  { %2112 = vmatpush1.bf16.msra.mxu0 %v3187_v7  ;;  %2143 = vmatprep.mubr.bf16.mxu0 %v1236_v6  ;;  %v3330_v6 = vld [vmem:[#allocation11 + $0x70] sm:$0xff]   ;;  %v3289_v7 = vld [vmem:[#allocation10 + $0x288] ss:$16 sps:$4 sm:$0xff]  }
 0x1ed   :  { %2113 = vmatprep.subr.bf16.mxu0 %v3195_v9  ;;  %v3331_v9 = vld [vmem:[#allocation11 + $0x30] sm:$0xff]  }
 0x1f0   :  { %2114 = vmatpush1.bf16.msra.mxu0 %v3193_v10  ;;  %v3294_v10 = vld [vmem:[#allocation10 + $0x26c] ss:$16 sps:$4 sm:$0xff]  }
 0x1f1   :  { %2115 = vmatprep.subr.bf16.mxu0 %v3201_v11  ;;  %v3292_v11 = vld [vmem:[#allocation10 + $0x268] ss:$16 sps:$4 sm:$0xff]  }
 0x1f4   :  { %2116 = vmatpush1.bf16.msra.mxu0 %v3199_v13  ;;  %v3333_v13 = vld [vmem:[#allocation11 + $0x28] sm:$0xff]  }
 0x1f5   :  { %2117 = vmatprep.subr.bf16.mxu0 %v3207_v16  ;;  %v3297_v16 = vld [vmem:[#allocation10 + $0x24c] ss:$16 sps:$4 sm:$0xff]  }
 0x1f8   :  { %2118 = vmatpush1.bf16.msra.mxu0 %v3205_v19  ;;  %v3334_v19 = vld [vmem:[#allocation11 + $0x60] sm:$0xff]  }
 0x1f9   :  { %2119 = vmatprep.subr.bf16.mxu0 %v3213_v20  ;;  %v3295_v20 = vld [vmem:[#allocation10 + $0x248] ss:$16 sps:$4 sm:$0xff]  }
 0x1fc   :  { %2120 = vmatpush1.bf16.msra.mxu0 %v3211_v21  ;;  %v3335_v21 = vld [vmem:[#allocation11 + $0x20] sm:$0xff]  }
 0x1fd   :  { %2121 = vmatprep.subr.bf16.mxu0 %v3219_v22  ;;  %v3300_v22 = vld [vmem:[#allocation10 + $0x22c] ss:$16 sps:$4 sm:$0xff]  }
 0x200   :  { %2122 = vmatpush1.bf16.msra.mxu0 %v3217_v23  ;;  %v3336_v23 = vld [vmem:[#allocation11 + $0x58] sm:$0xff]  }
 0x201   :  { %2123 = vmatprep.subr.bf16.mxu0 %v3225_v24  ;;  %v3298_v24 = vld [vmem:[#allocation10 + $0x228] ss:$16 sps:$4 sm:$0xff]  }
 0x204   :  { %2124 = vmatpush1.bf16.msra.mxu0 %v3223_v25  ;;  %v3337_v25 = vld [vmem:[#allocation11 + $0x18] sm:$0xff]  }
 0x205   :  { %2125 = vmatprep.subr.bf16.mxu0 %v3231_v26  ;;  %v3303_v26 = vld [vmem:[#allocation10 + $0x20c] ss:$16 sps:$4 sm:$0xff]  }
 0x208   :  { %2126 = vmatpush1.bf16.msra.mxu0 %v3229_v27  ;;  %v3338_v27 = vld [vmem:[#allocation11 + $0x50] sm:$0xff]  }
 0x209   :  { %2127 = vmatprep.subr.bf16.mxu0 %v3237_v28  ;;  %v3301_v28 = vld [vmem:[#allocation10 + $0x208] ss:$16 sps:$4 sm:$0xff]  }
 0x20c   :  { %2128 = vmatpush2.bf16.msra.mxu0 %v3235_v29  ;;  %v3339_v29 = vld [vmem:[#allocation11 + $0x10] sm:$0xff]  }
 0x20d   :  { %2129 = vmatprep.subr.bf16.mxu0 %v3243_v30  ;;  %v3306_v30 = vld [vmem:[#allocation10 + $0x3ec] ss:$16 sps:$4 sm:$0xff]  }
 0x210   :  { %2130 = vmatpush2.bf16.msra.mxu0 %v3241_v31  ;;  %v3304_v31 = vld [vmem:[#allocation10 + $0x3e8] ss:$16 sps:$4 sm:$0xff]  }
 0x211   :  { %2131 = vmatprep.subr.bf16.mxu0 %v3249_v32  ;;  %v3309_v32 = vld [vmem:[#allocation10 + $0x3cc] ss:$16 sps:$4 sm:$0xff]  }
 0x214   :  { %2132 = vmatpush2.bf16.msra.mxu0 %v3247_v33  ;;  %v3307_v33 = vld [vmem:[#allocation10 + $0x3c8] ss:$16 sps:$4 sm:$0xff]  }
 0x215   :  { %2133 = vmatprep.subr.bf16.mxu0 %v3255_v34  ;;  %v3312_v34 = vld [vmem:[#allocation10 + $0x3ac] ss:$16 sps:$4 sm:$0xff]  }
 0x218   :  { %2134 = vmatpush2.bf16.msra.mxu0 %v3253_v35  ;;  %v3310_v35 = vld [vmem:[#allocation10 + $0x3a8] ss:$16 sps:$4 sm:$0xff]  }
 0x219   :  { %2135 = vmatprep.subr.bf16.mxu0 %v3261_v36  ;;  %v3315_v36 = vld [vmem:[#allocation10 + $0x38c] ss:$16 sps:$4 sm:$0xff]  }
 0x21c   :  { %2136 = vmatpush2.bf16.msra.mxu0 %v3259_v38  ;;  %v3313_v38 = vld [vmem:[#allocation10 + $0x388] ss:$16 sps:$4 sm:$0xff]  }
 0x21d   :  { %2137 = vmatprep.subr.bf16.mxu0 %v3267_v39  ;;  %v3318_v39 = vld [vmem:[#allocation10 + $0x36c] ss:$16 sps:$4 sm:$0xff]  }
 0x21f   :  { %v1183_v45 = vpop.f32.mrf.mxu0  ;;  %v1224_v46 = vpop.f32.mrf.mxu1 }
 0x220   :  { %v1184_v47 = vadd.f32 %v1183_v45, %v418_v40  ;;  %2138 = vmatpush2.bf16.msra.mxu0 %v3265_v41  ;;  %v3316_v40 = vld [vmem:[#allocation10 + $0x368] ss:$16 sps:$4 sm:$0xff]   ;;  %v3321_v41 = vld [vmem:[#allocation10 + $0x34c] ss:$16 sps:$4 sm:$0xff]  }
 0x221   :  { %v1185_v49 = vpop.f32.mrf.mxu0  ;;  %v1226_v50 = vpop.f32.mrf.mxu1  ;;  %2139 = vmatprep.subr.bf16.mxu0 %v3273_v42  ;;  %v3319_v42 = vld [vmem:[#allocation10 + $0x348] ss:$16 sps:$4 sm:$0xff]  }
 0x222   :  { %v1225_v52 = vadd.f32 %v1224_v46, %v1184_v47  ;;  %v1186_v53 = vadd.f32 %v1185_v49, %v422_v43  ;;  %v3324_v43 = vld [vmem:[#allocation10 + $0x32c] ss:$16 sps:$4 sm:$0xff]   ;;  %v3322_v45 = vld [vmem:[#allocation10 + $0x328] ss:$16 sps:$4 sm:$0xff]  }
 0x223   :  { %v1187_v54 = vpop.f32.mrf.mxu0  ;;  %v1228_v56 = vpop.f32.mrf.mxu1  ;;  %v3327_v46 = vld [vmem:[#allocation10 + $0x30c] ss:$16 sps:$4 sm:$0xff]   ;;  %v3325_v47 = vld [vmem:[#allocation10 + $0x308] ss:$16 sps:$4 sm:$0xff]  }
 0x224   :  { %v1227_v57 = vadd.f32 %v1226_v50, %v1186_v53  ;;  %2140 = vmatpush2.bf16.msra.mxu0 %v3271_v48  ;;  %v1233_v44 = vmax.f32 %v1225_v52, 0.0  ;;  %v3340_v48 = vld [vmem:[#allocation11 + $0x48] sm:$0xff]   ;;  %v3342_v50 = vld [vmem:[#allocation11 + $0x40] sm:$0xff]   ;;  %v3344_v52 = vld [vmem:[#allocation11 + $0xf8] sm:$0xff]  }
 0x225   :  { %v1188_v59 = vpop.f32.mrf.mxu0  ;;  %v1229_v37 = vpop.f32.mrf.mxu1  ;;  %2141 = vmatprep.subr.bf16.mxu0 %v3279_v51  ;;  %v3341_v49 = vld [vmem:[#allocation11 + $0x8] sm:$0xff]   ;;  %v3343_v51 = vld [vmem:[#allocation11] sm:$0xff]   ;;  %v3345_v53 = vld [vmem:[#allocation11 + $0xb8] sm:$0xff]  }
 0x226   :  { %v1234_v55 = vmax.f32 %v1227_v57, 0.0  ;;  %v3640_v62 = vpack.c.bf16 %v1233_v44, %v1233_v44  ;;  %v3346_v54 = vld [vmem:[#allocation11 + $0xf0] sm:$0xff]   ;;  %v3348_v57 = vld [vmem:[#allocation11 + $0xe8] sm:$0xff]   ;;  %v3350_v44 = vld [vmem:[#allocation11 + $0xe0] sm:$0xff]  }
 0x227   :  { %v3347_v56 = vld [vmem:[#allocation11 + $0xb0] sm:$0xff]   ;;  %v3351_v59 = vld [vmem:[#allocation11 + $0xa0] sm:$0xff]   ;;  %v3352_v37 = vld [vmem:[#allocation11 + $0xd8] sm:$0xff]  }
 0x228   :  { %v1238_v60 = vpack.c.bf16 %v1234_v55, %v1234_v55  ;;  %2142 = vmatpush2.bf16.msra.mxu0 %v3277_v58  ;;  %v3349_v58 = vld [vmem:[#allocation11 + $0xa8] sm:$0xff]   ;;  %v3353_v55 = vld [vmem:[#allocation11 + $0x98] sm:$0xff]  }
 0x229   :  { %2876 = vmatprep.subr.bf16.mxu0 %v3328_v4  ;;  %v3359_v4 = vld [vmem:[#allocation11 + $0x80] sm:$0xff]  }
 0x22a   :  { %2102 = vmatprep.mubr.bf16.mxu1 %v1238_v60 }
 0x22b   :  { %2103 = vmatmul.mubr.bf16.vlgmr.msra.gmra.mxu1 %v3640_v62  ;;  %2144 = vmatmul.mubr.bf16.vlgmr.msra.gmra.mxu0 %v3633_v8  ;;  %v3332_v8 = vld [vmem:[#allocation11 + $0x68] sm:$0xff]  }
 0x22c   :  { %2153 = vmatpush1.bf16.msra.mxu1 %v3280_v61  ;;  %2184 = vmatprep.mubr.bf16.mxu1 %v1238_v60  ;;  %v3354_v60 = vld [vmem:[#allocation11 + $0xd0] sm:$0xff]  }
 0x22d   :  { %2154 = vmatprep.subr.bf16.mxu1 %v3285_v63  ;;  %2877 = vmatpush3.bf16.msra.mxu0 %v3329_v5  ;;  %v3355_v61 = vld [vmem:[#allocation11 + $0x90] sm:$0xff]   ;;  %v3356_v63 = vld [vmem:[#allocation11 + $0xc8] sm:$0xff]  }
 0x22e   :  { %2878 = vmatprep.subr.bf16.mxu0 %v3330_v6  ;;  %v1367_v6 = vld [vmem:[%s3665_s6] sm:$0xf] }
 0x230   :  { %2155 = vmatpush1.bf16.msra.mxu1 %v3283_v0  ;;  %v3357_v0 = vld [vmem:[#allocation11 + $0x88] sm:$0xff]  }
 0x231   :  { %2156 = vmatprep.subr.bf16.mxu1 %v3288_v1  ;;  %2879 = vmatpush3.bf16.msra.mxu0 %v3331_v9  ;;  %v1376_v9 = vrot.slane %v1367_v6, %v3608_v17  ;;  %v1384_v17 = vrot.slane %v1367_v6, %v3610_v18  ;;  %v2843_v18 = vld [vmem:[%s3667_s8] ss:$0 sm:$0xff]  ;;  %s3525_s8 = smov [#allocation13]  }
 0x232   :  { %2880 = vmatprep.subr.bf16.mxu0 %v3332_v8  ;;  %s2565_s20 = sshll.u32 %s3525_s8, 4  ;;  %s2566_s20 = int_to_ptr.vmem [resolvable:$true] %s2565_s20 }
 0x233   :  { %s3484_s21 = scalar_lea.vmem %s2566_s20, 128  ;;  %p3489_p3 = scmp.lt.s32.totalorder %s2566_s20, %s2566_s20 }
 0x234   :  { %2157 = vmatpush1.bf16.msra.mxu1 %v3286_v2  ;;  %p3485_p2 = scmp.ne.s32.totalorder %s2566_s20, %s3484_s21  ;;  %p3490_p4 = scmp.lt.s32.totalorder %s3484_s21, %s3484_s21 }
 0x235   :  { %2158 = vmatprep.subr.bf16.mxu1 %v3291_v3  ;;  %2881 = vmatpush3.bf16.msra.mxu0 %v3333_v13  ;;  %v3358_v3 = vld [vmem:[#allocation11 + $0xc0] sm:$0xff]  }
 0x236   :  { %2882 = vmatprep.subr.bf16.mxu0 %v3334_v19  ;;  %p3491_p5 = por %p3490_p4, %p3489_p3 }
 0x238   :  { %2159 = vmatpush1.bf16.msra.mxu1 %v3289_v7  ;;  %v1372_v7 = vrot.slane %v1367_v6, %v3604_v14  ;;  %v1380_v14 = vrot.slane %v1367_v6, %v3606_v15  ;;  %p3492_p6 = pnand %p3491_p5, %p3485_p2 }
 0x239   :  { %2160 = vmatprep.subr.bf16.mxu1 %v3294_v10  ;;  %2883 = vmatpush3.bf16.msra.mxu0 %v3335_v21 }
 0x23a   :  { %2884 = vmatprep.subr.bf16.mxu0 %v3336_v23 }
 0x23c   :  { %2161 = vmatpush1.bf16.msra.mxu1 %v3292_v11 }
 0x23d   :  { %2162 = vmatprep.subr.bf16.mxu1 %v3297_v16  ;;  %2885 = vmatpush3.bf16.msra.mxu0 %v3337_v25 }
 0x23e   :  { %2886 = vmatprep.subr.bf16.mxu0 %v3338_v27 }
 0x240   :  { %2163 = vmatpush1.bf16.msra.mxu1 %v3295_v20 }
 0x241   :  { %2164 = vmatprep.subr.bf16.mxu1 %v3300_v22  ;;  %2887 = vmatpush3.bf16.msra.mxu0 %v3339_v29 }
 0x242   :  { %2888 = vmatprep.subr.bf16.mxu0 %v3340_v48 }
 0x244   :  { %2165 = vmatpush1.bf16.msra.mxu1 %v3298_v24 }
 0x245   :  { %2166 = vmatprep.subr.bf16.mxu1 %v3303_v26  ;;  %2889 = vmatpush3.bf16.msra.mxu0 %v3341_v49 }
 0x246   :  { %2890 = vmatprep.subr.bf16.mxu0 %v3342_v50  ;;  %v2546_v50 = vand.u32 127, %v123_v12 }
 0x248   :  { %2167 = vmatpush1.bf16.msra.mxu1 %v3301_v28  ;;  %vm2547_vm1 = vcmp.lt.s32.totalorder %v2546_v50, 10 }
 0x249   :  { %2168 = vmatprep.subr.bf16.mxu1 %v3306_v30  ;;  %2891 = vmatpush3.bf16.msra.mxu0 %v3343_v51 }
 0x24c   :  { %2169 = vmatpush2.bf16.msra.mxu1 %v3304_v31 }
 0x24d   :  { %2170 = vmatprep.subr.bf16.mxu1 %v3309_v32 }
 0x250   :  { %2171 = vmatpush2.bf16.msra.mxu1 %v3307_v33 }
 0x251   :  { %2172 = vmatprep.subr.bf16.mxu1 %v3312_v34 }
 0x254   :  { %2173 = vmatpush2.bf16.msra.mxu1 %v3310_v35 }
 0x255   :  { %2174 = vmatprep.subr.bf16.mxu1 %v3315_v36 }
 0x258   :  { %2175 = vmatpush2.bf16.msra.mxu1 %v3313_v38 }
 0x259   :  { %2176 = vmatprep.subr.bf16.mxu1 %v3318_v39 }
 0x25c   :  { %2177 = vmatpush2.bf16.msra.mxu1 %v3316_v40 }
 0x25d   :  { %2178 = vmatprep.subr.bf16.mxu1 %v3321_v41 }
 0x260   :  { %2179 = vmatpush2.bf16.msra.mxu1 %v3319_v42 }
 0x261   :  { %2180 = vmatprep.subr.bf16.mxu1 %v3324_v43 }
 0x264   :  { %2181 = vmatpush2.bf16.msra.mxu1 %v3322_v45 }
 0x265   :  { %2182 = vmatprep.subr.bf16.mxu1 %v3327_v46 }
 0x268   :  { %2183 = vmatpush2.bf16.msra.mxu1 %v3325_v47 }
 0x269   :  { %2898 = vmatprep.subr.bf16.mxu1 %v3344_v52 }
 0x26b   :  { %2185 = vmatmul.mubr.bf16.vlgmr.msra.gmra.mxu1 %v3640_v62 }
 0x26c   :  { %2899 = vmatpush3.bf16.msra.mxu1 %v3345_v53 }
 0x26d   :  { %2900 = vmatprep.subr.bf16.mxu1 %v3346_v54 }
 0x270   :  { %2901 = vmatpush3.bf16.msra.mxu1 %v3347_v56 }
 0x271   :  { %2902 = vmatprep.subr.bf16.mxu1 %v3348_v57 }
 0x274   :  { %2903 = vmatpush3.bf16.msra.mxu1 %v3349_v58 }
 0x275   :  { %2904 = vmatprep.subr.bf16.mxu1 %v3350_v44 }
 0x278   :  { %2905 = vmatpush3.bf16.msra.mxu1 %v3351_v59 }
 0x279   :  { %2906 = vmatprep.subr.bf16.mxu1 %v3352_v37 }
 0x27c   :  { %2907 = vmatpush3.bf16.msra.mxu1 %v3353_v55 }
 0x27d   :  { %2908 = vmatprep.subr.bf16.mxu1 %v3354_v60 }
 0x280   :  { %2909 = vmatpush3.bf16.msra.mxu1 %v3355_v61 }
 0x281   :  { %2910 = vmatprep.subr.bf16.mxu1 %v3356_v63 }
 0x284   :  { %2911 = vmatpush3.bf16.msra.mxu1 %v3357_v0 }
 0x285   :  { %2912 = vmatprep.subr.bf16.mxu1 %v3358_v3 }
 0x288   :  { %2913 = vmatpush3.bf16.msra.mxu1 %v3359_v4 }
 0x2ab   :  { %v2063_v62 = vpop.f32.mrf.mxu0 }
 0x2ac   :  { %v2064_v10 = vadd.f32 %v2063_v62, %v1372_v7 }
 0x2ad   :  { %v2065_v1 = vpop.f32.mrf.mxu0 }
 0x2ae   :  { %v2066_v13 = vadd.f32 %v2065_v1, %v1376_v9 }
 0x2af   :  { %v2067_v2 = vpop.f32.mrf.mxu0 }
 0x2b1   :  { %v2068_v5 = vpop.f32.mrf.mxu0 }
 0x2eb   :  { %v2104_v8 = vpop.f32.mrf.mxu1  ;;  %v2145_v11 = vpop.f32.mrf.mxu0 }
 0x2ec   :  { %v2105_v16 = vadd.f32 %v2104_v8, %v2064_v10  ;;  %v2146_v30 = vadd.f32 %v2145_v11, %v1380_v14 }
 0x2ed   :  { %v2106_v19 = vpop.f32.mrf.mxu1  ;;  %v2147_v20 = vpop.f32.mrf.mxu0 }
 0x2ee   :  { %v2107_v21 = vadd.f32 %v2106_v19, %v2066_v13  ;;  %v2193_v22 = vmax.f32 %v2105_v16, 0.0  ;;  %v2148_v32 = vadd.f32 %v2147_v20, %v1384_v17 }
 0x2ef   :  { %v2108_v23 = vpop.f32.mrf.mxu1  ;;  %v2149_v24 = vpop.f32.mrf.mxu0 }
 0x2f0   :  { %v2194_v25 = vmax.f32 %v2107_v21, 0.0  ;;  %v2197_v29 = vpack.c.bf16 %v2193_v22, %v2193_v22 }
 0x2f1   :  { %v2109_v26 = vpop.f32.mrf.mxu1  ;;  %v2150_v27 = vpop.f32.mrf.mxu0 }
 0x2f2   :  { %v2198_v28 = vpack.c.bf16 %v2194_v25, %v2194_v25 }
 0x2f4   :  { %2496 = vmatprep.mubr.bf16.mxu0 %v2198_v28 }
 0x2f5   :  { %2497 = vmatmul.mubr.bf16.vlgmr.msra.gmra.mxu0 %v2197_v29 }
 0x32b   :  { %v2186_v31 = vpop.f32.mrf.mxu1 }
 0x32c   :  { %v2187_v33 = vadd.f32 %v2186_v31, %v2146_v30 }
 0x32d   :  { %v2188_v34 = vpop.f32.mrf.mxu1 }
 0x32e   :  { %v2189_v35 = vadd.f32 %v2188_v34, %v2148_v32  ;;  %v2195_v36 = vmax.f32 %v2187_v33, 0.0 }
 0x32f   :  { %v2190_v38 = vpop.f32.mrf.mxu1 }
 0x330   :  { %v2196_v39 = vmax.f32 %v2189_v35, 0.0  ;;  %v2199_v42 = vpack.c.bf16 %v2195_v36, %v2195_v36 }
 0x331   :  { %v2191_v40 = vpop.f32.mrf.mxu1 }
 0x332   :  { %v2200_v41 = vpack.c.bf16 %v2196_v39, %v2196_v39 }
 0x334   :  { %2536 = vmatprep.mubr.bf16.mxu1 %v2200_v41 }
 0x335   :  { %2537 = vmatmul.mubr.bf16.vlgmr.msra.gmra.mxu1 %v2199_v42 }
 0x3b5   :  { %v2892_v43 = vpop.f32.mrf.mxu0 }
 0x3b7   :  { %v2893_v45 = vpop.f32.mrf.mxu0 }
 0x3b8   :  { %v2894_v47 = vadd.f32 %v2893_v45, %v2892_v43 }
 0x3b9   :  { %v2895_v46 = vpop.f32.mrf.mxu0 }
 0x3ba   :  { %v2499_v51 = vadd.f32 %v2894_v47, %v2843_v18 }
 0x3bb   :  { %v2896_v15 = vpop.f32.mrf.mxu0 }
 0x3f5   :  { %v2914_v48 = vpop.f32.mrf.mxu1 }
 0x3f7   :  { %v2915_v49 = vpop.f32.mrf.mxu1 }
 0x3f8   :  { %v2916_v52 = vadd.f32 %v2915_v49, %v2914_v48 }
 0x3f9   :  { %v2917_v53 = vpop.f32.mrf.mxu1 }
 0x3fa   :  { %v2539_v54 = vadd.f32 %v2916_v52, %v2499_v51 }
 0x3fb   :  { %v2918_v56 = vpop.f32.mrf.mxu1 }
 0x3fc   :  { %v2544_v57 = vmax.f32 %v2539_v54, 0.0 }
 0x3fe   :  { %v2548_v58 = vsel %vm2547_vm1, %v2544_v57, -inf }
 0x3ff   :  { %2549 = vmax.xlane.f32.xlu0 %v2548_v58 }
 0x488   :  { %v2550_v44 = vpop.xlane.xlu0 %2549 }
 0x489   :  { %v2551_v59 = vsub.f32 %v2548_v58, %v2550_v44 }
 0x48b   :  { %v2552_v37 = vmul.f32 1.442695, %v2551_v59 }
 0x48d   :  { %3360 = vpow2.f32 %v2552_v37 }
 0x49a   :  { %v3361_v55 = vpop.eup %3360 }
 0x49b   :  { %2554 = vadd.xlane.f32.xlu0 %v3361_v55 }
 0x524   :  { %v2555_v60 = vpop.xlane.xlu0 %2554 }
 0x525   :  { %3362 = vrcp.f32 %v2555_v60 }
 0x532   :  { %v3363_v12 = vpop.eup %3362 }
 0x533   :  { %v2557_v61 = vmul.f32 %v3363_v12, %v3361_v55 }
 0x535   :  { %2558 = vst [vmem:[#allocation13] sm:$0xff] %v2557_v61 }
 0x536   :  { %3495 = shalt.err (!%p3492_p6)
}
 0x537   :  { %2568 = dma.vmem_to_hbm [thread:$0]  %s2566_s20, 128, %s3668_s9, [#allocation4]  }
 0x538   :  { %3512 = dma.done.wait [#allocation4], 128  }
 0x539   :  { %3513 = vsyncadd [#allocation4], 4294967168 }
 0x53a   :  { %2572 = vsyncpa [#allocation3], 1 }
 0x53b   :  { %2573 = vsyncpa [#allocation6], 1 }
 0x53c   :  { %2574 = vsyncpa [#allocation9], 1 }
 0x53d   :  { %2575 = vsyncpa [#allocation12], 1 }
 0x53e   :  { %2576 = vsyncpa [#allocation4], 1 }

// kernel: tpu_custom_call.1
= control target key start
LH: loop header
LB: loop body
LE: loop exit
PB: predicated region body
PF: predicated region fallthrough
CT: control target
= control target key end

     0   :  { %14 = vsyncpa [#allocation3], 0  ;;  %s3659_s0 = inlined_call_operand.hbm [shape: bf16[8,32], index: 0, kind: input, shape index: {}]   ;;  %s3660_s1 = inlined_call_operand.hbm [shape: bf16[32,512], index: 1, kind: input, shape index: {}]   ;;  %s3661_s2 = inlined_call_operand.hbm [shape: f32[1,512], index: 2, kind: input, shape index: {}]   ;;  %s3662_s3 = inlined_call_operand.hbm [shape: bf16[512,512], index: 3, kind: input, shape index: {}]   ;;  %s3663_s4 = inlined_call_operand.vmem [shape: f32[1,512], index: 4, kind: input, shape index: {}]   ;;  %s3664_s5 = inlined_call_operand.hbm [shape: bf16[512,512], index: 5, kind: input, shape index: {}]   ;;  %s3665_s6 = inlined_call_operand.vmem [shape: f32[1,512], index: 6, kind: input, shape index: {}]   ;;  %s3666_s7 = inlined_call_operand.hbm [shape: bf16[512,128], index: 7, kind: input, shape index: {}]   ;;  %s3667_s8 = inlined_call_operand.vmem [shape: f32[1,128], index: 8, kind: input, shape index: {}]   ;;  %s3668_s9 = inlined_call_operand.hbm [shape: f32[8,128], index: 9, kind: output, shape index: {}]  }
   0x1   :  { %15 = vsyncpa [#allocation6], 0 }
   0x2   :  { %16 = vsyncpa [#allocation9], 0 }
   0x3   :  { %17 = vsyncpa [#allocation12], 0 }
   0x4   :  { %18 = vsyncpa [#allocation4], 0  ;;  %s3514_s30 = smov [#allocation5]  }
   0x5   :  { %s34_s10 = sshll.u32 %s3514_s30, 4  ;;  %s35_s10 = int_to_ptr.vmem [resolvable:$true] %s34_s10 }
   0x6   :  { %s3372_s11 = scalar_lea.vmem %s35_s10, 1024  ;;  %p3377_p1 = scmp.lt.s32.totalorder %s35_s10, %s35_s10 }
   0x7   :  { %p3373_p0 = scmp.ne.s32.totalorder %s35_s10, %s3372_s11  ;;  %p3378_p2 = scmp.lt.s32.totalorder %s3372_s11, %s3372_s11 }
   0x9   :  { %p3379_p3 = por %p3378_p2, %p3377_p1 }
   0xb   :  { %p3380_p4 = pnand %p3379_p3, %p3373_p0 }
   0xd   :  { %3383 = shalt.err (!%p3380_p4)
}
   0xe   :  { %s3515_s12 = smov 256   ;;  %s3516_s13 = smov 16  }
   0xf   :  { %40 = dma.hbm_to_vmem [thread:$0]  %s3660_s1, 1024, %s35_s10, [#allocation6], %s3515_s12, %s3515_s12, %s3516_s13  }
  0x10   :  { %s3517_s16 = smov [#allocation8]   ;;  %s3518_s18 = smov [#allocation2]  }
  0x11   :  { %s56_s17 = sshll.u32 %s3517_s16, 4  ;;  %s25_s19 = sshll.u32 %s3518_s18, 4  ;;  %s57_s17 = int_to_ptr.vmem [resolvable:$true] %s56_s17  ;;  %s26_s19 = int_to_ptr.vmem [resolvable:$true] %s25_s19 }
  0x12   :  { %s3392_s20 = scalar_lea.vmem %s57_s17, 16384  ;;  %p3397_p6 = scmp.lt.s32.totalorder %s57_s17, %s57_s17 }
  0x13   :  { %p3393_p5 = scmp.ne.s32.totalorder %s57_s17, %s3392_s20  ;;  %p3398_p7 = scmp.lt.s32.totalorder %s3392_s20, %s3392_s20 }
  0x15   :  { %p3399_p8 = por %p3398_p7, %p3397_p6 }
  0x17   :  { %p3400_p9 = pnand %p3399_p8, %p3393_p5 }
  0x19   :  { %3403 = shalt.err (!%p3400_p9)
}
  0x1a   :  { %62 = dma.hbm_to_vmem [thread:$0]  %s3662_s3, 16384, %s57_s17, [#allocation9], %s3515_s12, %s3515_s12, %s3516_s13  }
  0x1b   :  { %s3412_s1 = scalar_lea.vmem %s26_s19, 64  ;;  %p3417_p11 = scmp.lt.s32.totalorder %s26_s19, %s26_s19 }
  0x1c   :  { %p3413_p10 = scmp.ne.s32.totalorder %s26_s19, %s3412_s1  ;;  %p3418_p12 = scmp.lt.s32.totalorder %s3412_s1, %s3412_s1 }
  0x1e   :  { %p3419_p13 = por %p3418_p12, %p3417_p11 }
  0x20   :  { %p3420_p0 = pnand %p3419_p13, %p3413_p10 }
  0x22   :  { %3423 = shalt.err (!%p3420_p0)
}
  0x23   :  { %28 = dma.hbm_to_vmem [thread:$0]  %s3659_s0, 64, %s26_s19, [#allocation3]  }
  0x24   :  { %s3519_s25 = smov [#allocation7]   ;;  %s3520_s27 = smov [#allocation10]  }
  0x25   :  { %s47_s26 = sshll.u32 %s3519_s25, 4  ;;  %s70_s28 = sshll.u32 %s3520_s27, 4  ;;  %s48_s26 = int_to_ptr.vmem [resolvable:$true] %s47_s26  ;;  %s71_s28 = int_to_ptr.vmem [resolvable:$true] %s70_s28 }
  0x26   :  { %s3432_s29 = scalar_lea.vmem %s48_s26, 64  ;;  %p3437_p2 = scmp.lt.s32.totalorder %s48_s26, %s48_s26 }
  0x27   :  { %p3433_p1 = scmp.ne.s32.totalorder %s48_s26, %s3432_s29  ;;  %p3438_p3 = scmp.lt.s32.totalorder %s3432_s29, %s3432_s29 }
  0x29   :  { %p3439_p4 = por %p3438_p3, %p3437_p2 }
  0x2b   :  { %p3440_p5 = pnand %p3439_p4, %p3433_p1 }
  0x2d   :  { %3443 = shalt.err (!%p3440_p5)
}
  0x2e   :  { %50 = dma.hbm_to_vmem [thread:$0]  %s3661_s2, 64, %s48_s26, [#allocation6]  }
  0x2f   :  { %s3452_s10 = scalar_lea.vmem %s71_s28, 16384  ;;  %p3457_p7 = scmp.lt.s32.totalorder %s71_s28, %s71_s28 }
  0x30   :  { %p3453_p6 = scmp.ne.s32.totalorder %s71_s28, %s3452_s10  ;;  %p3458_p8 = scmp.lt.s32.totalorder %s3452_s10, %s3452_s10 }
  0x32   :  { %p3459_p9 = por %p3458_p8, %p3457_p7 }
  0x34   :  { %p3460_p10 = pnand %p3459_p9, %p3453_p6 }
  0x36   :  { %3463 = shalt.err (!%p3460_p10)
}
  0x37   :  { %76 = dma.hbm_to_vmem [thread:$0]  %s3664_s5, 16384, %s71_s28, [#allocation9], %s3515_s12, %s3515_s12, %s3516_s13  }
  0x38   :  { %s3521_s14 = smov [#allocation11]  }
  0x39   :  { %s84_s15 = sshll.u32 %s3521_s14, 4  ;;  %s85_s15 = int_to_ptr.vmem [resolvable:$true] %s84_s15 }
  0x3a   :  { %s3472_s16 = scalar_lea.vmem %s85_s15, 4096  ;;  %p3477_p12 = scmp.lt.s32.totalorder %s85_s15, %s85_s15 }
  0x3b   :  { %p3473_p11 = scmp.ne.s32.totalorder %s85_s15, %s3472_s16  ;;  %p3478_p13 = scmp.lt.s32.totalorder %s3472_s16, %s3472_s16 }
  0x3d   :  { %p3479_p0 = por %p3478_p13, %p3477_p12 }
  0x3f   :  { %p3480_p1 = pnand %p3479_p0, %p3473_p11 }
  0x41   :  { %3483 = shalt.err (!%p3480_p1)
}
  0x42   :  { %s3522_s2 = smov 64   ;;  %s3523_s17 = smov 4  }
  0x43   :  { %90 = dma.hbm_to_vmem [thread:$0]  %s3666_s7, 4096, %s85_s15, [#allocation12], %s3522_s2, %s3522_s2, %s3523_s17  }
  0x44   :  { %3504 = dma.done.wait [#allocation3], 64  }
  0x45   :  { %3505 = vsyncadd [#allocation3], 4294967232 }
  0x46   :  { %3506 = dma.done.wait [#allocation6], 1088  }
  0x47   :  { %3507 = vsyncadd [#allocation6], 4294966208 }
  0x48   :  { %3508 = dma.done.wait [#allocation9], 32768  }
  0x49   :  { %3509 = vsyncadd [#allocation9], 4294934528 }
  0x4a   :  { %3510 = dma.done.wait [#allocation12], 4096  }
  0x4b   :  { %3511 = vsyncadd [#allocation12], 4294963200  ;;  %v3524_v0 = vmov 0   ;;  %v2932_v1 = vld [vmem:[#allocation5 + $0x24] ss:$16 sps:$4 sm:$0xff]   ;;  %vm183_vm0 = vcmask 261120  }
  0x4c   :  { %219 = vmatprep.mubr.bf16.mxu0 %v3524_v0  ;;  %260 = vmatprep.mubr.bf16.mxu1 %v3524_v0  ;;  %v2934_v2 = vld [vmem:[#allocation5 + $0x2c] ss:$16 sps:$4 sm:$0xff]   ;;  %v2936_v3 = vld [vmem:[#allocation5 + $0x20] ss:$16 sps:$4 sm:$0xff]   ;;  %v2937_v4 = vld [vmem:[#allocation5 + $0x28] ss:$16 sps:$4 sm:$0xff]  }
  0x4d   :  { %199 = vmatprep.subr.bf16.mxu0 %v2932_v1  ;;  %240 = vmatprep.subr.bf16.mxu1 %v2934_v2  ;;  %v2938_v5 = vld [vmem:[#allocation5 + $0x4] ss:$16 sps:$4 sm:$0xff]   ;;  %v2940_v6 = vld [vmem:[#allocation5 + $0xc] ss:$16 sps:$4 sm:$0xff]   ;;  %v2942_v7 = vld [vmem:[#allocation5] ss:$16 sps:$4 sm:$0xff]  }
  0x4e   :  { %200 = vmatpush1.bf16.msra.mxu0 %v2936_v3  ;;  %241 = vmatpush1.bf16.msra.mxu1 %v2937_v4  ;;  %v2943_v8 = vld [vmem:[#allocation5 + $0x8] ss:$16 sps:$4 sm:$0xff]   ;;  %v112_v9 = vld [vmem:[#allocation2] sm:$0xf]  ;;  %v2944_v10 = vld [vmem:[#allocation8 + $0xe0] ss:$16 sps:$4 sm:$0xff]  }
  0x4f   :  { %201 = vmatprep.subr.bf16.mxu0 %v2938_v5  ;;  %242 = vmatprep.subr.bf16.mxu1 %v2940_v6  ;;  %v2946_v11 = vld [vmem:[#allocation8 + $0xe4] ss:$16 sps:$4 sm:$0xff]   ;;  %v2947_v12 = vld [vmem:[#allocation8 + $0x2e0] ss:$16 sps:$4 sm:$0xff]  }
  0x50   :  { %v2949_v13 = vld [vmem:[#allocation8 + $0x2e4] ss:$16 sps:$4 sm:$0xff]   ;;  %v2950_v16 = vld [vmem:[#allocation8 + $0xc0] ss:$16 sps:$4 sm:$0xff]  }
  0x51   :  { %v2952_v14 = vld [vmem:[#allocation8 + $0xc4] ss:$16 sps:$4 sm:$0xff]   ;;  %v2953_v17 = vld [vmem:[#allocation8 + $0x2c0] ss:$16 sps:$4 sm:$0xff]  }
  0x52   :  { %202 = vmatpush1.bf16.msra.mxu0 %v2942_v7  ;;  %243 = vmatpush1.bf16.msra.mxu1 %v2943_v8  ;;  %v2955_v15 = vld [vmem:[#allocation8 + $0x2c4] ss:$16 sps:$4 sm:$0xff]   ;;  %v2956_v20 = vld [vmem:[#allocation8 + $0xa0] ss:$16 sps:$4 sm:$0xff]  }
  0x53   :  { %1067 = vmatprep.subr.bf16.mxu0 %v2946_v11  ;;  %1108 = vmatprep.subr.bf16.mxu1 %v2949_v13  ;;  %v2958_v18 = vld [vmem:[#allocation8 + $0xa4] ss:$16 sps:$4 sm:$0xff]   ;;  %v2959_v21 = vld [vmem:[#allocation8 + $0x2a0] ss:$16 sps:$4 sm:$0xff]   ;;  %v3045_v11 = vld [vmem:[#allocation8 + $0x2ec] ss:$16 sps:$4 sm:$0xff]  }
  0x54   :  { %v2961_v19 = vld [vmem:[#allocation8 + $0x2a4] ss:$16 sps:$4 sm:$0xff]   ;;  %v2962_v24 = vld [vmem:[#allocation8 + $0x80] ss:$16 sps:$4 sm:$0xff]  }
  0x55   :  { %2585 = vmatmul.mubr.msk.bf16.vlgmr.msra.gmra.mxu0 %vm183_vm0, %v112_v9  ;;  %2586 = vmatmul.mubr.msk.bf16.vlgmr.msra.gmra.mxu1 %vm183_vm0, %v112_v9  ;;  %v2964_v22 = vld [vmem:[#allocation8 + $0x84] ss:$16 sps:$4 sm:$0xff]   ;;  %v2965_v25 = vld [vmem:[#allocation8 + $0x280] ss:$16 sps:$4 sm:$0xff]  }
  0x56   :  { %1068 = vmatpush1.bf16.msra.mxu0 %v2944_v10  ;;  %1109 = vmatpush1.bf16.msra.mxu1 %v2947_v12  ;;  %v2967_v23 = vld [vmem:[#allocation8 + $0x284] ss:$16 sps:$4 sm:$0xff]   ;;  %v2968_v28 = vld [vmem:[#allocation8 + $0x60] ss:$16 sps:$4 sm:$0xff]   ;;  %v3042_v10 = vld [vmem:[#allocation8 + $0xec] ss:$16 sps:$4 sm:$0xff]   ;;  %v123_v12 = vlaneseq }
  0x57   :  { %1069 = vmatprep.subr.bf16.mxu0 %v2952_v14  ;;  %1110 = vmatprep.subr.bf16.mxu1 %v2955_v15  ;;  %v2970_v26 = vld [vmem:[#allocation8 + $0x64] ss:$16 sps:$4 sm:$0xff]   ;;  %v2971_v29 = vld [vmem:[#allocation8 + $0x260] ss:$16 sps:$4 sm:$0xff]  }
  0x58   :  { %v2973_v27 = vld [vmem:[#allocation8 + $0x264] ss:$16 sps:$4 sm:$0xff]   ;;  %v2974_v32 = vld [vmem:[#allocation8 + $0x40] ss:$16 sps:$4 sm:$0xff]   ;;  %v124_v13 = vshrl.u32 %v123_v12, 7 }
  0x59   :  { %v2976_v30 = vld [vmem:[#allocation8 + $0x44] ss:$16 sps:$4 sm:$0xff]   ;;  %v2977_v33 = vld [vmem:[#allocation8 + $0x240] ss:$16 sps:$4 sm:$0xff]  }
  0x5a   :  { %1070 = vmatpush1.bf16.msra.mxu0 %v2950_v16  ;;  %1111 = vmatpush1.bf16.msra.mxu1 %v2953_v17  ;;  %v2979_v31 = vld [vmem:[#allocation8 + $0x244] ss:$16 sps:$4 sm:$0xff]   ;;  %v2980_v36 = vld [vmem:[#allocation8 + $0x20] ss:$16 sps:$4 sm:$0xff]   ;;  %v3604_v14 = vsub.s32 0, %v124_v13  ;;  %v3606_v15 = vsub.s32 2, %v124_v13 }
  0x5b   :  { %1071 = vmatprep.subr.bf16.mxu0 %v2958_v18  ;;  %1112 = vmatprep.subr.bf16.mxu1 %v2961_v19  ;;  %v2982_v34 = vld [vmem:[#allocation8 + $0x24] ss:$16 sps:$4 sm:$0xff]   ;;  %v2983_v37 = vld [vmem:[#allocation8 + $0x220] ss:$16 sps:$4 sm:$0xff]   ;;  %v121_v16 = vld [vmem:[#allocation7] sm:$0xf] }
  0x5c   :  { %v2985_v35 = vld [vmem:[#allocation8 + $0x224] ss:$16 sps:$4 sm:$0xff]   ;;  %v2986_v40 = vld [vmem:[#allocation8] ss:$16 sps:$4 sm:$0xff]   ;;  %v3608_v17 = vsub.s32 1, %v124_v13  ;;  %v3610_v18 = vsub.s32 3, %v124_v13  ;;  %v126_v19 = vrot.slane %v121_v16, %v3604_v14 }
  0x5d   :  { %v2988_v38 = vld [vmem:[#allocation8 + $0x4] ss:$16 sps:$4 sm:$0xff]   ;;  %v2989_v41 = vld [vmem:[#allocation8 + $0x200] ss:$16 sps:$4 sm:$0xff]   ;;  %v3091_v13 = vld [vmem:[#allocation8 + $0x3e8] ss:$16 sps:$4 sm:$0xff]  }
  0x5e   :  { %1072 = vmatpush1.bf16.msra.mxu0 %v2956_v20  ;;  %1113 = vmatpush1.bf16.msra.mxu1 %v2959_v21  ;;  %v2991_v39 = vld [vmem:[#allocation8 + $0x204] ss:$16 sps:$4 sm:$0xff]   ;;  %v2992_v44 = vld [vmem:[#allocation8 + $0x1e0] ss:$16 sps:$4 sm:$0xff]   ;;  %v134_v20 = vrot.slane %v121_v16, %v3606_v15  ;;  %v130_v21 = vrot.slane %v121_v16, %v3608_v17 }
  0x5f   :  { %1073 = vmatprep.subr.bf16.mxu0 %v2964_v22  ;;  %1114 = vmatprep.subr.bf16.mxu1 %v2967_v23  ;;  %v2994_v42 = vld [vmem:[#allocation8 + $0x1e4] ss:$16 sps:$4 sm:$0xff]   ;;  %v2995_v45 = vld [vmem:[#allocation8 + $0x3e0] ss:$16 sps:$4 sm:$0xff]   ;;  %v138_v22 = vrot.slane %v121_v16, %v3610_v18  ;;  %v3096_v16 = vld [vmem:[#allocation8 + $0x1cc] ss:$16 sps:$4 sm:$0xff]  }
  0x60   :  { %v2997_v43 = vld [vmem:[#allocation8 + $0x3e4] ss:$16 sps:$4 sm:$0xff]   ;;  %v2998_v48 = vld [vmem:[#allocation8 + $0x1c0] ss:$16 sps:$4 sm:$0xff]  }
  0x61   :  { %v3000_v46 = vld [vmem:[#allocation8 + $0x1c4] ss:$16 sps:$4 sm:$0xff]   ;;  %v3001_v49 = vld [vmem:[#allocation8 + $0x3c0] ss:$16 sps:$4 sm:$0xff]  }
  0x62   :  { %1074 = vmatpush1.bf16.msra.mxu0 %v2962_v24  ;;  %1115 = vmatpush1.bf16.msra.mxu1 %v2965_v25  ;;  %v3003_v47 = vld [vmem:[#allocation8 + $0x3c4] ss:$16 sps:$4 sm:$0xff]   ;;  %v3004_v52 = vld [vmem:[#allocation8 + $0x1a0] ss:$16 sps:$4 sm:$0xff]  }
  0x63   :  { %1075 = vmatprep.subr.bf16.mxu0 %v2970_v26  ;;  %1116 = vmatprep.subr.bf16.mxu1 %v2973_v27  ;;  %v3006_v50 = vld [vmem:[#allocation8 + $0x1a4] ss:$16 sps:$4 sm:$0xff]   ;;  %v3007_v53 = vld [vmem:[#allocation8 + $0x3a0] ss:$16 sps:$4 sm:$0xff]  }
  0x64   :  { %v3009_v51 = vld [vmem:[#allocation8 + $0x3a4] ss:$16 sps:$4 sm:$0xff]   ;;  %v3010_v56 = vld [vmem:[#allocation8 + $0x180] ss:$16 sps:$4 sm:$0xff]  }
  0x65   :  { %v3012_v54 = vld [vmem:[#allocation8 + $0x184] ss:$16 sps:$4 sm:$0xff]   ;;  %v3013_v57 = vld [vmem:[#allocation8 + $0x380] ss:$16 sps:$4 sm:$0xff]  }
  0x66   :  { %1076 = vmatpush1.bf16.msra.mxu0 %v2968_v28  ;;  %1117 = vmatpush1.bf16.msra.mxu1 %v2971_v29  ;;  %v3015_v55 = vld [vmem:[#allocation8 + $0x384] ss:$16 sps:$4 sm:$0xff]   ;;  %v3016_v60 = vld [vmem:[#allocation8 + $0x160] ss:$16 sps:$4 sm:$0xff]  }
  0x67   :  { %1077 = vmatprep.subr.bf16.mxu0 %v2976_v30  ;;  %1118 = vmatprep.subr.bf16.mxu1 %v2979_v31  ;;  %v3018_v58 = vld [vmem:[#allocation8 + $0x164] ss:$16 sps:$4 sm:$0xff]   ;;  %v3019_v61 = vld [vmem:[#allocation8 + $0x360] ss:$16 sps:$4 sm:$0xff]  }
  0x68   :  { %v3021_v59 = vld [vmem:[#allocation8 + $0x364] ss:$16 sps:$4 sm:$0xff]   ;;  %v3022_v0 = vld [vmem:[#allocation8 + $0x140] ss:$16 sps:$4 sm:$0xff]  }
  0x69   :  { %v3024_v62 = vld [vmem:[#allocation8 + $0x144] ss:$16 sps:$4 sm:$0xff]   ;;  %v3025_v1 = vld [vmem:[#allocation8 + $0x340] ss:$16 sps:$4 sm:$0xff]  }
  0x6a   :  { %1078 = vmatpush1.bf16.msra.mxu0 %v2974_v32  ;;  %1119 = vmatpush1.bf16.msra.mxu1 %v2977_v33  ;;  %v3027_v63 = vld [vmem:[#allocation8 + $0x344] ss:$16 sps:$4 sm:$0xff]   ;;  %v3028_v4 = vld [vmem:[#allocation8 + $0x120] ss:$16 sps:$4 sm:$0xff]  }
  0x6b   :  { %1079 = vmatprep.subr.bf16.mxu0 %v2982_v34  ;;  %1120 = vmatprep.subr.bf16.mxu1 %v2985_v35  ;;  %v3030_v2 = vld [vmem:[#allocation8 + $0x124] ss:$16 sps:$4 sm:$0xff]   ;;  %v3031_v5 = vld [vmem:[#allocation8 + $0x320] ss:$16 sps:$4 sm:$0xff]  }
  0x6c   :  { %v3033_v3 = vld [vmem:[#allocation8 + $0x324] ss:$16 sps:$4 sm:$0xff]   ;;  %v3034_v8 = vld [vmem:[#allocation8 + $0x100] ss:$16 sps:$4 sm:$0xff]  }
  0x6d   :  { %v3036_v6 = vld [vmem:[#allocation8 + $0x104] ss:$16 sps:$4 sm:$0xff]   ;;  %v3037_v9 = vld [vmem:[#allocation8 + $0x300] ss:$16 sps:$4 sm:$0xff]  }
  0x6e   :  { %1080 = vmatpush1.bf16.msra.mxu0 %v2980_v36  ;;  %1121 = vmatpush1.bf16.msra.mxu1 %v2983_v37  ;;  %v3039_v7 = vld [vmem:[#allocation8 + $0x304] ss:$16 sps:$4 sm:$0xff]  }
  0x6f   :  { %1081 = vmatprep.subr.bf16.mxu0 %v2988_v38  ;;  %1122 = vmatprep.subr.bf16.mxu1 %v2991_v39 }
  0x72   :  { %1082 = vmatpush1.bf16.msra.mxu0 %v2986_v40  ;;  %1123 = vmatpush1.bf16.msra.mxu1 %v2989_v41 }
  0x73   :  { %1083 = vmatprep.subr.bf16.mxu0 %v2994_v42  ;;  %1124 = vmatprep.subr.bf16.mxu1 %v2997_v43  ;;  %v3040_v42 = vld [vmem:[#allocation8 + $0xe8] ss:$16 sps:$4 sm:$0xff]  }
  0x74   :  { %v3043_v43 = vld [vmem:[#allocation8 + $0x2e8] ss:$16 sps:$4 sm:$0xff]  }
  0x76   :  { %1084 = vmatpush2.bf16.msra.mxu0 %v2992_v44  ;;  %1125 = vmatpush2.bf16.msra.mxu1 %v2995_v45  ;;  %v3048_v45 = vld [vmem:[#allocation8 + $0xcc] ss:$16 sps:$4 sm:$0xff]  }
  0x77   :  { %1085 = vmatprep.subr.bf16.mxu0 %v3000_v46  ;;  %1126 = vmatprep.subr.bf16.mxu1 %v3003_v47  ;;  %v3051_v46 = vld [vmem:[#allocation8 + $0x2cc] ss:$16 sps:$4 sm:$0xff]   ;;  %v3046_v47 = vld [vmem:[#allocation8 + $0xc8] ss:$16 sps:$4 sm:$0xff]  }
  0x7a   :  { %1086 = vmatpush2.bf16.msra.mxu0 %v2998_v48  ;;  %1127 = vmatpush2.bf16.msra.mxu1 %v3001_v49  ;;  %v3049_v48 = vld [vmem:[#allocation8 + $0x2c8] ss:$16 sps:$4 sm:$0xff]   ;;  %v3054_v49 = vld [vmem:[#allocation8 + $0xac] ss:$16 sps:$4 sm:$0xff]  }
  0x7b   :  { %1087 = vmatprep.subr.bf16.mxu0 %v3006_v50  ;;  %1128 = vmatprep.subr.bf16.mxu1 %v3009_v51  ;;  %v3057_v50 = vld [vmem:[#allocation8 + $0x2ac] ss:$16 sps:$4 sm:$0xff]   ;;  %v3052_v51 = vld [vmem:[#allocation8 + $0xa8] ss:$16 sps:$4 sm:$0xff]  }
  0x7e   :  { %1088 = vmatpush2.bf16.msra.mxu0 %v3004_v52  ;;  %1129 = vmatpush2.bf16.msra.mxu1 %v3007_v53  ;;  %v3055_v52 = vld [vmem:[#allocation8 + $0x2a8] ss:$16 sps:$4 sm:$0xff]   ;;  %v3060_v53 = vld [vmem:[#allocation8 + $0x8c] ss:$16 sps:$4 sm:$0xff]  }
  0x7f   :  { %1089 = vmatprep.subr.bf16.mxu0 %v3012_v54  ;;  %1130 = vmatprep.subr.bf16.mxu1 %v3015_v55  ;;  %v3063_v54 = vld [vmem:[#allocation8 + $0x28c] ss:$16 sps:$4 sm:$0xff]   ;;  %v3058_v55 = vld [vmem:[#allocation8 + $0x88] ss:$16 sps:$4 sm:$0xff]  }
  0x82   :  { %1090 = vmatpush2.bf16.msra.mxu0 %v3010_v56  ;;  %1131 = vmatpush2.bf16.msra.mxu1 %v3013_v57  ;;  %v3061_v56 = vld [vmem:[#allocation8 + $0x288] ss:$16 sps:$4 sm:$0xff]   ;;  %v3066_v57 = vld [vmem:[#allocation8 + $0x6c] ss:$16 sps:$4 sm:$0xff]  }
  0x83   :  { %1091 = vmatprep.subr.bf16.mxu0 %v3018_v58  ;;  %1132 = vmatprep.subr.bf16.mxu1 %v3021_v59  ;;  %v3069_v58 = vld [vmem:[#allocation8 + $0x26c] ss:$16 sps:$4 sm:$0xff]   ;;  %v3064_v59 = vld [vmem:[#allocation8 + $0x68] ss:$16 sps:$4 sm:$0xff]  }
  0x86   :  { %1092 = vmatpush2.bf16.msra.mxu0 %v3016_v60  ;;  %1133 = vmatpush2.bf16.msra.mxu1 %v3019_v61  ;;  %v3067_v60 = vld [vmem:[#allocation8 + $0x268] ss:$16 sps:$4 sm:$0xff]   ;;  %v3072_v61 = vld [vmem:[#allocation8 + $0x4c] ss:$16 sps:$4 sm:$0xff]  }
  0x87   :  { %1093 = vmatprep.subr.bf16.mxu0 %v3024_v62  ;;  %1134 = vmatprep.subr.bf16.mxu1 %v3027_v63  ;;  %v3075_v62 = vld [vmem:[#allocation8 + $0x24c] ss:$16 sps:$4 sm:$0xff]   ;;  %v3070_v63 = vld [vmem:[#allocation8 + $0x48] ss:$16 sps:$4 sm:$0xff]  }
  0x8a   :  { %1094 = vmatpush2.bf16.msra.mxu0 %v3022_v0  ;;  %1135 = vmatpush2.bf16.msra.mxu1 %v3025_v1  ;;  %v3073_v0 = vld [vmem:[#allocation8 + $0x248] ss:$16 sps:$4 sm:$0xff]   ;;  %v3078_v1 = vld [vmem:[#allocation8 + $0x2c] ss:$16 sps:$4 sm:$0xff]  }
  0x8b   :  { %1095 = vmatprep.subr.bf16.mxu0 %v3030_v2  ;;  %1136 = vmatprep.subr.bf16.mxu1 %v3033_v3  ;;  %v3081_v2 = vld [vmem:[#allocation8 + $0x22c] ss:$16 sps:$4 sm:$0xff]   ;;  %v3076_v3 = vld [vmem:[#allocation8 + $0x28] ss:$16 sps:$4 sm:$0xff]  }
  0x8e   :  { %1096 = vmatpush2.bf16.msra.mxu0 %v3028_v4  ;;  %1137 = vmatpush2.bf16.msra.mxu1 %v3031_v5  ;;  %v3079_v4 = vld [vmem:[#allocation8 + $0x228] ss:$16 sps:$4 sm:$0xff]   ;;  %v3084_v5 = vld [vmem:[#allocation8 + $0xc] ss:$16 sps:$4 sm:$0xff]  }
  0x8f   :  { %1097 = vmatprep.subr.bf16.mxu0 %v3036_v6  ;;  %1138 = vmatprep.subr.bf16.mxu1 %v3039_v7  ;;  %v3087_v6 = vld [vmem:[#allocation8 + $0x20c] ss:$16 sps:$4 sm:$0xff]   ;;  %v3082_v7 = vld [vmem:[#allocation8 + $0x8] ss:$16 sps:$4 sm:$0xff]  }
  0x92   :  { %1098 = vmatpush2.bf16.msra.mxu0 %v3034_v8  ;;  %1139 = vmatpush2.bf16.msra.mxu1 %v3037_v9  ;;  %v3085_v8 = vld [vmem:[#allocation8 + $0x208] ss:$16 sps:$4 sm:$0xff]   ;;  %v3090_v9 = vld [vmem:[#allocation8 + $0x1ec] ss:$16 sps:$4 sm:$0xff]  }
  0x93   :  { %1149 = vmatprep.subr.bf16.mxu0 %v3042_v10  ;;  %1190 = vmatprep.subr.bf16.mxu1 %v3045_v11  ;;  %v3093_v10 = vld [vmem:[#allocation8 + $0x3ec] ss:$16 sps:$4 sm:$0xff]   ;;  %v3088_v11 = vld [vmem:[#allocation8 + $0x1e8] ss:$16 sps:$4 sm:$0xff]  }
 0x115   :  { %v221_v23 = vpop.f32.mrf.mxu0  ;;  %v262_v24 = vpop.f32.mrf.mxu1 }
 0x116   :  { %v222_v25 = vadd.f32 %v221_v23, %v126_v19  ;;  %v263_v26 = vadd.f32 %v262_v24, %v134_v20  ;;  %v3099_v19 = vld [vmem:[#allocation8 + $0x3cc] ss:$16 sps:$4 sm:$0xff]   ;;  %v3094_v20 = vld [vmem:[#allocation8 + $0x1c8] ss:$16 sps:$4 sm:$0xff]  }
 0x117   :  { %v223_v27 = vpop.f32.mrf.mxu0  ;;  %v264_v28 = vpop.f32.mrf.mxu1  ;;  %v3105_v23 = vld [vmem:[#allocation8 + $0x3ac] ss:$16 sps:$4 sm:$0xff]   ;;  %v3100_v24 = vld [vmem:[#allocation8 + $0x1a8] ss:$16 sps:$4 sm:$0xff]  }
 0x118   :  { %v271_v29 = vmax.f32 %v263_v26, 0.0  ;;  %v224_v30 = vadd.f32 %v223_v27, %v130_v21  ;;  %v265_v31 = vadd.f32 %v264_v28, %v138_v22  ;;  %v269_v32 = vmax.f32 %v222_v25, 0.0  ;;  %v3097_v21 = vld [vmem:[#allocation8 + $0x3c8] ss:$16 sps:$4 sm:$0xff]   ;;  %v3102_v22 = vld [vmem:[#allocation8 + $0x1ac] ss:$16 sps:$4 sm:$0xff]  }
 0x119   :  { %v225_v33 = vpop.f32.mrf.mxu0  ;;  %v266_v34 = vpop.f32.mrf.mxu1  ;;  %v3103_v25 = vld [vmem:[#allocation8 + $0x3a8] ss:$16 sps:$4 sm:$0xff]   ;;  %v3108_v26 = vld [vmem:[#allocation8 + $0x18c] ss:$16 sps:$4 sm:$0xff]  }
 0x11a   :  { %v270_v35 = vmax.f32 %v224_v30, 0.0  ;;  %v272_v36 = vmax.f32 %v265_v31, 0.0  ;;  %v3616_v37 = vpack.c.bf16 %v271_v29, %v271_v29  ;;  %v3618_v44 = vpack.c.bf16 %v269_v32, %v269_v32  ;;  %v3111_v27 = vld [vmem:[#allocation8 + $0x38c] ss:$16 sps:$4 sm:$0xff]   ;;  %v3106_v28 = vld [vmem:[#allocation8 + $0x188] ss:$16 sps:$4 sm:$0xff]  }
 0x11b   :  { %v226_v38 = vpop.f32.mrf.mxu0  ;;  %v267_v39 = vpop.f32.mrf.mxu1  ;;  %v3109_v29 = vld [vmem:[#allocation8 + $0x388] ss:$16 sps:$4 sm:$0xff]   ;;  %v3114_v30 = vld [vmem:[#allocation8 + $0x16c] ss:$16 sps:$4 sm:$0xff]  }
 0x11c   :  { %v274_v40 = vpack.c.bf16 %v270_v35, %v270_v35  ;;  %v276_v41 = vpack.c.bf16 %v272_v36, %v272_v36  ;;  %v3117_v31 = vld [vmem:[#allocation8 + $0x36c] ss:$16 sps:$4 sm:$0xff]   ;;  %v3112_v32 = vld [vmem:[#allocation8 + $0x168] ss:$16 sps:$4 sm:$0xff]  }
 0x11d   :  { %v3115_v33 = vld [vmem:[#allocation8 + $0x368] ss:$16 sps:$4 sm:$0xff]   ;;  %v3120_v34 = vld [vmem:[#allocation8 + $0x14c] ss:$16 sps:$4 sm:$0xff]  }
 0x11e   :  { %1099 = vmatprep.mubr.bf16.mxu0 %v274_v40  ;;  %1140 = vmatprep.mubr.bf16.mxu1 %v276_v41  ;;  %v3123_v35 = vld [vmem:[#allocation8 + $0x34c] ss:$16 sps:$4 sm:$0xff]   ;;  %v3118_v36 = vld [vmem:[#allocation8 + $0x148] ss:$16 sps:$4 sm:$0xff]  }
 0x11f   :  { %1100 = vmatmul.mubr.bf16.vlgmr.msra.gmra.mxu0 %v3618_v44  ;;  %1141 = vmatmul.mubr.bf16.vlgmr.msra.gmra.mxu1 %v3616_v37  ;;  %v3121_v38 = vld [vmem:[#allocation8 + $0x348] ss:$16 sps:$4 sm:$0xff]   ;;  %v3126_v39 = vld [vmem:[#allocation8 + $0x12c] ss:$16 sps:$4 sm:$0xff]  }
 0x120   :  { %1150 = vmatpush1.bf16.msra.mxu0 %v3040_v42  ;;  %1191 = vmatpush1.bf16.msra.mxu1 %v3043_v43  ;;  %v3127_v42 = vld [vmem:[#allocation8 + $0x328] ss:$16 sps:$4 sm:$0xff]   ;;  %v3132_v43 = vld [vmem:[#allocation8 + $0x10c] ss:$16 sps:$4 sm:$0xff]  }
 0x121   :  { %1181 = vmatprep.mubr.bf16.mxu0 %v274_v40  ;;  %1222 = vmatprep.mubr.bf16.mxu1 %v276_v41  ;;  %v3129_v40 = vld [vmem:[#allocation8 + $0x32c] ss:$16 sps:$4 sm:$0xff]   ;;  %v3124_v41 = vld [vmem:[#allocation8 + $0x128] ss:$16 sps:$4 sm:$0xff]  }
 0x122   :  { %1151 = vmatprep.subr.bf16.mxu0 %v3048_v45  ;;  %1192 = vmatprep.subr.bf16.mxu1 %v3051_v46  ;;  %v3135_v45 = vld [vmem:[#allocation8 + $0x30c] ss:$16 sps:$4 sm:$0xff]   ;;  %v3130_v46 = vld [vmem:[#allocation8 + $0x108] ss:$16 sps:$4 sm:$0xff]  }
 0x124   :  { %1152 = vmatpush1.bf16.msra.mxu0 %v3046_v47  ;;  %1193 = vmatpush1.bf16.msra.mxu1 %v3049_v48  ;;  %v3133_v47 = vld [vmem:[#allocation8 + $0x308] ss:$16 sps:$4 sm:$0xff]   ;;  %v3138_v48 = vld [vmem:[#allocation10 + $0xe4] ss:$16 sps:$4 sm:$0xff]  }
 0x125   :  { %1153 = vmatprep.subr.bf16.mxu0 %v3054_v49  ;;  %1194 = vmatprep.subr.bf16.mxu1 %v3057_v50  ;;  %v3136_v49 = vld [vmem:[#allocation10 + $0xe0] ss:$16 sps:$4 sm:$0xff]   ;;  %v3141_v50 = vld [vmem:[#allocation10 + $0xc4] ss:$16 sps:$4 sm:$0xff]  }
 0x128   :  { %1154 = vmatpush1.bf16.msra.mxu0 %v3052_v51  ;;  %1195 = vmatpush1.bf16.msra.mxu1 %v3055_v52  ;;  %v3139_v51 = vld [vmem:[#allocation10 + $0xc0] ss:$16 sps:$4 sm:$0xff]   ;;  %v3144_v52 = vld [vmem:[#allocation10 + $0xa4] ss:$16 sps:$4 sm:$0xff]  }
 0x129   :  { %1155 = vmatprep.subr.bf16.mxu0 %v3060_v53  ;;  %1196 = vmatprep.subr.bf16.mxu1 %v3063_v54  ;;  %v3142_v53 = vld [vmem:[#allocation10 + $0xa0] ss:$16 sps:$4 sm:$0xff]   ;;  %v3147_v54 = vld [vmem:[#allocation10 + $0x84] ss:$16 sps:$4 sm:$0xff]  }
 0x12c   :  { %1156 = vmatpush1.bf16.msra.mxu0 %v3058_v55  ;;  %1197 = vmatpush1.bf16.msra.mxu1 %v3061_v56  ;;  %v3145_v55 = vld [vmem:[#allocation10 + $0x80] ss:$16 sps:$4 sm:$0xff]  }
 0x12d   :  { %1157 = vmatprep.subr.bf16.mxu0 %v3066_v57  ;;  %1198 = vmatprep.subr.bf16.mxu1 %v3069_v58  ;;  %v3184_v56 = vld [vmem:[#allocation10 + $0x2e0] ss:$16 sps:$4 sm:$0xff]   ;;  %v3186_v57 = vld [vmem:[#allocation10 + $0x2e4] ss:$16 sps:$4 sm:$0xff]  }
 0x12e   :  { %v3150_v58 = vld [vmem:[#allocation10 + $0x64] ss:$16 sps:$4 sm:$0xff]  }
 0x130   :  { %1158 = vmatpush1.bf16.msra.mxu0 %v3064_v59  ;;  %1199 = vmatpush1.bf16.msra.mxu1 %v3067_v60  ;;  %v3190_v59 = vld [vmem:[#allocation10 + $0x2c0] ss:$16 sps:$4 sm:$0xff]   ;;  %v3153_v60 = vld [vmem:[#allocation10 + $0x44] ss:$16 sps:$4 sm:$0xff]  }
 0x131   :  { %1159 = vmatprep.subr.bf16.mxu0 %v3072_v61  ;;  %1200 = vmatprep.subr.bf16.mxu1 %v3075_v62  ;;  %v3151_v61 = vld [vmem:[#allocation10 + $0x40] ss:$16 sps:$4 sm:$0xff]  }
 0x132   :  { %v3196_v62 = vld [vmem:[#allocation10 + $0x2a0] ss:$16 sps:$4 sm:$0xff]  }
 0x134   :  { %1160 = vmatpush1.bf16.msra.mxu0 %v3070_v63  ;;  %1201 = vmatpush1.bf16.msra.mxu1 %v3073_v0  ;;  %v3198_v63 = vld [vmem:[#allocation10 + $0x2a4] ss:$16 sps:$4 sm:$0xff]  }
 0x135   :  { %1161 = vmatprep.subr.bf16.mxu0 %v3078_v1  ;;  %1202 = vmatprep.subr.bf16.mxu1 %v3081_v2  ;;  %v3156_v0 = vld [vmem:[#allocation10 + $0x24] ss:$16 sps:$4 sm:$0xff]   ;;  %v3154_v1 = vld [vmem:[#allocation10 + $0x20] ss:$16 sps:$4 sm:$0xff]  }
 0x136   :  { %v3202_v2 = vld [vmem:[#allocation10 + $0x280] ss:$16 sps:$4 sm:$0xff]  }
 0x138   :  { %1162 = vmatpush1.bf16.msra.mxu0 %v3076_v3  ;;  %1203 = vmatpush1.bf16.msra.mxu1 %v3079_v4  ;;  %v3204_v3 = vld [vmem:[#allocation10 + $0x284] ss:$16 sps:$4 sm:$0xff]  }
 0x139   :  { %1163 = vmatprep.subr.bf16.mxu0 %v3084_v5  ;;  %1204 = vmatprep.subr.bf16.mxu1 %v3087_v6  ;;  %v3159_v4 = vld [vmem:[#allocation10 + $0x4] ss:$16 sps:$4 sm:$0xff]   ;;  %v3157_v5 = vld [vmem:[#allocation10] ss:$16 sps:$4 sm:$0xff]  }
 0x13a   :  { %v3208_v6 = vld [vmem:[#allocation10 + $0x260] ss:$16 sps:$4 sm:$0xff]  }
 0x13c   :  { %1164 = vmatpush1.bf16.msra.mxu0 %v3082_v7  ;;  %1205 = vmatpush1.bf16.msra.mxu1 %v3085_v8  ;;  %v3210_v7 = vld [vmem:[#allocation10 + $0x264] ss:$16 sps:$4 sm:$0xff]  }
 0x13d   :  { %1165 = vmatprep.subr.bf16.mxu0 %v3090_v9  ;;  %1206 = vmatprep.subr.bf16.mxu1 %v3093_v10  ;;  %v3162_v8 = vld [vmem:[#allocation10 + $0x1e4] ss:$16 sps:$4 sm:$0xff]   ;;  %v3160_v9 = vld [vmem:[#allocation10 + $0x1e0] ss:$16 sps:$4 sm:$0xff]  }
 0x13e   :  { %v3214_v10 = vld [vmem:[#allocation10 + $0x240] ss:$16 sps:$4 sm:$0xff]  }
 0x140   :  { %1166 = vmatpush2.bf16.msra.mxu0 %v3088_v11  ;;  %1207 = vmatpush2.bf16.msra.mxu1 %v3091_v13  ;;  %v3216_v11 = vld [vmem:[#allocation10 + $0x244] ss:$16 sps:$4 sm:$0xff]  }
 0x141   :  { %1167 = vmatprep.subr.bf16.mxu0 %v3096_v16  ;;  %1208 = vmatprep.subr.bf16.mxu1 %v3099_v19  ;;  %v3165_v13 = vld [vmem:[#allocation10 + $0x1c4] ss:$16 sps:$4 sm:$0xff]   ;;  %v3163_v16 = vld [vmem:[#allocation10 + $0x1c0] ss:$16 sps:$4 sm:$0xff]  }
 0x142   :  { %v3220_v19 = vld [vmem:[#allocation10 + $0x220] ss:$16 sps:$4 sm:$0xff]  }
 0x144   :  { %1168 = vmatpush2.bf16.msra.mxu0 %v3094_v20  ;;  %1209 = vmatpush2.bf16.msra.mxu1 %v3097_v21  ;;  %v3222_v20 = vld [vmem:[#allocation10 + $0x224] ss:$16 sps:$4 sm:$0xff]  }
 0x145   :  { %1169 = vmatprep.subr.bf16.mxu0 %v3102_v22  ;;  %1210 = vmatprep.subr.bf16.mxu1 %v3105_v23  ;;  %v3168_v21 = vld [vmem:[#allocation10 + $0x1a4] ss:$16 sps:$4 sm:$0xff]   ;;  %v3166_v22 = vld [vmem:[#allocation10 + $0x1a0] ss:$16 sps:$4 sm:$0xff]  }
 0x146   :  { %v3226_v23 = vld [vmem:[#allocation10 + $0x200] ss:$16 sps:$4 sm:$0xff]  }
 0x148   :  { %1170 = vmatpush2.bf16.msra.mxu0 %v3100_v24  ;;  %1211 = vmatpush2.bf16.msra.mxu1 %v3103_v25  ;;  %v3228_v24 = vld [vmem:[#allocation10 + $0x204] ss:$16 sps:$4 sm:$0xff]  }
 0x149   :  { %1171 = vmatprep.subr.bf16.mxu0 %v3108_v26  ;;  %1212 = vmatprep.subr.bf16.mxu1 %v3111_v27  ;;  %v3171_v25 = vld [vmem:[#allocation10 + $0x184] ss:$16 sps:$4 sm:$0xff]   ;;  %v3169_v26 = vld [vmem:[#allocation10 + $0x180] ss:$16 sps:$4 sm:$0xff]  }
 0x14a   :  { %v3232_v27 = vld [vmem:[#allocation10 + $0x3e0] ss:$16 sps:$4 sm:$0xff]  }
 0x14c   :  { %1172 = vmatpush2.bf16.msra.mxu0 %v3106_v28  ;;  %1213 = vmatpush2.bf16.msra.mxu1 %v3109_v29  ;;  %v3234_v28 = vld [vmem:[#allocation10 + $0x3e4] ss:$16 sps:$4 sm:$0xff]  }
 0x14d   :  { %1173 = vmatprep.subr.bf16.mxu0 %v3114_v30  ;;  %1214 = vmatprep.subr.bf16.mxu1 %v3117_v31  ;;  %v3174_v29 = vld [vmem:[#allocation10 + $0x164] ss:$16 sps:$4 sm:$0xff]   ;;  %v3172_v30 = vld [vmem:[#allocation10 + $0x160] ss:$16 sps:$4 sm:$0xff]  }
 0x14e   :  { %v3238_v31 = vld [vmem:[#allocation10 + $0x3c0] ss:$16 sps:$4 sm:$0xff]  }
 0x150   :  { %1174 = vmatpush2.bf16.msra.mxu0 %v3112_v32  ;;  %1215 = vmatpush2.bf16.msra.mxu1 %v3115_v33  ;;  %v3240_v32 = vld [vmem:[#allocation10 + $0x3c4] ss:$16 sps:$4 sm:$0xff]  }
 0x151   :  { %1175 = vmatprep.subr.bf16.mxu0 %v3120_v34  ;;  %1216 = vmatprep.subr.bf16.mxu1 %v3123_v35  ;;  %v3177_v33 = vld [vmem:[#allocation10 + $0x144] ss:$16 sps:$4 sm:$0xff]   ;;  %v3175_v34 = vld [vmem:[#allocation10 + $0x140] ss:$16 sps:$4 sm:$0xff]  }
 0x152   :  { %v3244_v35 = vld [vmem:[#allocation10 + $0x3a0] ss:$16 sps:$4 sm:$0xff]  }
 0x154   :  { %1176 = vmatpush2.bf16.msra.mxu0 %v3118_v36  ;;  %1217 = vmatpush2.bf16.msra.mxu1 %v3121_v38  ;;  %v3246_v36 = vld [vmem:[#allocation10 + $0x3a4] ss:$16 sps:$4 sm:$0xff]  }
 0x155   :  { %1177 = vmatprep.subr.bf16.mxu0 %v3126_v39  ;;  %1218 = vmatprep.subr.bf16.mxu1 %v3129_v40  ;;  %v3180_v38 = vld [vmem:[#allocation10 + $0x124] ss:$16 sps:$4 sm:$0xff]   ;;  %v3178_v39 = vld [vmem:[#allocation10 + $0x120] ss:$16 sps:$4 sm:$0xff]  }
 0x156   :  { %v3250_v40 = vld [vmem:[#allocation10 + $0x380] ss:$16 sps:$4 sm:$0xff]  }
 0x158   :  { %1178 = vmatpush2.bf16.msra.mxu0 %v3124_v41  ;;  %1219 = vmatpush2.bf16.msra.mxu1 %v3127_v42  ;;  %v3252_v41 = vld [vmem:[#allocation10 + $0x384] ss:$16 sps:$4 sm:$0xff]  }
 0x159   :  { %1179 = vmatprep.subr.bf16.mxu0 %v3132_v43  ;;  %1220 = vmatprep.subr.bf16.mxu1 %v3135_v45  ;;  %v3183_v42 = vld [vmem:[#allocation10 + $0x104] ss:$16 sps:$4 sm:$0xff]   ;;  %v3181_v43 = vld [vmem:[#allocation10 + $0x100] ss:$16 sps:$4 sm:$0xff]  }
 0x15a   :  { %v3256_v45 = vld [vmem:[#allocation10 + $0x360] ss:$16 sps:$4 sm:$0xff]  }
 0x15c   :  { %1180 = vmatpush2.bf16.msra.mxu0 %v3130_v46  ;;  %1221 = vmatpush2.bf16.msra.mxu1 %v3133_v47  ;;  %v3258_v46 = vld [vmem:[#allocation10 + $0x364] ss:$16 sps:$4 sm:$0xff]   ;;  %v3189_v47 = vld [vmem:[#allocation10 + $0xec] ss:$16 sps:$4 sm:$0xff]  }
 0x15d   :  { %2029 = vmatprep.subr.bf16.mxu0 %v3138_v48  ;;  %2070 = vmatprep.subr.bf16.mxu1 %v3186_v57  ;;  %v3262_v48 = vld [vmem:[#allocation10 + $0x340] ss:$16 sps:$4 sm:$0xff]  }
 0x15f   :  { %1182 = vmatmul.mubr.bf16.vlgmr.msra.gmra.mxu0 %v3618_v44  ;;  %1223 = vmatmul.mubr.bf16.vlgmr.msra.gmra.mxu1 %v3616_v37  ;;  %v3148_v44 = vld [vmem:[#allocation10 + $0x60] ss:$16 sps:$4 sm:$0xff]   ;;  %v3192_v37 = vld [vmem:[#allocation10 + $0x2c4] ss:$16 sps:$4 sm:$0xff]  }
 0x160   :  { %2030 = vmatpush1.bf16.msra.mxu0 %v3136_v49  ;;  %2071 = vmatpush1.bf16.msra.mxu1 %v3184_v56  ;;  %v3264_v49 = vld [vmem:[#allocation10 + $0x344] ss:$16 sps:$4 sm:$0xff]  }
 0x161   :  { %2031 = vmatprep.subr.bf16.mxu0 %v3141_v50  ;;  %2072 = vmatprep.subr.bf16.mxu1 %v3192_v37  ;;  %v3270_v50 = vld [vmem:[#allocation10 + $0x324] ss:$16 sps:$4 sm:$0xff]  }
 0x164   :  { %2032 = vmatpush1.bf16.msra.mxu0 %v3139_v51  ;;  %2073 = vmatpush1.bf16.msra.mxu1 %v3190_v59  ;;  %v3268_v51 = vld [vmem:[#allocation10 + $0x320] ss:$16 sps:$4 sm:$0xff]  }
 0x165   :  { %2033 = vmatprep.subr.bf16.mxu0 %v3144_v52  ;;  %2074 = vmatprep.subr.bf16.mxu1 %v3198_v63  ;;  %v3276_v52 = vld [vmem:[#allocation10 + $0x304] ss:$16 sps:$4 sm:$0xff]  }
 0x168   :  { %2034 = vmatpush1.bf16.msra.mxu0 %v3142_v53  ;;  %2075 = vmatpush1.bf16.msra.mxu1 %v3196_v62  ;;  %v3274_v53 = vld [vmem:[#allocation10 + $0x300] ss:$16 sps:$4 sm:$0xff]  }
 0x169   :  { %2035 = vmatprep.subr.bf16.mxu0 %v3147_v54  ;;  %2076 = vmatprep.subr.bf16.mxu1 %v3204_v3  ;;  %v3282_v54 = vld [vmem:[#allocation10 + $0x2ec] ss:$16 sps:$4 sm:$0xff]  }
 0x16c   :  { %2036 = vmatpush1.bf16.msra.mxu0 %v3145_v55  ;;  %2077 = vmatpush1.bf16.msra.mxu1 %v3202_v2  ;;  %v3627_v55 = vld [vmem:[%s3663_s4] sm:$0xf] }
 0x16d   :  { %2037 = vmatprep.subr.bf16.mxu0 %v3150_v58  ;;  %2078 = vmatprep.subr.bf16.mxu1 %v3210_v7  ;;  %v410_v56 = vrot.slane %v3627_v55, %v3604_v14  ;;  %v414_v57 = vrot.slane %v3627_v55, %v3608_v17  ;;  %v3187_v7 = vld [vmem:[#allocation10 + $0xe8] ss:$16 sps:$4 sm:$0xff]  }
 0x170   :  { %2038 = vmatpush1.bf16.msra.mxu0 %v3148_v44  ;;  %2079 = vmatpush1.bf16.msra.mxu1 %v3208_v6 }
 0x171   :  { %2039 = vmatprep.subr.bf16.mxu0 %v3153_v60  ;;  %2080 = vmatprep.subr.bf16.mxu1 %v3216_v11  ;;  %v3201_v11 = vld [vmem:[#allocation10 + $0xac] ss:$16 sps:$4 sm:$0xff]  }
 0x174   :  { %2040 = vmatpush1.bf16.msra.mxu0 %v3151_v61  ;;  %2081 = vmatpush1.bf16.msra.mxu1 %v3214_v10  ;;  %v3193_v10 = vld [vmem:[#allocation10 + $0xc8] ss:$16 sps:$4 sm:$0xff]  }
 0x175   :  { %2041 = vmatprep.subr.bf16.mxu0 %v3156_v0  ;;  %2082 = vmatprep.subr.bf16.mxu1 %v3222_v20  ;;  %v3213_v20 = vld [vmem:[#allocation10 + $0x6c] ss:$16 sps:$4 sm:$0xff]  }
 0x178   :  { %2042 = vmatpush1.bf16.msra.mxu0 %v3154_v1  ;;  %2083 = vmatpush1.bf16.msra.mxu1 %v3220_v19  ;;  %v3205_v19 = vld [vmem:[#allocation10 + $0x88] ss:$16 sps:$4 sm:$0xff]  }
 0x179   :  { %2043 = vmatprep.subr.bf16.mxu0 %v3159_v4  ;;  %2084 = vmatprep.subr.bf16.mxu1 %v3228_v24  ;;  %v3225_v24 = vld [vmem:[#allocation10 + $0x2c] ss:$16 sps:$4 sm:$0xff]  }
 0x17c   :  { %2044 = vmatpush1.bf16.msra.mxu0 %v3157_v5  ;;  %2085 = vmatpush1.bf16.msra.mxu1 %v3226_v23  ;;  %v3217_v23 = vld [vmem:[#allocation10 + $0x48] ss:$16 sps:$4 sm:$0xff]  }
 0x17d   :  { %2045 = vmatprep.subr.bf16.mxu0 %v3162_v8  ;;  %2086 = vmatprep.subr.bf16.mxu1 %v3234_v28  ;;  %v3237_v28 = vld [vmem:[#allocation10 + $0x1ec] ss:$16 sps:$4 sm:$0xff]  }
 0x180   :  { %2046 = vmatpush2.bf16.msra.mxu0 %v3160_v9  ;;  %2087 = vmatpush2.bf16.msra.mxu1 %v3232_v27  ;;  %v3195_v9 = vld [vmem:[#allocation10 + $0xcc] ss:$16 sps:$4 sm:$0xff]   ;;  %v3229_v27 = vld [vmem:[#allocation10 + $0x8] ss:$16 sps:$4 sm:$0xff]  }
 0x181   :  { %2047 = vmatprep.subr.bf16.mxu0 %v3165_v13  ;;  %2088 = vmatprep.subr.bf16.mxu1 %v3240_v32  ;;  %v3199_v13 = vld [vmem:[#allocation10 + $0xa8] ss:$16 sps:$4 sm:$0xff]   ;;  %v3249_v32 = vld [vmem:[#allocation10 + $0x1ac] ss:$16 sps:$4 sm:$0xff]  }
 0x184   :  { %2048 = vmatpush2.bf16.msra.mxu0 %v3163_v16  ;;  %2089 = vmatpush2.bf16.msra.mxu1 %v3238_v31  ;;  %v3207_v16 = vld [vmem:[#allocation10 + $0x8c] ss:$16 sps:$4 sm:$0xff]   ;;  %v3241_v31 = vld [vmem:[#allocation10 + $0x1c8] ss:$16 sps:$4 sm:$0xff]  }
 0x185   :  { %2049 = vmatprep.subr.bf16.mxu0 %v3168_v21  ;;  %2090 = vmatprep.subr.bf16.mxu1 %v3246_v36  ;;  %v3211_v21 = vld [vmem:[#allocation10 + $0x68] ss:$16 sps:$4 sm:$0xff]   ;;  %v3261_v36 = vld [vmem:[#allocation10 + $0x16c] ss:$16 sps:$4 sm:$0xff]  }
 0x188   :  { %2050 = vmatpush2.bf16.msra.mxu0 %v3166_v22  ;;  %2091 = vmatpush2.bf16.msra.mxu1 %v3244_v35  ;;  %v3219_v22 = vld [vmem:[#allocation10 + $0x4c] ss:$16 sps:$4 sm:$0xff]   ;;  %v3253_v35 = vld [vmem:[#allocation10 + $0x188] ss:$16 sps:$4 sm:$0xff]  }
 0x189   :  { %2051 = vmatprep.subr.bf16.mxu0 %v3171_v25  ;;  %2092 = vmatprep.subr.bf16.mxu1 %v3252_v41  ;;  %v3223_v25 = vld [vmem:[#allocation10 + $0x28] ss:$16 sps:$4 sm:$0xff]  }
 0x18a   :  { %v3265_v41 = vld [vmem:[#allocation10 + $0x148] ss:$16 sps:$4 sm:$0xff]  }
 0x18c   :  { %2052 = vmatpush2.bf16.msra.mxu0 %v3169_v26  ;;  %2093 = vmatpush2.bf16.msra.mxu1 %v3250_v40  ;;  %v3231_v26 = vld [vmem:[#allocation10 + $0xc] ss:$16 sps:$4 sm:$0xff]   ;;  %v418_v40 = vrot.slane %v3627_v55, %v3606_v15 }
 0x18d   :  { %2053 = vmatprep.subr.bf16.mxu0 %v3174_v29  ;;  %2094 = vmatprep.subr.bf16.mxu1 %v3258_v46  ;;  %v3235_v29 = vld [vmem:[#allocation10 + $0x1e8] ss:$16 sps:$4 sm:$0xff]  }
 0x190   :  { %2054 = vmatpush2.bf16.msra.mxu0 %v3172_v30  ;;  %2095 = vmatpush2.bf16.msra.mxu1 %v3256_v45  ;;  %v3243_v30 = vld [vmem:[#allocation10 + $0x1cc] ss:$16 sps:$4 sm:$0xff]  }
 0x191   :  { %2055 = vmatprep.subr.bf16.mxu0 %v3177_v33  ;;  %2096 = vmatprep.subr.bf16.mxu1 %v3264_v49  ;;  %v3247_v33 = vld [vmem:[#allocation10 + $0x1a8] ss:$16 sps:$4 sm:$0xff]  }
 0x194   :  { %2056 = vmatpush2.bf16.msra.mxu0 %v3175_v34  ;;  %2097 = vmatpush2.bf16.msra.mxu1 %v3262_v48  ;;  %v3255_v34 = vld [vmem:[#allocation10 + $0x18c] ss:$16 sps:$4 sm:$0xff]   ;;  %v3271_v48 = vld [vmem:[#allocation10 + $0x128] ss:$16 sps:$4 sm:$0xff]  }
 0x195   :  { %2057 = vmatprep.subr.bf16.mxu0 %v3180_v38  ;;  %2098 = vmatprep.subr.bf16.mxu1 %v3270_v50  ;;  %v3259_v38 = vld [vmem:[#allocation10 + $0x168] ss:$16 sps:$4 sm:$0xff]  }
 0x198   :  { %2058 = vmatpush2.bf16.msra.mxu0 %v3178_v39  ;;  %2099 = vmatpush2.bf16.msra.mxu1 %v3268_v51  ;;  %v3267_v39 = vld [vmem:[#allocation10 + $0x14c] ss:$16 sps:$4 sm:$0xff]  }
 0x199   :  { %2059 = vmatprep.subr.bf16.mxu0 %v3183_v42  ;;  %2100 = vmatprep.subr.bf16.mxu1 %v3276_v52  ;;  %v3273_v42 = vld [vmem:[#allocation10 + $0x12c] ss:$16 sps:$4 sm:$0xff]  }
 0x19a   :  { %v3279_v51 = vld [vmem:[#allocation10 + $0x10c] ss:$16 sps:$4 sm:$0xff]  }
 0x19c   :  { %2060 = vmatpush2.bf16.msra.mxu0 %v3181_v43  ;;  %2101 = vmatpush2.bf16.msra.mxu1 %v3274_v53  ;;  %v422_v43 = vrot.slane %v3627_v55, %v3610_v18 }
 0x19d   :  { %2111 = vmatprep.subr.bf16.mxu0 %v3189_v47  ;;  %2152 = vmatprep.subr.bf16.mxu1 %v3282_v54 }
 0x1df   :  { %v1101_v58 = vpop.f32.mrf.mxu0  ;;  %v1142_v44 = vpop.f32.mrf.mxu1 }
 0x1e0   :  { %v1102_v59 = vadd.f32 %v1101_v58, %v410_v56  ;;  %v3277_v58 = vld [vmem:[#allocation10 + $0x108] ss:$16 sps:$4 sm:$0xff]  }
 0x1e1   :  { %v1103_v37 = vpop.f32.mrf.mxu0  ;;  %v1144_v60 = vpop.f32.mrf.mxu1 }
 0x1e2   :  { %v1143_v61 = vadd.f32 %v1142_v44, %v1102_v59  ;;  %v1104_v62 = vadd.f32 %v1103_v37, %v414_v57 }
 0x1e3   :  { %v1105_v63 = vpop.f32.mrf.mxu0  ;;  %v1146_v0 = vpop.f32.mrf.mxu1 }
 0x1e4   :  { %v1145_v1 = vadd.f32 %v1144_v60, %v1104_v62  ;;  %v1231_v2 = vmax.f32 %v1143_v61, 0.0  ;;  %v3280_v61 = vld [vmem:[#allocation10 + $0x2e8] ss:$16 sps:$4 sm:$0xff]   ;;  %v3285_v63 = vld [vmem:[#allocation10 + $0x2cc] ss:$16 sps:$4 sm:$0xff]  }
 0x1e5   :  { %v1106_v3 = vpop.f32.mrf.mxu0  ;;  %v1147_v4 = vpop.f32.mrf.mxu1  ;;  %v3283_v0 = vld [vmem:[#allocation10 + $0x2c8] ss:$16 sps:$4 sm:$0xff]  }
 0x1e6   :  { %v1232_v5 = vmax.f32 %v1145_v1, 0.0  ;;  %v3633_v8 = vpack.c.bf16 %v1231_v2, %v1231_v2  ;;  %v3288_v1 = vld [vmem:[#allocation10 + $0x2ac] ss:$16 sps:$4 sm:$0xff]   ;;  %v3286_v2 = vld [vmem:[#allocation10 + $0x2a8] ss:$16 sps:$4 sm:$0xff]  }
 0x1e7   :  { %v3291_v3 = vld [vmem:[#allocation10 + $0x28c] ss:$16 sps:$4 sm:$0xff]  }
 0x1e8   :  { %v1236_v6 = vpack.c.bf16 %v1232_v5, %v1232_v5  ;;  %v3328_v4 = vld [vmem:[#allocation11 + $0x78] sm:$0xff]  }
 0x1e9   :  { %v3329_v5 = vld [vmem:[#allocation11 + $0x38] sm:$0xff]  }
 0x1ea   :  { %2061 = vmatprep.mubr.bf16.mxu0 %v1236_v6 }
 0x1eb   :  { %2062 = vmatmul.mubr.bf16.vlgmr.msra.gmra.mxu0 %v3633_v8 }
 0x1ec   :  { %2112 = vmatpush1.bf16.msra.mxu0 %v3187_v7  ;;  %2143 = vmatprep.mubr.bf16.mxu0 %v1236_v6  ;;  %v3330_v6 = vld [vmem:[#allocation11 + $0x70] sm:$0xff]   ;;  %v3289_v7 = vld [vmem:[#allocation10 + $0x288] ss:$16 sps:$4 sm:$0xff]  }
 0x1ed   :  { %2113 = vmatprep.subr.bf16.mxu0 %v3195_v9  ;;  %v3331_v9 = vld [vmem:[#allocation11 + $0x30] sm:$0xff]  }
 0x1f0   :  { %2114 = vmatpush1.bf16.msra.mxu0 %v3193_v10  ;;  %v3294_v10 = vld [vmem:[#allocation10 + $0x26c] ss:$16 sps:$4 sm:$0xff]  }
 0x1f1   :  { %2115 = vmatprep.subr.bf16.mxu0 %v3201_v11  ;;  %v3292_v11 = vld [vmem:[#allocation10 + $0x268] ss:$16 sps:$4 sm:$0xff]  }
 0x1f4   :  { %2116 = vmatpush1.bf16.msra.mxu0 %v3199_v13  ;;  %v3333_v13 = vld [vmem:[#allocation11 + $0x28] sm:$0xff]  }
 0x1f5   :  { %2117 = vmatprep.subr.bf16.mxu0 %v3207_v16  ;;  %v3297_v16 = vld [vmem:[#allocation10 + $0x24c] ss:$16 sps:$4 sm:$0xff]  }
 0x1f8   :  { %2118 = vmatpush1.bf16.msra.mxu0 %v3205_v19  ;;  %v3334_v19 = vld [vmem:[#allocation11 + $0x60] sm:$0xff]  }
 0x1f9   :  { %2119 = vmatprep.subr.bf16.mxu0 %v3213_v20  ;;  %v3295_v20 = vld [vmem:[#allocation10 + $0x248] ss:$16 sps:$4 sm:$0xff]  }
 0x1fc   :  { %2120 = vmatpush1.bf16.msra.mxu0 %v3211_v21  ;;  %v3335_v21 = vld [vmem:[#allocation11 + $0x20] sm:$0xff]  }
 0x1fd   :  { %2121 = vmatprep.subr.bf16.mxu0 %v3219_v22  ;;  %v3300_v22 = vld [vmem:[#allocation10 + $0x22c] ss:$16 sps:$4 sm:$0xff]  }
 0x200   :  { %2122 = vmatpush1.bf16.msra.mxu0 %v3217_v23  ;;  %v3336_v23 = vld [vmem:[#allocation11 + $0x58] sm:$0xff]  }
 0x201   :  { %2123 = vmatprep.subr.bf16.mxu0 %v3225_v24  ;;  %v3298_v24 = vld [vmem:[#allocation10 + $0x228] ss:$16 sps:$4 sm:$0xff]  }
 0x204   :  { %2124 = vmatpush1.bf16.msra.mxu0 %v3223_v25  ;;  %v3337_v25 = vld [vmem:[#allocation11 + $0x18] sm:$0xff]  }
 0x205   :  { %2125 = vmatprep.subr.bf16.mxu0 %v3231_v26  ;;  %v3303_v26 = vld [vmem:[#allocation10 + $0x20c] ss:$16 sps:$4 sm:$0xff]  }
 0x208   :  { %2126 = vmatpush1.bf16.msra.mxu0 %v3229_v27  ;;  %v3338_v27 = vld [vmem:[#allocation11 + $0x50] sm:$0xff]  }
 0x209   :  { %2127 = vmatprep.subr.bf16.mxu0 %v3237_v28  ;;  %v3301_v28 = vld [vmem:[#allocation10 + $0x208] ss:$16 sps:$4 sm:$0xff]  }
 0x20c   :  { %2128 = vmatpush2.bf16.msra.mxu0 %v3235_v29  ;;  %v3339_v29 = vld [vmem:[#allocation11 + $0x10] sm:$0xff]  }
 0x20d   :  { %2129 = vmatprep.subr.bf16.mxu0 %v3243_v30  ;;  %v3306_v30 = vld [vmem:[#allocation10 + $0x3ec] ss:$16 sps:$4 sm:$0xff]  }
 0x210   :  { %2130 = vmatpush2.bf16.msra.mxu0 %v3241_v31  ;;  %v3304_v31 = vld [vmem:[#allocation10 + $0x3e8] ss:$16 sps:$4 sm:$0xff]  }
 0x211   :  { %2131 = vmatprep.subr.bf16.mxu0 %v3249_v32  ;;  %v3309_v32 = vld [vmem:[#allocation10 + $0x3cc] ss:$16 sps:$4 sm:$0xff]  }
 0x214   :  { %2132 = vmatpush2.bf16.msra.mxu0 %v3247_v33  ;;  %v3307_v33 = vld [vmem:[#allocation10 + $0x3c8] ss:$16 sps:$4 sm:$0xff]  }
 0x215   :  { %2133 = vmatprep.subr.bf16.mxu0 %v3255_v34  ;;  %v3312_v34 = vld [vmem:[#allocation10 + $0x3ac] ss:$16 sps:$4 sm:$0xff]  }
 0x218   :  { %2134 = vmatpush2.bf16.msra.mxu0 %v3253_v35  ;;  %v3310_v35 = vld [vmem:[#allocation10 + $0x3a8] ss:$16 sps:$4 sm:$0xff]  }
 0x219   :  { %2135 = vmatprep.subr.bf16.mxu0 %v3261_v36  ;;  %v3315_v36 = vld [vmem:[#allocation10 + $0x38c] ss:$16 sps:$4 sm:$0xff]  }
 0x21c   :  { %2136 = vmatpush2.bf16.msra.mxu0 %v3259_v38  ;;  %v3313_v38 = vld [vmem:[#allocation10 + $0x388] ss:$16 sps:$4 sm:$0xff]  }
 0x21d   :  { %2137 = vmatprep.subr.bf16.mxu0 %v3267_v39  ;;  %v3318_v39 = vld [vmem:[#allocation10 + $0x36c] ss:$16 sps:$4 sm:$0xff]  }
 0x21f   :  { %v1183_v45 = vpop.f32.mrf.mxu0  ;;  %v1224_v46 = vpop.f32.mrf.mxu1 }
 0x220   :  { %v1184_v47 = vadd.f32 %v1183_v45, %v418_v40  ;;  %2138 = vmatpush2.bf16.msra.mxu0 %v3265_v41  ;;  %v3316_v40 = vld [vmem:[#allocation10 + $0x368] ss:$16 sps:$4 sm:$0xff]   ;;  %v3321_v41 = vld [vmem:[#allocation10 + $0x34c] ss:$16 sps:$4 sm:$0xff]  }
 0x221   :  { %v1185_v49 = vpop.f32.mrf.mxu0  ;;  %v1226_v50 = vpop.f32.mrf.mxu1  ;;  %2139 = vmatprep.subr.bf16.mxu0 %v3273_v42  ;;  %v3319_v42 = vld [vmem:[#allocation10 + $0x348] ss:$16 sps:$4 sm:$0xff]  }
 0x222   :  { %v1225_v52 = vadd.f32 %v1224_v46, %v1184_v47  ;;  %v1186_v53 = vadd.f32 %v1185_v49, %v422_v43  ;;  %v3324_v43 = vld [vmem:[#allocation10 + $0x32c] ss:$16 sps:$4 sm:$0xff]   ;;  %v3322_v45 = vld [vmem:[#allocation10 + $0x328] ss:$16 sps:$4 sm:$0xff]  }
 0x223   :  { %v1187_v54 = vpop.f32.mrf.mxu0  ;;  %v1228_v56 = vpop.f32.mrf.mxu1  ;;  %v3327_v46 = vld [vmem:[#allocation10 + $0x30c] ss:$16 sps:$4 sm:$0xff]   ;;  %v3325_v47 = vld [vmem:[#allocation10 + $0x308] ss:$16 sps:$4 sm:$0xff]  }
 0x224   :  { %v1227_v57 = vadd.f32 %v1226_v50, %v1186_v53  ;;  %2140 = vmatpush2.bf16.msra.mxu0 %v3271_v48  ;;  %v1233_v44 = vmax.f32 %v1225_v52, 0.0  ;;  %v3340_v48 = vld [vmem:[#allocation11 + $0x48] sm:$0xff]   ;;  %v3342_v50 = vld [vmem:[#allocation11 + $0x40] sm:$0xff]   ;;  %v3344_v52 = vld [vmem:[#allocation11 + $0xf8] sm:$0xff]  }
 0x225   :  { %v1188_v59 = vpop.f32.mrf.mxu0  ;;  %v1229_v37 = vpop.f32.mrf.mxu1  ;;  %2141 = vmatprep.subr.bf16.mxu0 %v3279_v51  ;;  %v3341_v49 = vld [vmem:[#allocation11 + $0x8] sm:$0xff]   ;;  %v3343_v51 = vld [vmem:[#allocation11] sm:$0xff]   ;;  %v3345_v53 = vld [vmem:[#allocation11 + $0xb8] sm:$0xff]  }
 0x226   :  { %v1234_v55 = vmax.f32 %v1227_v57, 0.0  ;;  %v3640_v62 = vpack.c.bf16 %v1233_v44, %v1233_v44  ;;  %v3346_v54 = vld [vmem:[#allocation11 + $0xf0] sm:$0xff]   ;;  %v3348_v57 = vld [vmem:[#allocation11 + $0xe8] sm:$0xff]   ;;  %v3350_v44 = vld [vmem:[#allocation11 + $0xe0] sm:$0xff]  }
 0x227   :  { %v3347_v56 = vld [vmem:[#allocation11 + $0xb0] sm:$0xff]   ;;  %v3351_v59 = vld [vmem:[#allocation11 + $0xa0] sm:$0xff]   ;;  %v3352_v37 = vld [vmem:[#allocation11 + $0xd8] sm:$0xff]  }
 0x228   :  { %v1238_v60 = vpack.c.bf16 %v1234_v55, %v1234_v55  ;;  %2142 = vmatpush2.bf16.msra.mxu0 %v3277_v58  ;;  %v3349_v58 = vld [vmem:[#allocation11 + $0xa8] sm:$0xff]   ;;  %v3353_v55 = vld [vmem:[#allocation11 + $0x98] sm:$0xff]  }
 0x229   :  { %2876 = vmatprep.subr.bf16.mxu0 %v3328_v4  ;;  %v3359_v4 = vld [vmem:[#allocation11 + $0x80] sm:$0xff]  }
 0x22a   :  { %2102 = vmatprep.mubr.bf16.mxu1 %v1238_v60 }
 0x22b   :  { %2103 = vmatmul.mubr.bf16.vlgmr.msra.gmra.mxu1 %v3640_v62  ;;  %2144 = vmatmul.mubr.bf16.vlgmr.msra.gmra.mxu0 %v3633_v8  ;;  %v3332_v8 = vld [vmem:[#allocation11 + $0x68] sm:$0xff]  }
 0x22c   :  { %2153 = vmatpush1.bf16.msra.mxu1 %v3280_v61  ;;  %2184 = vmatprep.mubr.bf16.mxu1 %v1238_v60  ;;  %v3354_v60 = vld [vmem:[#allocation11 + $0xd0] sm:$0xff]  }
 0x22d   :  { %2154 = vmatprep.subr.bf16.mxu1 %v3285_v63  ;;  %2877 = vmatpush3.bf16.msra.mxu0 %v3329_v5  ;;  %v3355_v61 = vld [vmem:[#allocation11 + $0x90] sm:$0xff]   ;;  %v3356_v63 = vld [vmem:[#allocation11 + $0xc8] sm:$0xff]  }
 0x22e   :  { %2878 = vmatprep.subr.bf16.mxu0 %v3330_v6  ;;  %v1367_v6 = vld [vmem:[%s3665_s6] sm:$0xf] }
 0x230   :  { %2155 = vmatpush1.bf16.msra.mxu1 %v3283_v0  ;;  %v3357_v0 = vld [vmem:[#allocation11 + $0x88] sm:$0xff]  }
 0x231   :  { %2156 = vmatprep.subr.bf16.mxu1 %v3288_v1  ;;  %2879 = vmatpush3.bf16.msra.mxu0 %v3331_v9  ;;  %v1376_v9 = vrot.slane %v1367_v6, %v3608_v17  ;;  %v1384_v17 = vrot.slane %v1367_v6, %v3610_v18  ;;  %v2843_v18 = vld [vmem:[%s3667_s8] ss:$0 sm:$0xff]  ;;  %s3525_s8 = smov [#allocation13]  }
 0x232   :  { %2880 = vmatprep.subr.bf16.mxu0 %v3332_v8  ;;  %s2565_s20 = sshll.u32 %s3525_s8, 4  ;;  %s2566_s20 = int_to_ptr.vmem [resolvable:$true] %s2565_s20 }
 0x233   :  { %s3484_s21 = scalar_lea.vmem %s2566_s20, 128  ;;  %p3489_p3 = scmp.lt.s32.totalorder %s2566_s20, %s2566_s20 }
 0x234   :  { %2157 = vmatpush1.bf16.msra.mxu1 %v3286_v2  ;;  %p3485_p2 = scmp.ne.s32.totalorder %s2566_s20, %s3484_s21  ;;  %p3490_p4 = scmp.lt.s32.totalorder %s3484_s21, %s3484_s21 }
 0x235   :  { %2158 = vmatprep.subr.bf16.mxu1 %v3291_v3  ;;  %2881 = vmatpush3.bf16.msra.mxu0 %v3333_v13  ;;  %v3358_v3 = vld [vmem:[#allocation11 + $0xc0] sm:$0xff]  }
 0x236   :  { %2882 = vmatprep.subr.bf16.mxu0 %v3334_v19  ;;  %p3491_p5 = por %p3490_p4, %p3489_p3 }
 0x238   :  { %2159 = vmatpush1.bf16.msra.mxu1 %v3289_v7  ;;  %v1372_v7 = vrot.slane %v1367_v6, %v3604_v14  ;;  %v1380_v14 = vrot.slane %v1367_v6, %v3606_v15  ;;  %p3492_p6 = pnand %p3491_p5, %p3485_p2 }
 0x239   :  { %2160 = vmatprep.subr.bf16.mxu1 %v3294_v10  ;;  %2883 = vmatpush3.bf16.msra.mxu0 %v3335_v21 }
 0x23a   :  { %2884 = vmatprep.subr.bf16.mxu0 %v3336_v23 }
 0x23c   :  { %2161 = vmatpush1.bf16.msra.mxu1 %v3292_v11 }
 0x23d   :  { %2162 = vmatprep.subr.bf16.mxu1 %v3297_v16  ;;  %2885 = vmatpush3.bf16.msra.mxu0 %v3337_v25 }
 0x23e   :  { %2886 = vmatprep.subr.bf16.mxu0 %v3338_v27 }
 0x240   :  { %2163 = vmatpush1.bf16.msra.mxu1 %v3295_v20 }
 0x241   :  { %2164 = vmatprep.subr.bf16.mxu1 %v3300_v22  ;;  %2887 = vmatpush3.bf16.msra.mxu0 %v3339_v29 }
 0x242   :  { %2888 = vmatprep.subr.bf16.mxu0 %v3340_v48 }
 0x244   :  { %2165 = vmatpush1.bf16.msra.mxu1 %v3298_v24 }
 0x245   :  { %2166 = vmatprep.subr.bf16.mxu1 %v3303_v26  ;;  %2889 = vmatpush3.bf16.msra.mxu0 %v3341_v49 }
 0x246   :  { %2890 = vmatprep.subr.bf16.mxu0 %v3342_v50  ;;  %v2546_v50 = vand.u32 127, %v123_v12 }
 0x248   :  { %2167 = vmatpush1.bf16.msra.mxu1 %v3301_v28  ;;  %vm2547_vm1 = vcmp.lt.s32.totalorder %v2546_v50, 10 }
 0x249   :  { %2168 = vmatprep.subr.bf16.mxu1 %v3306_v30  ;;  %2891 = vmatpush3.bf16.msra.mxu0 %v3343_v51 }
 0x24c   :  { %2169 = vmatpush2.bf16.msra.mxu1 %v3304_v31 }
 0x24d   :  { %2170 = vmatprep.subr.bf16.mxu1 %v3309_v32 }
 0x250   :  { %2171 = vmatpush2.bf16.msra.mxu1 %v3307_v33 }
 0x251   :  { %2172 = vmatprep.subr.bf16.mxu1 %v3312_v34 }
 0x254   :  { %2173 = vmatpush2.bf16.msra.mxu1 %v3310_v35 }
 0x255   :  { %2174 = vmatprep.subr.bf16.mxu1 %v3315_v36 }
 0x258   :  { %2175 = vmatpush2.bf16.msra.mxu1 %v3313_v38 }
 0x259   :  { %2176 = vmatprep.subr.bf16.mxu1 %v3318_v39 }
 0x25c   :  { %2177 = vmatpush2.bf16.msra.mxu1 %v3316_v40 }
 0x25d   :  { %2178 = vmatprep.subr.bf16.mxu1 %v3321_v41 }
 0x260   :  { %2179 = vmatpush2.bf16.msra.mxu1 %v3319_v42 }
 0x261   :  { %2180 = vmatprep.subr.bf16.mxu1 %v3324_v43 }
 0x264   :  { %2181 = vmatpush2.bf16.msra.mxu1 %v3322_v45 }
 0x265   :  { %2182 = vmatprep.subr.bf16.mxu1 %v3327_v46 }
 0x268   :  { %2183 = vmatpush2.bf16.msra.mxu1 %v3325_v47 }
 0x269   :  { %2898 = vmatprep.subr.bf16.mxu1 %v3344_v52 }
 0x26b   :  { %2185 = vmatmul.mubr.bf16.vlgmr.msra.gmra.mxu1 %v3640_v62 }
 0x26c   :  { %2899 = vmatpush3.bf16.msra.mxu1 %v3345_v53 }
 0x26d   :  { %2900 = vmatprep.subr.bf16.mxu1 %v3346_v54 }
 0x270   :  { %2901 = vmatpush3.bf16.msra.mxu1 %v3347_v56 }
 0x271   :  { %2902 = vmatprep.subr.bf16.mxu1 %v3348_v57 }
 0x274   :  { %2903 = vmatpush3.bf16.msra.mxu1 %v3349_v58 }
 0x275   :  { %2904 = vmatprep.subr.bf16.mxu1 %v3350_v44 }
 0x278   :  { %2905 = vmatpush3.bf16.msra.mxu1 %v3351_v59 }
 0x279   :  { %2906 = vmatprep.subr.bf16.mxu1 %v3352_v37 }
 0x27c   :  { %2907 = vmatpush3.bf16.msra.mxu1 %v3353_v55 }
 0x27d   :  { %2908 = vmatprep.subr.bf16.mxu1 %v3354_v60 }
 0x280   :  { %2909 = vmatpush3.bf16.msra.mxu1 %v3355_v61 }
 0x281   :  { %2910 = vmatprep.subr.bf16.mxu1 %v3356_v63 }
 0x284   :  { %2911 = vmatpush3.bf16.msra.mxu1 %v3357_v0 }
 0x285   :  { %2912 = vmatprep.subr.bf16.mxu1 %v3358_v3 }
 0x288   :  { %2913 = vmatpush3.bf16.msra.mxu1 %v3359_v4 }
 0x2ab   :  { %v2063_v62 = vpop.f32.mrf.mxu0 }
 0x2ac   :  { %v2064_v10 = vadd.f32 %v2063_v62, %v1372_v7 }
 0x2ad   :  { %v2065_v1 = vpop.f32.mrf.mxu0 }
 0x2ae   :  { %v2066_v13 = vadd.f32 %v2065_v1, %v1376_v9 }
 0x2af   :  { %v2067_v2 = vpop.f32.mrf.mxu0 }
 0x2b1   :  { %v2068_v5 = vpop.f32.mrf.mxu0 }
 0x2eb   :  { %v2104_v8 = vpop.f32.mrf.mxu1  ;;  %v2145_v11 = vpop.f32.mrf.mxu0 }
 0x2ec   :  { %v2105_v16 = vadd.f32 %v2104_v8, %v2064_v10  ;;  %v2146_v30 = vadd.f32 %v2145_v11, %v1380_v14 }
 0x2ed   :  { %v2106_v19 = vpop.f32.mrf.mxu1  ;;  %v2147_v20 = vpop.f32.mrf.mxu0 }
 0x2ee   :  { %v2107_v21 = vadd.f32 %v2106_v19, %v2066_v13  ;;  %v2193_v22 = vmax.f32 %v2105_v16, 0.0  ;;  %v2148_v32 = vadd.f32 %v2147_v20, %v1384_v17 }
 0x2ef   :  { %v2108_v23 = vpop.f32.mrf.mxu1  ;;  %v2149_v24 = vpop.f32.mrf.mxu0 }
 0x2f0   :  { %v2194_v25 = vmax.f32 %v2107_v21, 0.0  ;;  %v2197_v29 = vpack.c.bf16 %v2193_v22, %v2193_v22 }
 0x2f1   :  { %v2109_v26 = vpop.f32.mrf.mxu1  ;;  %v2150_v27 = vpop.f32.mrf.mxu0 }
 0x2f2   :  { %v2198_v28 = vpack.c.bf16 %v2194_v25, %v2194_v25 }
 0x2f4   :  { %2496 = vmatprep.mubr.bf16.mxu0 %v2198_v28 }
 0x2f5   :  { %2497 = vmatmul.mubr.bf16.vlgmr.msra.gmra.mxu0 %v2197_v29 }
 0x32b   :  { %v2186_v31 = vpop.f32.mrf.mxu1 }
 0x32c   :  { %v2187_v33 = vadd.f32 %v2186_v31, %v2146_v30 }
 0x32d   :  { %v2188_v34 = vpop.f32.mrf.mxu1 }
 0x32e   :  { %v2189_v35 = vadd.f32 %v2188_v34, %v2148_v32  ;;  %v2195_v36 = vmax.f32 %v2187_v33, 0.0 }
 0x32f   :  { %v2190_v38 = vpop.f32.mrf.mxu1 }
 0x330   :  { %v2196_v39 = vmax.f32 %v2189_v35, 0.0  ;;  %v2199_v42 = vpack.c.bf16 %v2195_v36, %v2195_v36 }
 0x331   :  { %v2191_v40 = vpop.f32.mrf.mxu1 }
 0x332   :  { %v2200_v41 = vpack.c.bf16 %v2196_v39, %v2196_v39 }
 0x334   :  { %2536 = vmatprep.mubr.bf16.mxu1 %v2200_v41 }
 0x335   :  { %2537 = vmatmul.mubr.bf16.vlgmr.msra.gmra.mxu1 %v2199_v42 }
 0x3b5   :  { %v2892_v43 = vpop.f32.mrf.mxu0 }
 0x3b7   :  { %v2893_v45 = vpop.f32.mrf.mxu0 }
 0x3b8   :  { %v2894_v47 = vadd.f32 %v2893_v45, %v2892_v43 }
 0x3b9   :  { %v2895_v46 = vpop.f32.mrf.mxu0 }
 0x3ba   :  { %v2499_v51 = vadd.f32 %v2894_v47, %v2843_v18 }
 0x3bb   :  { %v2896_v15 = vpop.f32.mrf.mxu0 }
 0x3f5   :  { %v2914_v48 = vpop.f32.mrf.mxu1 }
 0x3f7   :  { %v2915_v49 = vpop.f32.mrf.mxu1 }
 0x3f8   :  { %v2916_v52 = vadd.f32 %v2915_v49, %v2914_v48 }
 0x3f9   :  { %v2917_v53 = vpop.f32.mrf.mxu1 }
 0x3fa   :  { %v2539_v54 = vadd.f32 %v2916_v52, %v2499_v51 }
 0x3fb   :  { %v2918_v56 = vpop.f32.mrf.mxu1 }
 0x3fc   :  { %v2544_v57 = vmax.f32 %v2539_v54, 0.0 }
 0x3fe   :  { %v2548_v58 = vsel %vm2547_vm1, %v2544_v57, -inf }
 0x3ff   :  { %2549 = vmax.xlane.f32.xlu0 %v2548_v58 }
 0x488   :  { %v2550_v44 = vpop.xlane.xlu0 %2549 }
 0x489   :  { %v2551_v59 = vsub.f32 %v2548_v58, %v2550_v44 }
 0x48b   :  { %v2552_v37 = vmul.f32 1.442695, %v2551_v59 }
 0x48d   :  { %3360 = vpow2.f32 %v2552_v37 }
 0x49a   :  { %v3361_v55 = vpop.eup %3360 }
 0x49b   :  { %2554 = vadd.xlane.f32.xlu0 %v3361_v55 }
 0x524   :  { %v2555_v60 = vpop.xlane.xlu0 %2554 }
 0x525   :  { %3362 = vrcp.f32 %v2555_v60 }
 0x532   :  { %v3363_v12 = vpop.eup %3362 }
 0x533   :  { %v2557_v61 = vmul.f32 %v3363_v12, %v3361_v55 }
 0x535   :  { %2558 = vst [vmem:[#allocation13] sm:$0xff] %v2557_v61 }
 0x536   :  { %3495 = shalt.err (!%p3492_p6)
}
 0x537   :  { %2568 = dma.vmem_to_hbm [thread:$0]  %s2566_s20, 128, %s3668_s9, [#allocation4]  }
 0x538   :  { %3512 = dma.done.wait [#allocation4], 128  }
 0x539   :  { %3513 = vsyncadd [#allocation4], 4294967168 }
 0x53a   :  { %2572 = vsyncpa [#allocation3], 1 }
 0x53b   :  { %2573 = vsyncpa [#allocation6], 1 }
 0x53c   :  { %2574 = vsyncpa [#allocation9], 1 }
 0x53d   :  { %2575 = vsyncpa [#allocation12], 1 }
 0x53e   :  { %2576 = vsyncpa [#allocation4], 1 }

</bundles_post_ra>
